<compile_context>
chip_gen: v7x
topology: tpu7x:2x2x1
jax: 0.10.0
libtpu: 0.0.40
codegen_flags: <defaults>
</compile_context>

<pallas_src>
import functools

import jax
import jax.numpy as jnp
from jax.experimental import pallas as pl
from jax.experimental.pallas import tpu as pltpu

EPS = 1e-5


# ---------------------------------------------------------------------------
# Kernel 1/2: [optional fused BN-affine+ReLU on the input] -> 3x3 conv (pad=1)
#             -> raw conv output (channels-first, lane-dense)
#             -> per-image per-channel sum / sum-of-squares (next BN's stats)
# ---------------------------------------------------------------------------
def _conv3x3_kernel(W, P, fuse_in, x_ref, w_ref, b_ref, *args):
    # args: ([scale_ref, shift_ref,] y_ref, sum_ref, sq_ref, xpad_scratch)
    if fuse_in:
        sc_ref, sh_ref, y_ref, sum_ref, sq_ref, xpad = args
    else:
        y_ref, sum_ref, sq_ref, xpad = args

    Cout = y_ref.shape[1]
    M = y_ref.shape[2]                      # H * W (flattened spatial)

    x_cf = x_ref[0]                         # (Cin, M), channels-first
    if fuse_in:
        # previous layer's BatchNorm (affine form) + ReLU, fused into this conv
        x_cf = jnp.maximum(x_cf * sc_ref[...] + sh_ref[...], 0.0)

    # Zero-padded (P >= W+1 rows each side, 8-aligned) channels-last copy of
    # the image in VMEM; each conv tap becomes a static sublane-offset slice.
    x_cl = x_cf.T                           # (M, Cin)
    xpad[...] = jnp.zeros_like(xpad)
    xpad[pl.ds(P, M), :] = x_cl

    # Column index of every flattened pixel; masks kill taps that would wrap
    # across the left/right image border.
    col = jax.lax.broadcasted_iota(jnp.int32, (M, 1), 0) % W
    mask_l = col >= 1                       # tap dx = -1 valid
    mask_r = col <= W - 2                   # tap dx = +1 valid

    acc = jnp.zeros((Cout, M), jnp.float32) + b_ref[...]       # bias broadcast
    dn = (((1,), (1,)), ((), ()))           # contract channels: (Cout,Cin)x(M,Cin)
    for dy in (-1, 0, 1):
        for dx in (-1, 0, 1):
            k = (dy + 1) * 3 + (dx + 1)
            xs = xpad[pl.ds(P + dy * W + dx, M), :]             # (M, Cin)
            if dx == -1:
                xs = jnp.where(mask_l, xs, 0.0)
            elif dx == 1:
                xs = jnp.where(mask_r, xs, 0.0)
            acc = acc + jax.lax.dot_general(
                w_ref[k], xs, dn, preferred_element_type=jnp.float32)

    y_ref[0] = acc                                              # (Cout, M)
    sum_ref[0] = jnp.sum(acc, axis=1, keepdims=True)            # (Cout, 1)
    sq_ref[0] = jnp.sum(acc * acc, axis=1, keepdims=True)


def conv3x3_bn_stats(x_cf, w9, b, H, W, in_scale=None, in_shift=None):
    """x_cf: (N, Cin, H*W) channels-first.  w9: (9, Cout, Cin).  b: (Cout,).

    Returns the raw conv output (N, Cout, H*W) plus per-image per-channel sums
    and sums-of-squares (N, Cout, 1) of that output (BatchNorm statistics).
    If in_scale/in_shift are given, scale*x + shift followed by ReLU is applied
    to the input inside the kernel (fused BN+ReLU of the previous layer).
    """
    N, Cin, M = x_cf.shape
    assert M == H * W
    Cout = w9.shape[1]
    fuse_in = in_scale is not None
    P = ((W + 1 + 7) // 8) * 8              # 8-aligned halo >= W + 1

    in_specs = [
        pl.BlockSpec((1, Cin, M), lambda n: (n, 0, 0)),
        pl.BlockSpec((9, Cout, Cin), lambda n: (0, 0, 0)),
        pl.BlockSpec((Cout, 1), lambda n: (0, 0)),
    ]
    inputs = [x_cf, w9, b.reshape(Cout, 1)]
    if fuse_in:
        in_specs += [
            pl.BlockSpec((Cin, 1), lambda n: (0, 0)),
            pl.BlockSpec((Cin, 1), lambda n: (0, 0)),
        ]
        inputs += [in_scale.reshape(Cin, 1), in_shift.reshape(Cin, 1)]

    return pl.pallas_call(
        functools.partial(_conv3x3_kernel, W, P, fuse_in),
        out_shape=(
            jax.ShapeDtypeStruct((N, Cout, M), jnp.float32),
            jax.ShapeDtypeStruct((N, Cout, 1), jnp.float32),
            jax.ShapeDtypeStruct((N, Cout, 1), jnp.float32),
        ),
        grid_spec=pltpu.PrefetchScalarGridSpec(
            num_scalar_prefetch=0,
            grid=(N,),
            in_specs=in_specs,
            out_specs=(
                pl.BlockSpec((1, Cout, M), lambda n: (n, 0, 0)),
                pl.BlockSpec((1, Cout, 1), lambda n: (n, 0, 0)),
                pl.BlockSpec((1, Cout, 1), lambda n: (n, 0, 0)),
            ),
            scratch_shapes=[pltpu.VMEM((M + 2 * P, Cin), jnp.float32)],
        ),
        compiler_params=pltpu.CompilerParams(
            dimension_semantics=("parallel",)),
    )(*inputs)


# ---------------------------------------------------------------------------
# Kernel 3: fused BN2 scale/shift + ReLU -> `down` (NCHW-flat, lane-dense)
#           + 2x2 stride-2 max-pool -> `p` (NCHW-flat)
# ---------------------------------------------------------------------------
def _bn_relu_pool_kernel(y_ref, sc_ref, sh_ref, sel_ref, down_ref, p_ref):
    d = jnp.maximum(y_ref[0] * sc_ref[...] + sh_ref[...], 0.0)   # (C, M)
    down_ref[0] = d
    # Each selector is a one-hot (M, M/4) matrix gathering one tap of every
    # 2x2 pooling window (exact on the MXU); max of the four taps = max-pool.
    p0 = jnp.dot(d, sel_ref[0], preferred_element_type=jnp.float32)
    p1 = jnp.dot(d, sel_ref[1], preferred_element_type=jnp.float32)
    p2 = jnp.dot(d, sel_ref[2], preferred_element_type=jnp.float32)
    p3 = jnp.dot(d, sel_ref[3], preferred_element_type=jnp.float32)
    p_ref[0] = jnp.maximum(jnp.maximum(p0, p1), jnp.maximum(p2, p3))


def bn_relu_maxpool(y_cf, scale, shift, sel):
    N, C, M = y_cf.shape
    Mq = sel.shape[-1]
    return pl.pallas_call(
        _bn_relu_pool_kernel,
        out_shape=(
            jax.ShapeDtypeStruct((N, C, M), jnp.float32),
            jax.ShapeDtypeStruct((N, C, Mq), jnp.float32),
        ),
        grid_spec=pltpu.PrefetchScalarGridSpec(
            num_scalar_prefetch=0,
            grid=(N,),
            in_specs=[
                pl.BlockSpec((1, C, M), lambda n: (n, 0, 0)),
                pl.BlockSpec((C, 1), lambda n: (0, 0)),
                pl.BlockSpec((C, 1), lambda n: (0, 0)),
                pl.BlockSpec((4, M, Mq), lambda n: (0, 0, 0)),
            ],
            out_specs=(
                pl.BlockSpec((1, C, M), lambda n: (n, 0, 0)),
                pl.BlockSpec((1, C, Mq), lambda n: (n, 0, 0)),
            ),
        ),
        compiler_params=pltpu.CompilerParams(
            dimension_semantics=("parallel",)),
    )(y_cf, scale.reshape(C, 1), shift.reshape(C, 1), sel)


# ---------------------------------------------------------------------------
# Tiny host-side glue (vectors of length C only)
# ---------------------------------------------------------------------------
def _bn_affine(psum, psq, gamma, beta, count):
    """Fold batch statistics into y*scale + shift (training-mode BatchNorm)."""
    s = jnp.sum(psum, axis=0)[:, 0]          # (C,)
    q = jnp.sum(psq, axis=0)[:, 0]
    mean = s / count
    var = q / count - mean * mean            # biased variance (PyTorch BN)
    # TODO(synk): E[x^2]-E[x]^2 in f32 can cancel for huge/large-magnitude
    # activations; switch to a centered two-pass update if that becomes real.
    scale = gamma * jax.lax.rsqrt(var + EPS)
    shift = beta - mean * scale
    return scale, shift


def _conv_weight9(w):
    """PyTorch (Cout, Cin, 3, 3) -> (9, Cout, Cin), tap index k = ky*3 + kx."""
    return jnp.transpose(w, (2, 3, 0, 1)).reshape(9, w.shape[0], w.shape[1])


def _pool_selectors(H, W):
    """Four (H*W, H*W/4) one-hot selector matrices for 2x2 / stride-2 pooling."""
    H2, W2 = H // 2, W // 2
    k = jnp.arange(H2 * W2)
    i, j = k // W2, k % W2
    mats = []
    for di in (0, 1):
        for dj in (0, 1):
            src = (2 * i + di) * W + (2 * j + dj)
            mats.append(jax.nn.one_hot(src, H * W, dtype=jnp.float32).T)
    return jnp.stack(mats)                   # (4, H*W, H*W/4)


def downsample_forward(x, p):
    """DownSample.forward: returns (down, MaxPool2d(2,2)(down)), both NCHW."""
    N, Cin, H, W = x.shape
    M = H * W
    Cout = p["w1"].shape[0]

    x_cf = x.reshape(N, Cin, M)              # free metadata reshape (NCHW-flat)

    # conv1 (+ BN1 statistics fused in)
    y1, s1, q1 = conv3x3_bn_stats(x_cf, _conv_weight9(p["w1"]), p["b1"], H, W)
    sc1, sh1 = _bn_affine(s1, q1, p["bn1_g"], p["bn1_b"], N * M)

    # BN1 + ReLU fused into conv2's input; conv2 (+ BN2 statistics)
    y2, s2, q2 = conv3x3_bn_stats(y1, _conv_weight9(p["w2"]), p["b2"], H, W,
                                  in_scale=sc1, in_shift=sh1)
    sc2, sh2 = _bn_affine(s2, q2, p["bn2_g"], p["bn2_b"], N * M)

    # BN2 + ReLU + 2x2 max-pool fused in one epilogue kernel
    down_cf, pool_cf = bn_relu_maxpool(y2, sc2, sh2, _pool_selectors(H, W))

    down = down_cf.reshape(N, Cout, H, W)
    pooled = pool_cf.reshape(N, Cout, H // 2, W // 2)
    return down, pooled


# ---------------------------------------------------------------------------
# Pure-jnp reference (same math via XLA ops) for a sanity check
# ---------------------------------------------------------------------------
def reference_forward(x, p):
    def conv3(z, w, b):
        out = jax.lax.conv_general_dilated(
            z, w, window_strides=(1, 1), padding=((1, 1), (1, 1)),
            dimension_numbers=("NCHW", "OIHW", "NCHW"))
        return out + b[None, :, None, None]

    def bn_relu(z, g, be):
        mean = jnp.mean(z, axis=(0, 2, 3))
        var = jnp.mean(z * z, axis=(0, 2, 3)) - mean * mean
        zn = (z - mean[None, :, None, None]) * jax.lax.rsqrt(
            var + EPS)[None, :, None, None]
        return jnp.maximum(
            zn * g[None, :, None, None] + be[None, :, None, None], 0.0)

    y = bn_relu(conv3(x, p["w1"], p["b1"]), p["bn1_g"], p["bn1_b"])
    y = bn_relu(conv3(y, p["w2"], p["b2"]), p["bn2_g"], p["bn2_b"])
    down = y
    pooled = jnp.maximum(
        jnp.maximum(y[:, :, 0::2, 0::2], y[:, :, 0::2, 1::2]),
        jnp.maximum(y[:, :, 1::2, 0::2], y[:, :, 1::2, 1::2]))
    return down, pooled


# ---------------------------------------------------------------------------
if __name__ == "__main__":
    key = jax.random.PRNGKey(0)
    ks = jax.random.split(key, 12)

    N, Cin, Cout, H, W = 2, 8, 16, 16, 16

    params = {
        "w1": 0.1 * jax.random.normal(ks[0], (Cout, Cin, 3, 3), jnp.float32),
        "b1": 0.1 * jax.random.normal(ks[1], (Cout,), jnp.float32),
        "bn1_g": 1.0 + 0.1 * jax.random.normal(ks[2], (Cout,), jnp.float32),
        "bn1_b": 0.1 * jax.random.normal(ks[3], (Cout,), jnp.float32),
        "w2": 0.1 * jax.random.normal(ks[4], (Cout, Cout, 3, 3), jnp.float32),
        "b2": 0.1 * jax.random.normal(ks[5], (Cout,), jnp.float32),
        "bn2_g": 1.0 + 0.1 * jax.random.normal(ks[6], (Cout,), jnp.float32),
        "bn2_b": 0.1 * jax.random.normal(ks[7], (Cout,), jnp.float32),
    }
    x = jax.random.normal(ks[8], (N, Cin, H, W), jnp.float32)

    down, pooled = jax.jit(downsample_forward)(x, params)
    down = jax.block_until_ready(down)
    pooled = jax.block_until_ready(pooled)

    assert down.shape == (N, Cout, H, W), down.shape
    assert pooled.shape == (N, Cout, H // 2, W // 2), pooled.shape
    assert bool(jnp.all(jnp.isfinite(down)))
    assert bool(jnp.all(jnp.isfinite(pooled)))

    ref_down, ref_pool = reference_forward(x, params)
    ref_down = jax.block_until_ready(ref_down)
    assert jnp.allclose(down, ref_down, atol=2e-3, rtol=2e-3), float(
        jnp.max(jnp.abs(down - ref_down)))
    assert jnp.allclose(pooled, ref_pool, atol=2e-3, rtol=2e-3), float(
        jnp.max(jnp.abs(pooled - ref_pool)))

    print("KERNEL_OK")
</pallas_src>

<mosaic_0001>
module attributes {stable_mosaic.version = 11 : i64} {
  func.func @_conv3x3_kernel(%arg0: i32, %arg1: memref<1x8x256xf32, #tpu.memory_space<vmem>>, %arg2: memref<9x16x8xf32, #tpu.memory_space<vmem>>, %arg3: memref<16x1xf32, #tpu.memory_space<vmem>>, %arg4: memref<1x16x256xf32, #tpu.memory_space<vmem>>, %arg5: memref<1x16x1xf32, #tpu.memory_space<vmem>>, %arg6: memref<1x16x1xf32, #tpu.memory_space<vmem>>, %arg7: memref<304x8xf32, #tpu.memory_space<vmem>>) attributes {dimension_semantics = [#tpu.dimension_semantics<parallel>], iteration_bounds = array<i64: 2>, scalar_prefetch = 0 : i64, scratch_operands = 1 : i64, tpu.core_type = #tpu.core_type<tc>, window_params = [{transform_indices = @transform_0, window_bounds = array<i64: 1, 8, 256>}, {pipeline_mode = #tpu.pipeline_mode<synchronous>, transform_indices = @transform_1, window_bounds = array<i64: 9, 16, 8>}, {pipeline_mode = #tpu.pipeline_mode<synchronous>, transform_indices = @transform_2, window_bounds = array<i64: 16, 1>}, {transform_indices = @transform_3, window_bounds = array<i64: 1, 16, 256>}, {transform_indices = @transform_4, window_bounds = array<i64: 1, 16, 1>}, {transform_indices = @transform_5, window_bounds = array<i64: 1, 16, 1>}]} {
    %c0 = arith.constant 0 : index
    %c0_0 = arith.constant 0 : index
    %c0_1 = arith.constant 0 : index
    %0 = vector.load %arg1[%c0, %c0_0, %c0_1] : memref<1x8x256xf32, #tpu.memory_space<vmem>>, vector<1x8x256xf32>
    %1 = vector.shape_cast %0 : vector<1x8x256xf32> to vector<8x256xf32>
    %2 = tpu.transpose %1, [1, 0] : vector<8x256xf32> -> vector<256x8xf32>
    %cst = arith.constant 0.000000e+00 : f32
    %3 = vector.broadcast %cst : f32 to vector<304x8xf32>
    %c0_2 = arith.constant 0 : index
    %c0_3 = arith.constant 0 : index
    %4 = vector.load %arg7[%c0_2, %c0_3] : memref<304x8xf32, #tpu.memory_space<vmem>>, vector<304x8xf32>
    tpu.vector_store %arg7[%c0_2, %c0_3], %3 {strides = array<i32>} : memref<304x8xf32, #tpu.memory_space<vmem>>, vector<304x8xf32>,
    %c24 = arith.constant 24 : index
    %c0_4 = arith.constant 0 : index
    %5 = vector.load %arg7[%c24, %c0_4] : memref<304x8xf32, #tpu.memory_space<vmem>>, vector<256x8xf32>
    tpu.vector_store %arg7[%c24, %c0_4], %2 {strides = array<i32>} : memref<304x8xf32, #tpu.memory_space<vmem>>, vector<256x8xf32>,
    %6 = tpu.iota {dimensions = array<i32: 0>} : vector<256x1xi32>
    %c16_i32 = arith.constant 16 : i32
    %c0_i32 = arith.constant 0 : i32
    %7 = arith.cmpi eq, %c16_i32, %c0_i32 : i32
    %c1_i32 = arith.constant 1 : i32
    %8 = arith.select %7, %c1_i32, %c16_i32 : i32
    %9 = vector.broadcast %8 : i32 to vector<256x1xi32>
    %10 = arith.remsi %6, %9 : vector<256x1xi32>
    %c0_i32_5 = arith.constant 0 : i32
    %11 = vector.broadcast %c0_i32_5 : i32 to vector<256x1xi32>
    %12 = arith.cmpi ne, %10, %11 : vector<256x1xi32>
    %c0_i32_6 = arith.constant 0 : i32
    %13 = vector.broadcast %c0_i32_6 : i32 to vector<256x1xi32>
    %14 = arith.cmpi slt, %10, %13 : vector<256x1xi32>
    %c0_i32_7 = arith.constant 0 : i32
    %15 = arith.cmpi slt, %8, %c0_i32_7 : i32
    %16 = vector.broadcast %15 : i1 to vector<256x1xi1>
    %17 = vector.broadcast %16 : vector<256x1xi1> to vector<256x1xi1>
    %18 = arith.xori %14, %17 : vector<256x1xi1>
    %19 = arith.andi %18, %12 : vector<256x1xi1>
    %20 = vector.broadcast %8 : i32 to vector<256x1xi32>
    %21 = arith.addi %10, %20 : vector<256x1xi32>
    %22 = arith.select %19, %21, %10 : vector<256x1xi1>, vector<256x1xi32>
    %c1_i32_8 = arith.constant 1 : i32
    %23 = vector.broadcast %c1_i32_8 : i32 to vector<256x1xi32>
    %24 = arith.cmpi sge, %22, %23 : vector<256x1xi32>
    %c14_i32 = arith.constant 14 : i32
    %25 = vector.broadcast %c14_i32 : i32 to vector<256x1xi32>
    %26 = arith.cmpi sle, %22, %25 : vector<256x1xi32>
    %cst_9 = arith.constant 0.000000e+00 : f32
    %27 = vector.broadcast %cst_9 : f32 to vector<16x256xf32>
    %c0_10 = arith.constant 0 : index
    %c0_11 = arith.constant 0 : index
    %28 = vector.load %arg3[%c0_10, %c0_11] : memref<16x1xf32, #tpu.memory_space<vmem>>, vector<16x1xf32>
    %29 = vector.broadcast %28 : vector<16x1xf32> to vector<16x256xf32>
    %30 = arith.addf %27, %29 : vector<16x256xf32>
    %c7 = arith.constant 7 : index
    %c0_12 = arith.constant 0 : index
    %31 = vector.load %arg7[%c7, %c0_12] : memref<304x8xf32, #tpu.memory_space<vmem>>, vector<256x8xf32>
    %cst_13 = arith.constant 0.000000e+00 : f32
    %32 = vector.shape_cast %24 : vector<256x1xi1> to vector<256x1xi1>
    %33 = vector.broadcast %32 : vector<256x1xi1> to vector<256x8xi1>
    %34 = vector.broadcast %cst_13 : f32 to vector<256x8xf32>
    %35 = arith.select %33, %31, %34 : vector<256x8xi1>, vector<256x8xf32>
    %c0_14 = arith.constant 0 : index
    %c0_15 = arith.constant 0 : index
    %c0_16 = arith.constant 0 : index
    %36 = vector.load %arg2[%c0_14, %c0_15, %c0_16] : memref<9x16x8xf32, #tpu.memory_space<vmem>>, vector<1x16x8xf32>
    %37 = vector.shape_cast %36 : vector<1x16x8xf32> to vector<16x8xf32>
    %cst_17 = arith.constant dense<0.000000e+00> : vector<16x256xf32>
    %38 = tpu.matmul %37, %35, %cst_17 {dimension_numbers = #tpu.dot_dimension_numbers<[1], [1], [0], [0], [0, 0, 1, 0], [], []>} : vector<16x8xf32>, vector<256x8xf32>, vector<16x256xf32> -> vector<16x256xf32>
    %39 = arith.addf %30, %38 : vector<16x256xf32>
    %c8 = arith.constant 8 : index
    %c0_18 = arith.constant 0 : index
    %40 = vector.load %arg7[%c8, %c0_18] : memref<304x8xf32, #tpu.memory_space<vmem>>, vector<256x8xf32>
    %c1 = arith.constant 1 : index
    %c0_19 = arith.constant 0 : index
    %c0_20 = arith.constant 0 : index
    %41 = vector.load %arg2[%c1, %c0_19, %c0_20] : memref<9x16x8xf32, #tpu.memory_space<vmem>>, vector<1x16x8xf32>
    %42 = vector.shape_cast %41 : vector<1x16x8xf32> to vector<16x8xf32>
    %cst_21 = arith.constant dense<0.000000e+00> : vector<16x256xf32>
    %43 = tpu.matmul %42, %40, %cst_21 {dimension_numbers = #tpu.dot_dimension_numbers<[1], [1], [0], [0], [0, 0, 1, 0], [], []>} : vector<16x8xf32>, vector<256x8xf32>, vector<16x256xf32> -> vector<16x256xf32>
    %44 = arith.addf %39, %43 : vector<16x256xf32>
    %c9 = arith.constant 9 : index
    %c0_22 = arith.constant 0 : index
    %45 = vector.load %arg7[%c9, %c0_22] : memref<304x8xf32, #tpu.memory_space<vmem>>, vector<256x8xf32>
    %cst_23 = arith.constant 0.000000e+00 : f32
    %46 = vector.shape_cast %26 : vector<256x1xi1> to vector<256x1xi1>
    %47 = vector.broadcast %46 : vector<256x1xi1> to vector<256x8xi1>
    %48 = vector.broadcast %cst_23 : f32 to vector<256x8xf32>
    %49 = arith.select %47, %45, %48 : vector<256x8xi1>, vector<256x8xf32>
    %c2 = arith.constant 2 : index
    %c0_24 = arith.constant 0 : index
    %c0_25 = arith.constant 0 : index
    %50 = vector.load %arg2[%c2, %c0_24, %c0_25] : memref<9x16x8xf32, #tpu.memory_space<vmem>>, vector<1x16x8xf32>
    %51 = vector.shape_cast %50 : vector<1x16x8xf32> to vector<16x8xf32>
    %cst_26 = arith.constant dense<0.000000e+00> : vector<16x256xf32>
    %52 = tpu.matmul %51, %49, %cst_26 {dimension_numbers = #tpu.dot_dimension_numbers<[1], [1], [0], [0], [0, 0, 1, 0], [], []>} : vector<16x8xf32>, vector<256x8xf32>, vector<16x256xf32> -> vector<16x256xf32>
    %53 = arith.addf %44, %52 : vector<16x256xf32>
    %c23 = arith.constant 23 : index
    %c0_27 = arith.constant 0 : index
    %54 = vector.load %arg7[%c23, %c0_27] : memref<304x8xf32, #tpu.memory_space<vmem>>, vector<256x8xf32>
    %cst_28 = arith.constant 0.000000e+00 : f32
    %55 = vector.shape_cast %24 : vector<256x1xi1> to vector<256x1xi1>
    %56 = vector.broadcast %55 : vector<256x1xi1> to vector<256x8xi1>
    %57 = vector.broadcast %cst_28 : f32 to vector<256x8xf32>
    %58 = arith.select %56, %54, %57 : vector<256x8xi1>, vector<256x8xf32>
    %c3 = arith.constant 3 : index
    %c0_29 = arith.constant 0 : index
    %c0_30 = arith.constant 0 : index
    %59 = vector.load %arg2[%c3, %c0_29, %c0_30] : memref<9x16x8xf32, #tpu.memory_space<vmem>>, vector<1x16x8xf32>
    %60 = vector.shape_cast %59 : vector<1x16x8xf32> to vector<16x8xf32>
    %cst_31 = arith.constant dense<0.000000e+00> : vector<16x256xf32>
    %61 = tpu.matmul %60, %58, %cst_31 {dimension_numbers = #tpu.dot_dimension_numbers<[1], [1], [0], [0], [0, 0, 1, 0], [], []>} : vector<16x8xf32>, vector<256x8xf32>, vector<16x256xf32> -> vector<16x256xf32>
    %62 = arith.addf %53, %61 : vector<16x256xf32>
    %c24_32 = arith.constant 24 : index
    %c0_33 = arith.constant 0 : index
    %63 = vector.load %arg7[%c24_32, %c0_33] : memref<304x8xf32, #tpu.memory_space<vmem>>, vector<256x8xf32>
    %c4 = arith.constant 4 : index
    %c0_34 = arith.constant 0 : index
    %c0_35 = arith.constant 0 : index
    %64 = vector.load %arg2[%c4, %c0_34, %c0_35] : memref<9x16x8xf32, #tpu.memory_space<vmem>>, vector<1x16x8xf32>
    %65 = vector.shape_cast %64 : vector<1x16x8xf32> to vector<16x8xf32>
    %cst_36 = arith.constant dense<0.000000e+00> : vector<16x256xf32>
    %66 = tpu.matmul %65, %63, %cst_36 {dimension_numbers = #tpu.dot_dimension_numbers<[1], [1], [0], [0], [0, 0, 1, 0], [], []>} : vector<16x8xf32>, vector<256x8xf32>, vector<16x256xf32> -> vector<16x256xf32>
    %67 = arith.addf %62, %66 : vector<16x256xf32>
    %c25 = arith.constant 25 : index
    %c0_37 = arith.constant 0 : index
    %68 = vector.load %arg7[%c25, %c0_37] : memref<304x8xf32, #tpu.memory_space<vmem>>, vector<256x8xf32>
    %cst_38 = arith.constant 0.000000e+00 : f32
    %69 = vector.shape_cast %26 : vector<256x1xi1> to vector<256x1xi1>
    %70 = vector.broadcast %69 : vector<256x1xi1> to vector<256x8xi1>
    %71 = vector.broadcast %cst_38 : f32 to vector<256x8xf32>
    %72 = arith.select %70, %68, %71 : vector<256x8xi1>, vector<256x8xf32>
    %c5 = arith.constant 5 : index
    %c0_39 = arith.constant 0 : index
    %c0_40 = arith.constant 0 : index
    %73 = vector.load %arg2[%c5, %c0_39, %c0_40] : memref<9x16x8xf32, #tpu.memory_space<vmem>>, vector<1x16x8xf32>
    %74 = vector.shape_cast %73 : vector<1x16x8xf32> to vector<16x8xf32>
    %cst_41 = arith.constant dense<0.000000e+00> : vector<16x256xf32>
    %75 = tpu.matmul %74, %72, %cst_41 {dimension_numbers = #tpu.dot_dimension_numbers<[1], [1], [0], [0], [0, 0, 1, 0], [], []>} : vector<16x8xf32>, vector<256x8xf32>, vector<16x256xf32> -> vector<16x256xf32>
    %76 = arith.addf %67, %75 : vector<16x256xf32>
    %c39 = arith.constant 39 : index
    %c0_42 = arith.constant 0 : index
    %77 = vector.load %arg7[%c39, %c0_42] : memref<304x8xf32, #tpu.memory_space<vmem>>, vector<256x8xf32>
    %cst_43 = arith.constant 0.000000e+00 : f32
    %78 = vector.shape_cast %24 : vector<256x1xi1> to vector<256x1xi1>
    %79 = vector.broadcast %78 : vector<256x1xi1> to vector<256x8xi1>
    %80 = vector.broadcast %cst_43 : f32 to vector<256x8xf32>
    %81 = arith.select %79, %77, %80 : vector<256x8xi1>, vector<256x8xf32>
    %c6 = arith.constant 6 : index
    %c0_44 = arith.constant 0 : index
    %c0_45 = arith.constant 0 : index
    %82 = vector.load %arg2[%c6, %c0_44, %c0_45] : memref<9x16x8xf32, #tpu.memory_space<vmem>>, vector<1x16x8xf32>
    %83 = vector.shape_cast %82 : vector<1x16x8xf32> to vector<16x8xf32>
    %cst_46 = arith.constant dense<0.000000e+00> : vector<16x256xf32>
    %84 = tpu.matmul %83, %81, %cst_46 {dimension_numbers = #tpu.dot_dimension_numbers<[1], [1], [0], [0], [0, 0, 1, 0], [], []>} : vector<16x8xf32>, vector<256x8xf32>, vector<16x256xf32> -> vector<16x256xf32>
    %85 = arith.addf %76, %84 : vector<16x256xf32>
    %c40 = arith.constant 40 : index
    %c0_47 = arith.constant 0 : index
    %86 = vector.load %arg7[%c40, %c0_47] : memref<304x8xf32, #tpu.memory_space<vmem>>, vector<256x8xf32>
    %c7_48 = arith.constant 7 : index
    %c0_49 = arith.constant 0 : index
    %c0_50 = arith.constant 0 : index
    %87 = vector.load %arg2[%c7_48, %c0_49, %c0_50] : memref<9x16x8xf32, #tpu.memory_space<vmem>>, vector<1x16x8xf32>
    %88 = vector.shape_cast %87 : vector<1x16x8xf32> to vector<16x8xf32>
    %cst_51 = arith.constant dense<0.000000e+00> : vector<16x256xf32>
    %89 = tpu.matmul %88, %86, %cst_51 {dimension_numbers = #tpu.dot_dimension_numbers<[1], [1], [0], [0], [0, 0, 1, 0], [], []>} : vector<16x8xf32>, vector<256x8xf32>, vector<16x256xf32> -> vector<16x256xf32>
    %90 = arith.addf %85, %89 : vector<16x256xf32>
    %c41 = arith.constant 41 : index
    %c0_52 = arith.constant 0 : index
    %91 = vector.load %arg7[%c41, %c0_52] : memref<304x8xf32, #tpu.memory_space<vmem>>, vector<256x8xf32>
    %cst_53 = arith.constant 0.000000e+00 : f32
    %92 = vector.shape_cast %26 : vector<256x1xi1> to vector<256x1xi1>
    %93 = vector.broadcast %92 : vector<256x1xi1> to vector<256x8xi1>
    %94 = vector.broadcast %cst_53 : f32 to vector<256x8xf32>
    %95 = arith.select %93, %91, %94 : vector<256x8xi1>, vector<256x8xf32>
    %c8_54 = arith.constant 8 : index
    %c0_55 = arith.constant 0 : index
    %c0_56 = arith.constant 0 : index
    %96 = vector.load %arg2[%c8_54, %c0_55, %c0_56] : memref<9x16x8xf32, #tpu.memory_space<vmem>>, vector<1x16x8xf32>
    %97 = vector.shape_cast %96 : vector<1x16x8xf32> to vector<16x8xf32>
    %cst_57 = arith.constant dense<0.000000e+00> : vector<16x256xf32>
    %98 = tpu.matmul %97, %95, %cst_57 {dimension_numbers = #tpu.dot_dimension_numbers<[1], [1], [0], [0], [0, 0, 1, 0], [], []>} : vector<16x8xf32>, vector<256x8xf32>, vector<16x256xf32> -> vector<16x256xf32>
    %99 = arith.addf %90, %98 : vector<16x256xf32>
    %c0_58 = arith.constant 0 : index
    %c0_59 = arith.constant 0 : index
    %c0_60 = arith.constant 0 : index
    %100 = vector.load %arg4[%c0_58, %c0_59, %c0_60] : memref<1x16x256xf32, #tpu.memory_space<vmem>>, vector<1x16x256xf32>
    %101 = vector.shape_cast %100 : vector<1x16x256xf32> to vector<16x256xf32>
    %102 = vector.shape_cast %99 : vector<16x256xf32> to vector<1x16x256xf32>
    tpu.vector_store %arg4[%c0_58, %c0_59, %c0_60], %102 {strides = array<i32>} : memref<1x16x256xf32, #tpu.memory_space<vmem>>, vector<1x16x256xf32>,
    %cst_61 = arith.constant dense<0.000000e+00> : vector<16xf32>
    %103 = vector.multi_reduction <add>, %99, %cst_61 [1] : vector<16x256xf32> to vector<16xf32>
    %104 = vector.shape_cast %103 : vector<16xf32> to vector<16x1xf32>
    %c0_62 = arith.constant 0 : index
    %c0_63 = arith.constant 0 : index
    %c0_64 = arith.constant 0 : index
    %105 = vector.load %arg5[%c0_62, %c0_63, %c0_64] : memref<1x16x1xf32, #tpu.memory_space<vmem>>, vector<1x16x1xf32>
    %106 = vector.shape_cast %105 : vector<1x16x1xf32> to vector<16x1xf32>
    %107 = vector.shape_cast %104 : vector<16x1xf32> to vector<1x16x1xf32>
    tpu.vector_store %arg5[%c0_62, %c0_63, %c0_64], %107 {strides = array<i32>} : memref<1x16x1xf32, #tpu.memory_space<vmem>>, vector<1x16x1xf32>,
    %108 = arith.mulf %99, %99 : vector<16x256xf32>
    %cst_65 = arith.constant dense<0.000000e+00> : vector<16xf32>
    %109 = vector.multi_reduction <add>, %108, %cst_65 [1] : vector<16x256xf32> to vector<16xf32>
    %110 = vector.shape_cast %109 : vector<16xf32> to vector<16x1xf32>
    %c0_66 = arith.constant 0 : index
    %c0_67 = arith.constant 0 : index
    %c0_68 = arith.constant 0 : index
    %111 = vector.load %arg6[%c0_66, %c0_67, %c0_68] : memref<1x16x1xf32, #tpu.memory_space<vmem>>, vector<1x16x1xf32>
    %112 = vector.shape_cast %111 : vector<1x16x1xf32> to vector<16x1xf32>
    %113 = vector.shape_cast %110 : vector<16x1xf32> to vector<1x16x1xf32>
    tpu.vector_store %arg6[%c0_66, %c0_67, %c0_68], %113 {strides = array<i32>} : memref<1x16x1xf32, #tpu.memory_space<vmem>>, vector<1x16x1xf32>,
    return
  }
  func.func @transform_0(%arg0: i32) -> (i32, i32, i32) {
    %c0_i32 = arith.constant 0 : i32
    %c0_i32_0 = arith.constant 0 : i32
    %c0_i32_1 = arith.constant 0 : i32
    return %arg0, %c0_i32, %c0_i32_0 : i32, i32, i32
  }
  func.func @transform_1(%arg0: i32) -> (i32, i32, i32) {
    %c0_i32 = arith.constant 0 : i32
    %c0_i32_0 = arith.constant 0 : i32
    %c0_i32_1 = arith.constant 0 : i32
    %c0_i32_2 = arith.constant 0 : i32
    return %c0_i32, %c0_i32_0, %c0_i32_1 : i32, i32, i32
  }
  func.func @transform_2(%arg0: i32) -> (i32, i32) {
    %c0_i32 = arith.constant 0 : i32
    %c0_i32_0 = arith.constant 0 : i32
    %c0_i32_1 = arith.constant 0 : i32
    return %c0_i32, %c0_i32_0 : i32, i32
  }
  func.func @transform_3(%arg0: i32) -> (i32, i32, i32) {
    %c0_i32 = arith.constant 0 : i32
    %c0_i32_0 = arith.constant 0 : i32
    %c0_i32_1 = arith.constant 0 : i32
    return %arg0, %c0_i32, %c0_i32_0 : i32, i32, i32
  }
  func.func @transform_4(%arg0: i32) -> (i32, i32, i32) {
    %c0_i32 = arith.constant 0 : i32
    %c0_i32_0 = arith.constant 0 : i32
    %c0_i32_1 = arith.constant 0 : i32
    return %arg0, %c0_i32, %c0_i32_0 : i32, i32, i32
  }
  func.func @transform_5(%arg0: i32) -> (i32, i32, i32) {
    %c0_i32 = arith.constant 0 : i32
    %c0_i32_0 = arith.constant 0 : i32
    %c0_i32_1 = arith.constant 0 : i32
    return %arg0, %c0_i32, %c0_i32_0 : i32, i32, i32
  }
}

module attributes {stable_mosaic.version = 11 : i64} {
  func.func @_bn_relu_pool_kernel(%arg0: i32, %arg1: memref<1x16x256xf32, #tpu.memory_space<vmem>>, %arg2: memref<16x1xf32, #tpu.memory_space<vmem>>, %arg3: memref<16x1xf32, #tpu.memory_space<vmem>>, %arg4: memref<4x256x64xf32, #tpu.memory_space<vmem>>, %arg5: memref<1x16x256xf32, #tpu.memory_space<vmem>>, %arg6: memref<1x16x64xf32, #tpu.memory_space<vmem>>) attributes {dimension_semantics = [#tpu.dimension_semantics<parallel>], iteration_bounds = array<i64: 2>, scalar_prefetch = 0 : i64, scratch_operands = 0 : i64, tpu.core_type = #tpu.core_type<tc>, window_params = [{transform_indices = @transform_0, window_bounds = array<i64: 1, 16, 256>}, {pipeline_mode = #tpu.pipeline_mode<synchronous>, transform_indices = @transform_1, window_bounds = array<i64: 16, 1>}, {pipeline_mode = #tpu.pipeline_mode<synchronous>, transform_indices = @transform_2, window_bounds = array<i64: 16, 1>}, {pipeline_mode = #tpu.pipeline_mode<synchronous>, transform_indices = @transform_3, window_bounds = array<i64: 4, 256, 64>}, {transform_indices = @transform_4, window_bounds = array<i64: 1, 16, 256>}, {transform_indices = @transform_5, window_bounds = array<i64: 1, 16, 64>}]} {
    %c0 = arith.constant 0 : index
    %c0_0 = arith.constant 0 : index
    %c0_1 = arith.constant 0 : index
    %0 = vector.load %arg1[%c0, %c0_0, %c0_1] : memref<1x16x256xf32, #tpu.memory_space<vmem>>, vector<1x16x256xf32>
    %1 = vector.shape_cast %0 : vector<1x16x256xf32> to vector<16x256xf32>
    %c0_2 = arith.constant 0 : index
    %c0_3 = arith.constant 0 : index
    %2 = vector.load %arg2[%c0_2, %c0_3] : memref<16x1xf32, #tpu.memory_space<vmem>>, vector<16x1xf32>
    %3 = vector.broadcast %2 : vector<16x1xf32> to vector<16x256xf32>
    %4 = arith.mulf %1, %3 : vector<16x256xf32>
    %c0_4 = arith.constant 0 : index
    %c0_5 = arith.constant 0 : index
    %5 = vector.load %arg3[%c0_4, %c0_5] : memref<16x1xf32, #tpu.memory_space<vmem>>, vector<16x1xf32>
    %6 = vector.broadcast %5 : vector<16x1xf32> to vector<16x256xf32>
    %7 = arith.addf %4, %6 : vector<16x256xf32>
    %cst = arith.constant 0.000000e+00 : f32
    %8 = vector.broadcast %cst : f32 to vector<16x256xf32>
    %9 = arith.maximumf %7, %8 : vector<16x256xf32>
    %c0_6 = arith.constant 0 : index
    %c0_7 = arith.constant 0 : index
    %c0_8 = arith.constant 0 : index
    %10 = vector.load %arg5[%c0_6, %c0_7, %c0_8] : memref<1x16x256xf32, #tpu.memory_space<vmem>>, vector<1x16x256xf32>
    %11 = vector.shape_cast %10 : vector<1x16x256xf32> to vector<16x256xf32>
    %12 = vector.shape_cast %9 : vector<16x256xf32> to vector<1x16x256xf32>
    tpu.vector_store %arg5[%c0_6, %c0_7, %c0_8], %12 {strides = array<i32>} : memref<1x16x256xf32, #tpu.memory_space<vmem>>, vector<1x16x256xf32>,
    %c0_9 = arith.constant 0 : index
    %c0_10 = arith.constant 0 : index
    %c0_11 = arith.constant 0 : index
    %13 = vector.load %arg4[%c0_9, %c0_10, %c0_11] : memref<4x256x64xf32, #tpu.memory_space<vmem>>, vector<1x256x64xf32>
    %14 = vector.shape_cast %13 : vector<1x256x64xf32> to vector<256x64xf32>
    %cst_12 = arith.constant dense<0.000000e+00> : vector<16x64xf32>
    %15 = tpu.matmul %9, %14, %cst_12 {dimension_numbers = #tpu.dot_dimension_numbers<[1], [0], [0], [1], [0, 0, 1, 1], [], []>} : vector<16x256xf32>, vector<256x64xf32>, vector<16x64xf32> -> vector<16x64xf32>
    %c1 = arith.constant 1 : index
    %c0_13 = arith.constant 0 : index
    %c0_14 = arith.constant 0 : index
    %16 = vector.load %arg4[%c1, %c0_13, %c0_14] : memref<4x256x64xf32, #tpu.memory_space<vmem>>, vector<1x256x64xf32>
    %17 = vector.shape_cast %16 : vector<1x256x64xf32> to vector<256x64xf32>
    %cst_15 = arith.constant dense<0.000000e+00> : vector<16x64xf32>
    %18 = tpu.matmul %9, %17, %cst_15 {dimension_numbers = #tpu.dot_dimension_numbers<[1], [0], [0], [1], [0, 0, 1, 1], [], []>} : vector<16x256xf32>, vector<256x64xf32>, vector<16x64xf32> -> vector<16x64xf32>
    %c2 = arith.constant 2 : index
    %c0_16 = arith.constant 0 : index
    %c0_17 = arith.constant 0 : index
    %19 = vector.load %arg4[%c2, %c0_16, %c0_17] : memref<4x256x64xf32, #tpu.memory_space<vmem>>, vector<1x256x64xf32>
    %20 = vector.shape_cast %19 : vector<1x256x64xf32> to vector<256x64xf32>
    %cst_18 = arith.constant dense<0.000000e+00> : vector<16x64xf32>
    %21 = tpu.matmul %9, %20, %cst_18 {dimension_numbers = #tpu.dot_dimension_numbers<[1], [0], [0], [1], [0, 0, 1, 1], [], []>} : vector<16x256xf32>, vector<256x64xf32>, vector<16x64xf32> -> vector<16x64xf32>
    %c3 = arith.constant 3 : index
    %c0_19 = arith.constant 0 : index
    %c0_20 = arith.constant 0 : index
    %22 = vector.load %arg4[%c3, %c0_19, %c0_20] : memref<4x256x64xf32, #tpu.memory_space<vmem>>, vector<1x256x64xf32>
    %23 = vector.shape_cast %22 : vector<1x256x64xf32> to vector<256x64xf32>
    %cst_21 = arith.constant dense<0.000000e+00> : vector<16x64xf32>
    %24 = tpu.matmul %9, %23, %cst_21 {dimension_numbers = #tpu.dot_dimension_numbers<[1], [0], [0], [1], [0, 0, 1, 1], [], []>} : vector<16x256xf32>, vector<256x64xf32>, vector<16x64xf32> -> vector<16x64xf32>
    %25 = arith.maximumf %15, %18 : vector<16x64xf32>
    %26 = arith.maximumf %21, %24 : vector<16x64xf32>
    %27 = arith.maximumf %25, %26 : vector<16x64xf32>
    %c0_22 = arith.constant 0 : index
    %c0_23 = arith.constant 0 : index
    %c0_24 = arith.constant 0 : index
    %28 = vector.load %arg6[%c0_22, %c0_23, %c0_24] : memref<1x16x64xf32, #tpu.memory_space<vmem>>, vector<1x16x64xf32>
    %29 = vector.shape_cast %28 : vector<1x16x64xf32> to vector<16x64xf32>
    %30 = vector.shape_cast %27 : vector<16x64xf32> to vector<1x16x64xf32>
    tpu.vector_store %arg6[%c0_22, %c0_23, %c0_24], %30 {strides = array<i32>} : memref<1x16x64xf32, #tpu.memory_space<vmem>>, vector<1x16x64xf32>,
    return
  }
  func.func @transform_0(%arg0: i32) -> (i32, i32, i32) {
    %c0_i32 = arith.constant 0 : i32
    %c0_i32_0 = arith.constant 0 : i32
    %c0_i32_1 = arith.constant 0 : i32
    return %arg0, %c0_i32, %c0_i32_0 : i32, i32, i32
  }
  func.func @transform_1(%arg0: i32) -> (i32, i32) {
    %c0_i32 = arith.constant 0 : i32
    %c0_i32_0 = arith.constant 0 : i32
    %c0_i32_1 = arith.constant 0 : i32
    return %c0_i32, %c0_i32_0 : i32, i32
  }
  func.func @transform_2(%arg0: i32) -> (i32, i32) {
    %c0_i32 = arith.constant 0 : i32
    %c0_i32_0 = arith.constant 0 : i32
    %c0_i32_1 = arith.constant 0 : i32
    return %c0_i32, %c0_i32_0 : i32, i32
  }
  func.func @transform_3(%arg0: i32) -> (i32, i32, i32) {
    %c0_i32 = arith.constant 0 : i32
    %c0_i32_0 = arith.constant 0 : i32
    %c0_i32_1 = arith.constant 0 : i32
    %c0_i32_2 = arith.constant 0 : i32
    return %c0_i32, %c0_i32_0, %c0_i32_1 : i32, i32, i32
  }
  func.func @transform_4(%arg0: i32) -> (i32, i32, i32) {
    %c0_i32 = arith.constant 0 : i32
    %c0_i32_0 = arith.constant 0 : i32
    %c0_i32_1 = arith.constant 0 : i32
    return %arg0, %c0_i32, %c0_i32_0 : i32, i32, i32
  }
  func.func @transform_5(%arg0: i32) -> (i32, i32, i32) {
    %c0_i32 = arith.constant 0 : i32
    %c0_i32_0 = arith.constant 0 : i32
    %c0_i32_1 = arith.constant 0 : i32
    return %arg0, %c0_i32, %c0_i32_0 : i32, i32, i32
  }
}

module attributes {stable_mosaic.version = 11 : i64} {
  func.func @_conv3x3_kernel(%arg0: i32, %arg1: memref<1x16x256xf32, #tpu.memory_space<vmem>>, %arg2: memref<9x16x16xf32, #tpu.memory_space<vmem>>, %arg3: memref<16x1xf32, #tpu.memory_space<vmem>>, %arg4: memref<16x1xf32, #tpu.memory_space<vmem>>, %arg5: memref<16x1xf32, #tpu.memory_space<vmem>>, %arg6: memref<1x16x256xf32, #tpu.memory_space<vmem>>, %arg7: memref<1x16x1xf32, #tpu.memory_space<vmem>>, %arg8: memref<1x16x1xf32, #tpu.memory_space<vmem>>, %arg9: memref<304x16xf32, #tpu.memory_space<vmem>>) attributes {dimension_semantics = [#tpu.dimension_semantics<parallel>], iteration_bounds = array<i64: 2>, scalar_prefetch = 0 : i64, scratch_operands = 1 : i64, tpu.core_type = #tpu.core_type<tc>, window_params = [{transform_indices = @transform_0, window_bounds = array<i64: 1, 16, 256>}, {pipeline_mode = #tpu.pipeline_mode<synchronous>, transform_indices = @transform_1, window_bounds = array<i64: 9, 16, 16>}, {pipeline_mode = #tpu.pipeline_mode<synchronous>, transform_indices = @transform_2, window_bounds = array<i64: 16, 1>}, {pipeline_mode = #tpu.pipeline_mode<synchronous>, transform_indices = @transform_3, window_bounds = array<i64: 16, 1>}, {pipeline_mode = #tpu.pipeline_mode<synchronous>, transform_indices = @transform_4, window_bounds = array<i64: 16, 1>}, {transform_indices = @transform_5, window_bounds = array<i64: 1, 16, 256>}, {transform_indices = @transform_6, window_bounds = array<i64: 1, 16, 1>}, {transform_indices = @transform_7, window_bounds = array<i64: 1, 16, 1>}]} {
    %c0 = arith.constant 0 : index
    %c0_0 = arith.constant 0 : index
    %c0_1 = arith.constant 0 : index
    %0 = vector.load %arg1[%c0, %c0_0, %c0_1] : memref<1x16x256xf32, #tpu.memory_space<vmem>>, vector<1x16x256xf32>
    %1 = vector.shape_cast %0 : vector<1x16x256xf32> to vector<16x256xf32>
    %c0_2 = arith.constant 0 : index
    %c0_3 = arith.constant 0 : index
    %2 = vector.load %arg4[%c0_2, %c0_3] : memref<16x1xf32, #tpu.memory_space<vmem>>, vector<16x1xf32>
    %3 = vector.broadcast %2 : vector<16x1xf32> to vector<16x256xf32>
    %4 = arith.mulf %1, %3 : vector<16x256xf32>
    %c0_4 = arith.constant 0 : index
    %c0_5 = arith.constant 0 : index
    %5 = vector.load %arg5[%c0_4, %c0_5] : memref<16x1xf32, #tpu.memory_space<vmem>>, vector<16x1xf32>
    %6 = vector.broadcast %5 : vector<16x1xf32> to vector<16x256xf32>
    %7 = arith.addf %4, %6 : vector<16x256xf32>
    %cst = arith.constant 0.000000e+00 : f32
    %8 = vector.broadcast %cst : f32 to vector<16x256xf32>
    %9 = arith.maximumf %7, %8 : vector<16x256xf32>
    %10 = tpu.transpose %9, [1, 0] : vector<16x256xf32> -> vector<256x16xf32>
    %cst_6 = arith.constant 0.000000e+00 : f32
    %11 = vector.broadcast %cst_6 : f32 to vector<304x16xf32>
    %c0_7 = arith.constant 0 : index
    %c0_8 = arith.constant 0 : index
    %12 = vector.load %arg9[%c0_7, %c0_8] : memref<304x16xf32, #tpu.memory_space<vmem>>, vector<304x16xf32>
    tpu.vector_store %arg9[%c0_7, %c0_8], %11 {strides = array<i32>} : memref<304x16xf32, #tpu.memory_space<vmem>>, vector<304x16xf32>,
    %c24 = arith.constant 24 : index
    %c0_9 = arith.constant 0 : index
    %13 = vector.load %arg9[%c24, %c0_9] : memref<304x16xf32, #tpu.memory_space<vmem>>, vector<256x16xf32>
    tpu.vector_store %arg9[%c24, %c0_9], %10 {strides = array<i32>} : memref<304x16xf32, #tpu.memory_space<vmem>>, vector<256x16xf32>,
    %14 = tpu.iota {dimensions = array<i32: 0>} : vector<256x1xi32>
    %c16_i32 = arith.constant 16 : i32
    %c0_i32 = arith.constant 0 : i32
    %15 = arith.cmpi eq, %c16_i32, %c0_i32 : i32
    %c1_i32 = arith.constant 1 : i32
    %16 = arith.select %15, %c1_i32, %c16_i32 : i32
    %17 = vector.broadcast %16 : i32 to vector<256x1xi32>
    %18 = arith.remsi %14, %17 : vector<256x1xi32>
    %c0_i32_10 = arith.constant 0 : i32
    %19 = vector.broadcast %c0_i32_10 : i32 to vector<256x1xi32>
    %20 = arith.cmpi ne, %18, %19 : vector<256x1xi32>
    %c0_i32_11 = arith.constant 0 : i32
    %21 = vector.broadcast %c0_i32_11 : i32 to vector<256x1xi32>
    %22 = arith.cmpi slt, %18, %21 : vector<256x1xi32>
    %c0_i32_12 = arith.constant 0 : i32
    %23 = arith.cmpi slt, %16, %c0_i32_12 : i32
    %24 = vector.broadcast %23 : i1 to vector<256x1xi1>
    %25 = vector.broadcast %24 : vector<256x1xi1> to vector<256x1xi1>
    %26 = arith.xori %22, %25 : vector<256x1xi1>
    %27 = arith.andi %26, %20 : vector<256x1xi1>
    %28 = vector.broadcast %16 : i32 to vector<256x1xi32>
    %29 = arith.addi %18, %28 : vector<256x1xi32>
    %30 = arith.select %27, %29, %18 : vector<256x1xi1>, vector<256x1xi32>
    %c1_i32_13 = arith.constant 1 : i32
    %31 = vector.broadcast %c1_i32_13 : i32 to vector<256x1xi32>
    %32 = arith.cmpi sge, %30, %31 : vector<256x1xi32>
    %c14_i32 = arith.constant 14 : i32
    %33 = vector.broadcast %c14_i32 : i32 to vector<256x1xi32>
    %34 = arith.cmpi sle, %30, %33 : vector<256x1xi32>
    %cst_14 = arith.constant 0.000000e+00 : f32
    %35 = vector.broadcast %cst_14 : f32 to vector<16x256xf32>
    %c0_15 = arith.constant 0 : index
    %c0_16 = arith.constant 0 : index
    %36 = vector.load %arg3[%c0_15, %c0_16] : memref<16x1xf32, #tpu.memory_space<vmem>>, vector<16x1xf32>
    %37 = vector.broadcast %36 : vector<16x1xf32> to vector<16x256xf32>
    %38 = arith.addf %35, %37 : vector<16x256xf32>
    %c7 = arith.constant 7 : index
    %c0_17 = arith.constant 0 : index
    %39 = vector.load %arg9[%c7, %c0_17] : memref<304x16xf32, #tpu.memory_space<vmem>>, vector<256x16xf32>
    %cst_18 = arith.constant 0.000000e+00 : f32
    %40 = vector.shape_cast %32 : vector<256x1xi1> to vector<256x1xi1>
    %41 = vector.broadcast %40 : vector<256x1xi1> to vector<256x16xi1>
    %42 = vector.broadcast %cst_18 : f32 to vector<256x16xf32>
    %43 = arith.select %41, %39, %42 : vector<256x16xi1>, vector<256x16xf32>
    %c0_19 = arith.constant 0 : index
    %c0_20 = arith.constant 0 : index
    %c0_21 = arith.constant 0 : index
    %44 = vector.load %arg2[%c0_19, %c0_20, %c0_21] : memref<9x16x16xf32, #tpu.memory_space<vmem>>, vector<1x16x16xf32>
    %45 = vector.shape_cast %44 : vector<1x16x16xf32> to vector<16x16xf32>
    %cst_22 = arith.constant dense<0.000000e+00> : vector<16x256xf32>
    %46 = tpu.matmul %45, %43, %cst_22 {dimension_numbers = #tpu.dot_dimension_numbers<[1], [1], [0], [0], [0, 0, 1, 0], [], []>} : vector<16x16xf32>, vector<256x16xf32>, vector<16x256xf32> -> vector<16x256xf32>
    %47 = arith.addf %38, %46 : vector<16x256xf32>
    %c8 = arith.constant 8 : index
    %c0_23 = arith.constant 0 : index
    %48 = vector.load %arg9[%c8, %c0_23] : memref<304x16xf32, #tpu.memory_space<vmem>>, vector<256x16xf32>
    %c1 = arith.constant 1 : index
    %c0_24 = arith.constant 0 : index
    %c0_25 = arith.constant 0 : index
    %49 = vector.load %arg2[%c1, %c0_24, %c0_25] : memref<9x16x16xf32, #tpu.memory_space<vmem>>, vector<1x16x16xf32>
    %50 = vector.shape_cast %49 : vector<1x16x16xf32> to vector<16x16xf32>
    %cst_26 = arith.constant dense<0.000000e+00> : vector<16x256xf32>
    %51 = tpu.matmul %50, %48, %cst_26 {dimension_numbers = #tpu.dot_dimension_numbers<[1], [1], [0], [0], [0, 0, 1, 0], [], []>} : vector<16x16xf32>, vector<256x16xf32>, vector<16x256xf32> -> vector<16x256xf32>
    %52 = arith.addf %47, %51 : vector<16x256xf32>
    %c9 = arith.constant 9 : index
    %c0_27 = arith.constant 0 : index
    %53 = vector.load %arg9[%c9, %c0_27] : memref<304x16xf32, #tpu.memory_space<vmem>>, vector<256x16xf32>
    %cst_28 = arith.constant 0.000000e+00 : f32
    %54 = vector.shape_cast %34 : vector<256x1xi1> to vector<256x1xi1>
    %55 = vector.broadcast %54 : vector<256x1xi1> to vector<256x16xi1>
    %56 = vector.broadcast %cst_28 : f32 to vector<256x16xf32>
    %57 = arith.select %55, %53, %56 : vector<256x16xi1>, vector<256x16xf32>
    %c2 = arith.constant 2 : index
    %c0_29 = arith.constant 0 : index
    %c0_30 = arith.constant 0 : index
    %58 = vector.load %arg2[%c2, %c0_29, %c0_30] : memref<9x16x16xf32, #tpu.memory_space<vmem>>, vector<1x16x16xf32>
    %59 = vector.shape_cast %58 : vector<1x16x16xf32> to vector<16x16xf32>
    %cst_31 = arith.constant dense<0.000000e+00> : vector<16x256xf32>
    %60 = tpu.matmul %59, %57, %cst_31 {dimension_numbers = #tpu.dot_dimension_numbers<[1], [1], [0], [0], [0, 0, 1, 0], [], []>} : vector<16x16xf32>, vector<256x16xf32>, vector<16x256xf32> -> vector<16x256xf32>
    %61 = arith.addf %52, %60 : vector<16x256xf32>
    %c23 = arith.constant 23 : index
    %c0_32 = arith.constant 0 : index
    %62 = vector.load %arg9[%c23, %c0_32] : memref<304x16xf32, #tpu.memory_space<vmem>>, vector<256x16xf32>
    %cst_33 = arith.constant 0.000000e+00 : f32
    %63 = vector.shape_cast %32 : vector<256x1xi1> to vector<256x1xi1>
    %64 = vector.broadcast %63 : vector<256x1xi1> to vector<256x16xi1>
    %65 = vector.broadcast %cst_33 : f32 to vector<256x16xf32>
    %66 = arith.select %64, %62, %65 : vector<256x16xi1>, vector<256x16xf32>
    %c3 = arith.constant 3 : index
    %c0_34 = arith.constant 0 : index
    %c0_35 = arith.constant 0 : index
    %67 = vector.load %arg2[%c3, %c0_34, %c0_35] : memref<9x16x16xf32, #tpu.memory_space<vmem>>, vector<1x16x16xf32>
    %68 = vector.shape_cast %67 : vector<1x16x16xf32> to vector<16x16xf32>
    %cst_36 = arith.constant dense<0.000000e+00> : vector<16x256xf32>
    %69 = tpu.matmul %68, %66, %cst_36 {dimension_numbers = #tpu.dot_dimension_numbers<[1], [1], [0], [0], [0, 0, 1, 0], [], []>} : vector<16x16xf32>, vector<256x16xf32>, vector<16x256xf32> -> vector<16x256xf32>
    %70 = arith.addf %61, %69 : vector<16x256xf32>
    %c24_37 = arith.constant 24 : index
    %c0_38 = arith.constant 0 : index
    %71 = vector.load %arg9[%c24_37, %c0_38] : memref<304x16xf32, #tpu.memory_space<vmem>>, vector<256x16xf32>
    %c4 = arith.constant 4 : index
    %c0_39 = arith.constant 0 : index
    %c0_40 = arith.constant 0 : index
    %72 = vector.load %arg2[%c4, %c0_39, %c0_40] : memref<9x16x16xf32, #tpu.memory_space<vmem>>, vector<1x16x16xf32>
    %73 = vector.shape_cast %72 : vector<1x16x16xf32> to vector<16x16xf32>
    %cst_41 = arith.constant dense<0.000000e+00> : vector<16x256xf32>
    %74 = tpu.matmul %73, %71, %cst_41 {dimension_numbers = #tpu.dot_dimension_numbers<[1], [1], [0], [0], [0, 0, 1, 0], [], []>} : vector<16x16xf32>, vector<256x16xf32>, vector<16x256xf32> -> vector<16x256xf32>
    %75 = arith.addf %70, %74 : vector<16x256xf32>
    %c25 = arith.constant 25 : index
    %c0_42 = arith.constant 0 : index
    %76 = vector.load %arg9[%c25, %c0_42] : memref<304x16xf32, #tpu.memory_space<vmem>>, vector<256x16xf32>
    %cst_43 = arith.constant 0.000000e+00 : f32
    %77 = vector.shape_cast %34 : vector<256x1xi1> to vector<256x1xi1>
    %78 = vector.broadcast %77 : vector<256x1xi1> to vector<256x16xi1>
    %79 = vector.broadcast %cst_43 : f32 to vector<256x16xf32>
    %80 = arith.select %78, %76, %79 : vector<256x16xi1>, vector<256x16xf32>
    %c5 = arith.constant 5 : index
    %c0_44 = arith.constant 0 : index
    %c0_45 = arith.constant 0 : index
    %81 = vector.load %arg2[%c5, %c0_44, %c0_45] : memref<9x16x16xf32, #tpu.memory_space<vmem>>, vector<1x16x16xf32>
    %82 = vector.shape_cast %81 : vector<1x16x16xf32> to vector<16x16xf32>
    %cst_46 = arith.constant dense<0.000000e+00> : vector<16x256xf32>
    %83 = tpu.matmul %82, %80, %cst_46 {dimension_numbers = #tpu.dot_dimension_numbers<[1], [1], [0], [0], [0, 0, 1, 0], [], []>} : vector<16x16xf32>, vector<256x16xf32>, vector<16x256xf32> -> vector<16x256xf32>
    %84 = arith.addf %75, %83 : vector<16x256xf32>
    %c39 = arith.constant 39 : index
    %c0_47 = arith.constant 0 : index
    %85 = vector.load %arg9[%c39, %c0_47] : memref<304x16xf32, #tpu.memory_space<vmem>>, vector<256x16xf32>
    %cst_48 = arith.constant 0.000000e+00 : f32
    %86 = vector.shape_cast %32 : vector<256x1xi1> to vector<256x1xi1>
    %87 = vector.broadcast %86 : vector<256x1xi1> to vector<256x16xi1>
    %88 = vector.broadcast %cst_48 : f32 to vector<256x16xf32>
    %89 = arith.select %87, %85, %88 : vector<256x16xi1>, vector<256x16xf32>
    %c6 = arith.constant 6 : index
    %c0_49 = arith.constant 0 : index
    %c0_50 = arith.constant 0 : index
    %90 = vector.load %arg2[%c6, %c0_49, %c0_50] : memref<9x16x16xf32, #tpu.memory_space<vmem>>, vector<1x16x16xf32>
    %91 = vector.shape_cast %90 : vector<1x16x16xf32> to vector<16x16xf32>
    %cst_51 = arith.constant dense<0.000000e+00> : vector<16x256xf32>
    %92 = tpu.matmul %91, %89, %cst_51 {dimension_numbers = #tpu.dot_dimension_numbers<[1], [1], [0], [0], [0, 0, 1, 0], [], []>} : vector<16x16xf32>, vector<256x16xf32>, vector<16x256xf32> -> vector<16x256xf32>
    %93 = arith.addf %84, %92 : vector<16x256xf32>
    %c40 = arith.constant 40 : index
    %c0_52 = arith.constant 0 : index
    %94 = vector.load %arg9[%c40, %c0_52] : memref<304x16xf32, #tpu.memory_space<vmem>>, vector<256x16xf32>
    %c7_53 = arith.constant 7 : index
    %c0_54 = arith.constant 0 : index
    %c0_55 = arith.constant 0 : index
    %95 = vector.load %arg2[%c7_53, %c0_54, %c0_55] : memref<9x16x16xf32, #tpu.memory_space<vmem>>, vector<1x16x16xf32>
    %96 = vector.shape_cast %95 : vector<1x16x16xf32> to vector<16x16xf32>
    %cst_56 = arith.constant dense<0.000000e+00> : vector<16x256xf32>
    %97 = tpu.matmul %96, %94, %cst_56 {dimension_numbers = #tpu.dot_dimension_numbers<[1], [1], [0], [0], [0, 0, 1, 0], [], []>} : vector<16x16xf32>, vector<256x16xf32>, vector<16x256xf32> -> vector<16x256xf32>
    %98 = arith.addf %93, %97 : vector<16x256xf32>
    %c41 = arith.constant 41 : index
    %c0_57 = arith.constant 0 : index
    %99 = vector.load %arg9[%c41, %c0_57] : memref<304x16xf32, #tpu.memory_space<vmem>>, vector<256x16xf32>
    %cst_58 = arith.constant 0.000000e+00 : f32
    %100 = vector.shape_cast %34 : vector<256x1xi1> to vector<256x1xi1>
    %101 = vector.broadcast %100 : vector<256x1xi1> to vector<256x16xi1>
    %102 = vector.broadcast %cst_58 : f32 to vector<256x16xf32>
    %103 = arith.select %101, %99, %102 : vector<256x16xi1>, vector<256x16xf32>
    %c8_59 = arith.constant 8 : index
    %c0_60 = arith.constant 0 : index
    %c0_61 = arith.constant 0 : index
    %104 = vector.load %arg2[%c8_59, %c0_60, %c0_61] : memref<9x16x16xf32, #tpu.memory_space<vmem>>, vector<1x16x16xf32>
    %105 = vector.shape_cast %104 : vector<1x16x16xf32> to vector<16x16xf32>
    %cst_62 = arith.constant dense<0.000000e+00> : vector<16x256xf32>
    %106 = tpu.matmul %105, %103, %cst_62 {dimension_numbers = #tpu.dot_dimension_numbers<[1], [1], [0], [0], [0, 0, 1, 0], [], []>} : vector<16x16xf32>, vector<256x16xf32>, vector<16x256xf32> -> vector<16x256xf32>
    %107 = arith.addf %98, %106 : vector<16x256xf32>
    %c0_63 = arith.constant 0 : index
    %c0_64 = arith.constant 0 : index
    %c0_65 = arith.constant 0 : index
    %108 = vector.load %arg6[%c0_63, %c0_64, %c0_65] : memref<1x16x256xf32, #tpu.memory_space<vmem>>, vector<1x16x256xf32>
    %109 = vector.shape_cast %108 : vector<1x16x256xf32> to vector<16x256xf32>
    %110 = vector.shape_cast %107 : vector<16x256xf32> to vector<1x16x256xf32>
    tpu.vector_store %arg6[%c0_63, %c0_64, %c0_65], %110 {strides = array<i32>} : memref<1x16x256xf32, #tpu.memory_space<vmem>>, vector<1x16x256xf32>,
    %cst_66 = arith.constant dense<0.000000e+00> : vector<16xf32>
    %111 = vector.multi_reduction <add>, %107, %cst_66 [1] : vector<16x256xf32> to vector<16xf32>
    %112 = vector.shape_cast %111 : vector<16xf32> to vector<16x1xf32>
    %c0_67 = arith.constant 0 : index
    %c0_68 = arith.constant 0 : index
    %c0_69 = arith.constant 0 : index
    %113 = vector.load %arg7[%c0_67, %c0_68, %c0_69] : memref<1x16x1xf32, #tpu.memory_space<vmem>>, vector<1x16x1xf32>
    %114 = vector.shape_cast %113 : vector<1x16x1xf32> to vector<16x1xf32>
    %115 = vector.shape_cast %112 : vector<16x1xf32> to vector<1x16x1xf32>
    tpu.vector_store %arg7[%c0_67, %c0_68, %c0_69], %115 {strides = array<i32>} : memref<1x16x1xf32, #tpu.memory_space<vmem>>, vector<1x16x1xf32>,
    %116 = arith.mulf %107, %107 : vector<16x256xf32>
    %cst_70 = arith.constant dense<0.000000e+00> : vector<16xf32>
    %117 = vector.multi_reduction <add>, %116, %cst_70 [1] : vector<16x256xf32> to vector<16xf32>
    %118 = vector.shape_cast %117 : vector<16xf32> to vector<16x1xf32>
    %c0_71 = arith.constant 0 : index
    %c0_72 = arith.constant 0 : index
    %c0_73 = arith.constant 0 : index
    %119 = vector.load %arg8[%c0_71, %c0_72, %c0_73] : memref<1x16x1xf32, #tpu.memory_space<vmem>>, vector<1x16x1xf32>
    %120 = vector.shape_cast %119 : vector<1x16x1xf32> to vector<16x1xf32>
    %121 = vector.shape_cast %118 : vector<16x1xf32> to vector<1x16x1xf32>
    tpu.vector_store %arg8[%c0_71, %c0_72, %c0_73], %121 {strides = array<i32>} : memref<1x16x1xf32, #tpu.memory_space<vmem>>, vector<1x16x1xf32>,
    return
  }
  func.func @transform_0(%arg0: i32) -> (i32, i32, i32) {
    %c0_i32 = arith.constant 0 : i32
    %c0_i32_0 = arith.constant 0 : i32
    %c0_i32_1 = arith.constant 0 : i32
    return %arg0, %c0_i32, %c0_i32_0 : i32, i32, i32
  }
  func.func @transform_1(%arg0: i32) -> (i32, i32, i32) {
    %c0_i32 = arith.constant 0 : i32
    %c0_i32_0 = arith.constant 0 : i32
    %c0_i32_1 = arith.constant 0 : i32
    %c0_i32_2 = arith.constant 0 : i32
    return %c0_i32, %c0_i32_0, %c0_i32_1 : i32, i32, i32
  }
  func.func @transform_2(%arg0: i32) -> (i32, i32) {
    %c0_i32 = arith.constant 0 : i32
    %c0_i32_0 = arith.constant 0 : i32
    %c0_i32_1 = arith.constant 0 : i32
    return %c0_i32, %c0_i32_0 : i32, i32
  }
  func.func @transform_3(%arg0: i32) -> (i32, i32) {
    %c0_i32 = arith.constant 0 : i32
    %c0_i32_0 = arith.constant 0 : i32
    %c0_i32_1 = arith.constant 0 : i32
    return %c0_i32, %c0_i32_0 : i32, i32
  }
  func.func @transform_4(%arg0: i32) -> (i32, i32) {
    %c0_i32 = arith.constant 0 : i32
    %c0_i32_0 = arith.constant 0 : i32
    %c0_i32_1 = arith.constant 0 : i32
    return %c0_i32, %c0_i32_0 : i32, i32
  }
  func.func @transform_5(%arg0: i32) -> (i32, i32, i32) {
    %c0_i32 = arith.constant 0 : i32
    %c0_i32_0 = arith.constant 0 : i32
    %c0_i32_1 = arith.constant 0 : i32
    return %arg0, %c0_i32, %c0_i32_0 : i32, i32, i32
  }
  func.func @transform_6(%arg0: i32) -> (i32, i32, i32) {
    %c0_i32 = arith.constant 0 : i32
    %c0_i32_0 = arith.constant 0 : i32
    %c0_i32_1 = arith.constant 0 : i32
    return %arg0, %c0_i32, %c0_i32_0 : i32, i32, i32
  }
  func.func @transform_7(%arg0: i32) -> (i32, i32, i32) {
    %c0_i32 = arith.constant 0 : i32
    %c0_i32_0 = arith.constant 0 : i32
    %c0_i32_1 = arith.constant 0 : i32
    return %arg0, %c0_i32, %c0_i32_0 : i32, i32, i32
  }
}

</mosaic_0001>

<bundles_post_ra>
// kernel: downsample_forward.5
= control target key start
LH: loop header
LB: loop body
LE: loop exit
PB: predicated region body
PF: predicated region fallthrough
CT: control target
= control target key end

     0   :  { %s1252_s18 = smov 0   ;;  %s1697_s0 = inlined_call_operand.vmem [shape: f32[2,16,256], index: 0, kind: input, shape index: {}]   ;;  %s1698_s1 = inlined_call_operand.vmem [shape: f32[16,1], index: 1, kind: input, shape index: {}]   ;;  %s1699_s2 = inlined_call_operand.vmem [shape: f32[16,1], index: 2, kind: input, shape index: {}]   ;;  %s1700_s3 = inlined_call_operand.vmem [shape: f32[4,256,64], index: 3, kind: input, shape index: {}]   ;;  %s1701_s4 = inlined_call_operand.vmem [shape: f32[2,16,256], index: 4, kind: output, shape index: {0}]   ;;  %s1702_s5 = inlined_call_operand.vmem [shape: f32[2,16,64], index: 5, kind: output, shape index: {1}]  }
   0x1 LB: > { %s810_s19 = sadd.s32 4294967295, %s1219_s18   ;;  %p814_p0 = scmp.ge.s32.totalorder %s1219_s18, 1  ;;  %s1219_s18 = sphi %s1252_s18, %s16_s18  }
   0x2   : > { %p190_p1 = scmp.lt.s32.totalorder %s1219_s18, 3 }
   0x4   : > { %p191_p2 = pnand %p814_p0, %p190_p1 }
   0x5   : > { %v242_v0 = vld [vmem:[%s1698_s1] sm:$0xff] (!%p191_p2)  ;;  %v243_v1 = vld [vmem:[%s1698_s1 + $0x8] sm:$0xff] (!%p191_p2)  ;;  %v1221_v2 = vmov (!%p191_p2), 0   ;;  %v300_v17 = vld [vmem:[%s1700_s3 + $0x90] sm:$0xff] (!%p191_p2)  ;;  %p223_p3 = scmp.lt.s32.totalorder (!%p191_p2), %s810_s19, 1  ;;  %vm719_vm0 = vcmask (!%p191_p2), 523264  }
   0x6   : > { %194 = sbr.rel (%p191_p2) target bundleno = 400 (0x190), region = 36  ;;  %1211 = vset.pattern.permute.xlu0 (!%p191_p2), %v1221_v2  ;;  %1212 = vset.pattern.permute.xlu1 (!%p191_p2), %v1221_v2  ;;  %v258_v3 = vld [vmem:[%s1699_s2] sm:$0xff] (!%p191_p2)  ;;  %v259_v4 = vld [vmem:[%s1699_s2 + $0x8] sm:$0xff] (!%p191_p2)  ;;  %v301_v18 = vld [vmem:[%s1700_s3 + $0x98] sm:$0xff] (!%p191_p2) }
   0x7   : > { %v298_v5 = vld [vmem:[%s1700_s3 + $0x80] sm:$0xff] (!%p191_p2)  ;;  %v299_v6 = vld [vmem:[%s1700_s3 + $0x88] sm:$0xff] (!%p191_p2)  ;;  %246 = vperm.xlu0 (!%p191_p2), %1211, %v242_v0   ;;  %251 = vperm.xlu1 (!%p191_p2), %1212, %v243_v1   ;;  %v839_v19 = vld [vmem:[%s1700_s3 + $0x190] sm:$0xff] (!%p191_p2)  ;;  %v1078_v20 = vpack.c.bf16 (!%p191_p2), %v301_v18, %v300_v17 }
   0x8   : > { %v1074_v7 = vpack.c.bf16 (!%p191_p2), %v299_v6, %v298_v5  ;;  %v837_v8 = vld [vmem:[%s1700_s3 + $0x180] sm:$0xff] (!%p191_p2)  ;;  %v838_v9 = vld [vmem:[%s1700_s3 + $0x188] sm:$0xff] (!%p191_p2)  ;;  %v840_v21 = vld [vmem:[%s1700_s3 + $0x198] sm:$0xff] (!%p191_p2) }
   0x9   : > { %v282_v10 = vld [vmem:[%s1700_s3] sm:$0xff] (!%p191_p2)  ;;  %v1106_v11 = vpack.c.bf16 (!%p191_p2), %v838_v9, %v837_v8  ;;  %v283_v12 = vld [vmem:[%s1700_s3 + $0x8] sm:$0xff] (!%p191_p2)  ;;  %v284_v22 = vld [vmem:[%s1700_s3 + $0x10] sm:$0xff] (!%p191_p2)  ;;  %v1110_v24 = vpack.c.bf16 (!%p191_p2), %v840_v21, %v839_v19 }
   0xa   : > { %v821_v13 = vld [vmem:[%s1700_s3 + $0x100] sm:$0xff] (!%p191_p2)  ;;  %v822_v14 = vld [vmem:[%s1700_s3 + $0x108] sm:$0xff] (!%p191_p2)  ;;  %1075 = vmatprep.subr.bf16.mxu0 (!%p191_p2), %v1074_v7  ;;  %v1076_v15 = vpack.c.bf16 (!%p191_p2), %v283_v12, %v282_v10  ;;  %v285_v23 = vld [vmem:[%s1700_s3 + $0x18] sm:$0xff] (!%p191_p2) }
   0xb   : > { %v1108_v16 = vpack.c.bf16 (!%p191_p2), %v822_v14, %v821_v13  ;;  %1107 = vmatprep.subr.bf16.mxu1 (!%p191_p2), %v1106_v11  ;;  %262 = vperm.xlu0 (!%p191_p2), %1211, %v258_v3   ;;  %v823_v25 = vld [vmem:[%s1700_s3 + $0x110] sm:$0xff] (!%p191_p2)  ;;  %v824_v26 = vld [vmem:[%s1700_s3 + $0x118] sm:$0xff] (!%p191_p2)  ;;  %v302_v27 = vld [vmem:[%s1700_s3 + $0xa0] sm:$0xff] (!%p191_p2)  ;;  %v1080_v28 = vpack.c.bf16 (!%p191_p2), %v285_v23, %v284_v22 }
   0xc   : > { %267 = vperm.xlu1 (!%p191_p2), %1212, %v259_v4   ;;  %1077 = vmatpush3.bf16.msra.mxu0 (!%p191_p2), %v1076_v15  ;;  %v1112_v29 = vpack.c.bf16 (!%p191_p2), %v824_v26, %v823_v25  ;;  %v303_v30 = vld [vmem:[%s1700_s3 + $0xa8] sm:$0xff] (!%p191_p2)  ;;  %v841_v31 = vld [vmem:[%s1700_s3 + $0x1a0] sm:$0xff] (!%p191_p2)  ;;  %v304_v39 = vld [vmem:[%s1700_s3 + $0xb0] sm:$0xff] (!%p191_p2) }
   0xd   : > { %1109 = vmatpush3.bf16.msra.mxu1 %v1108_v16  ;;  %v842_v32 = vld [vmem:[%s1700_s3 + $0x1a8] sm:$0xff]  ;;  %1079 = vmatprep.subr.bf16.mxu0 %v1078_v20  ;;  %v1082_v33 = vpack.c.bf16 %v303_v30, %v302_v27  ;;  %v286_v35 = vld [vmem:[%s1700_s3 + $0x20] sm:$0xff]  ;;  %v305_v40 = vld [vmem:[%s1700_s3 + $0xb8] sm:$0xff]  ;;  %s1704_s19 = smov (!%p223_p3, %s810_s19), 1 }
   0xe   : > { %1111 = vmatprep.subr.bf16.mxu1 %v1110_v24  ;;  %v1114_v34 = vpack.c.bf16 %v842_v32, %v841_v31  ;;  %v287_v36 = vld [vmem:[%s1700_s3 + $0x28] sm:$0xff]  ;;  %v825_v37 = vld [vmem:[%s1700_s3 + $0x120] sm:$0xff]  ;;  %v843_v41 = vld [vmem:[%s1700_s3 + $0x1b0] sm:$0xff]  ;;  %v1086_v47 = vpack.c.bf16 %v305_v40, %v304_v39  ;;  %s919_s26 = sshll.u32 %s1704_s19, 5  ;;  %s921_s13 = sshll.u32 %s1704_s19, 4 }
   0xf   : > { %v826_v38 = vld [vmem:[%s1700_s3 + $0x128] sm:$0xff]  ;;  %v844_v42 = vld [vmem:[%s1700_s3 + $0x1b8] sm:$0xff]  ;;  %v1084_v43 = vpack.c.bf16 %v287_v36, %v286_v35  ;;  %v288_v45 = vld [vmem:[%s1700_s3 + $0x30] sm:$0xff]  ;;  %s227_s29 = scalar_lea.vmem %s1697_s0, %s919_s26  ;;  %s232_s17 = scalar_lea.vmem %s1701_s4, %s919_s26 }
  0x10   : > { %1081 = vmatpush3.bf16.msra.mxu0 %v1080_v28  ;;  %v1116_v44 = vpack.c.bf16 %v826_v38, %v825_v37  ;;  %v289_v46 = vld [vmem:[%s1700_s3 + $0x38] sm:$0xff]  ;;  %v1118_v48 = vpack.c.bf16 %v844_v42, %v843_v41  ;;  %v827_v49 = vld [vmem:[%s1700_s3 + $0x130] sm:$0xff]  ;;  %v306_v51 = vld [vmem:[%s1700_s3 + $0xc0] sm:$0xff]  ;;  %s237_s16 = scalar_lea.vmem %s1702_s5, %s921_s13 }
  0x11   : > { %1113 = vmatpush3.bf16.msra.mxu1 %v1112_v29  ;;  %1083 = vmatprep.subr.bf16.mxu0 %v1082_v33  ;;  %v828_v50 = vld [vmem:[%s1700_s3 + $0x138] sm:$0xff]  ;;  %v307_v52 = vld [vmem:[%s1700_s3 + $0xc8] sm:$0xff]  ;;  %v845_v53 = vld [vmem:[%s1700_s3 + $0x1c0] sm:$0xff]  ;;  %v1088_v55 = vpack.c.bf16 %v289_v46, %v288_v45 }
  0x12   : > { %1115 = vmatprep.subr.bf16.mxu1 %v1114_v34  ;;  %v846_v54 = vld [vmem:[%s1700_s3 + $0x1c8] sm:$0xff]  ;;  %v1120_v56 = vpack.c.bf16 %v828_v50, %v827_v49  ;;  %v290_v57 = vld [vmem:[%s1700_s3 + $0x40] sm:$0xff]  ;;  %v1090_v59 = vpack.c.bf16 %v307_v52, %v306_v51  ;;  %v308_v63 = vld [vmem:[%s1700_s3 + $0xd0] sm:$0xff] }
  0x13   : > { %v291_v58 = vld [vmem:[%s1700_s3 + $0x48] sm:$0xff]  ;;  %v1122_v60 = vpack.c.bf16 %v846_v54, %v845_v53  ;;  %v829_v61 = vld [vmem:[%s1700_s3 + $0x140] sm:$0xff]  ;;  %v309_v0 = vld [vmem:[%s1700_s3 + $0xd8] sm:$0xff] }
  0x14   : > { %1085 = vmatpush3.bf16.msra.mxu0 %v1084_v43  ;;  %v830_v62 = vld [vmem:[%s1700_s3 + $0x148] sm:$0xff]  ;;  %v847_v1 = vld [vmem:[%s1700_s3 + $0x1d0] sm:$0xff]  ;;  %v848_v2 = vld [vmem:[%s1700_s3 + $0x1d8] sm:$0xff]  ;;  %v1092_v3 = vpack.c.bf16 %v291_v58, %v290_v57  ;;  %v1094_v7 = vpack.c.bf16 %v309_v0, %v308_v63 }
  0x15   : > { %1117 = vmatpush3.bf16.msra.mxu1 %v1116_v44  ;;  %1087 = vmatprep.subr.bf16.mxu0 %v1086_v47  ;;  %v1124_v4 = vpack.c.bf16 %v830_v62, %v829_v61  ;;  %v292_v5 = vld [vmem:[%s1700_s3 + $0x50] sm:$0xff]  ;;  %v293_v6 = vld [vmem:[%s1700_s3 + $0x58] sm:$0xff]  ;;  %v1126_v8 = vpack.c.bf16 %v848_v2, %v847_v1  ;;  %v310_v11 = vld [vmem:[%s1700_s3 + $0xe0] sm:$0xff] }
  0x16   : > { %1119 = vmatprep.subr.bf16.mxu1 %v1118_v48  ;;  %v831_v9 = vld [vmem:[%s1700_s3 + $0x150] sm:$0xff]  ;;  %v832_v10 = vld [vmem:[%s1700_s3 + $0x158] sm:$0xff]  ;;  %v311_v12 = vld [vmem:[%s1700_s3 + $0xe8] sm:$0xff]  ;;  %v1096_v15 = vpack.c.bf16 %v293_v6, %v292_v5 }
  0x17   : > { %v849_v13 = vld [vmem:[%s1700_s3 + $0x1e0] sm:$0xff]  ;;  %v850_v14 = vld [vmem:[%s1700_s3 + $0x1e8] sm:$0xff]  ;;  %v1128_v16 = vpack.c.bf16 %v832_v10, %v831_v9  ;;  %v1098_v19 = vpack.c.bf16 %v311_v12, %v310_v11  ;;  %v312_v23 = vld [vmem:[%s1700_s3 + $0xf0] sm:$0xff] }
  0x18   : > { %1089 = vmatpush3.bf16.msra.mxu0 %v1088_v55  ;;  %v294_v17 = vld [vmem:[%s1700_s3 + $0x60] sm:$0xff]  ;;  %v295_v18 = vld [vmem:[%s1700_s3 + $0x68] sm:$0xff]  ;;  %v1130_v20 = vpack.c.bf16 %v850_v14, %v849_v13  ;;  %v313_v24 = vld [vmem:[%s1700_s3 + $0xf8] sm:$0xff] }
  0x19   : > { %1121 = vmatpush3.bf16.msra.mxu1 %v1120_v56  ;;  %1091 = vmatprep.subr.bf16.mxu0 %v1090_v59  ;;  %v833_v21 = vld [vmem:[%s1700_s3 + $0x160] sm:$0xff]  ;;  %v834_v22 = vld [vmem:[%s1700_s3 + $0x168] sm:$0xff]  ;;  %v851_v25 = vld [vmem:[%s1700_s3 + $0x1f0] sm:$0xff]  ;;  %v1100_v27 = vpack.c.bf16 %v295_v18, %v294_v17  ;;  %v1102_v31 = vpack.c.bf16 %v313_v24, %v312_v23 }
  0x1a   : > { %1123 = vmatprep.subr.bf16.mxu1 %v1122_v60  ;;  %v852_v26 = vld [vmem:[%s1700_s3 + $0x1f8] sm:$0xff]  ;;  %v1132_v28 = vpack.c.bf16 %v834_v22, %v833_v21  ;;  %v296_v29 = vld [vmem:[%s1700_s3 + $0x70] sm:$0xff]  ;;  %v869_v35 = vld [vmem:[%s1700_s3 + $0x280] sm:$0xff] }
  0x1b   : > { %v297_v30 = vld [vmem:[%s1700_s3 + $0x78] sm:$0xff]  ;;  %v1134_v32 = vpack.c.bf16 %v852_v26, %v851_v25  ;;  %v835_v33 = vld [vmem:[%s1700_s3 + $0x170] sm:$0xff]  ;;  %v870_v36 = vld [vmem:[%s1700_s3 + $0x288] sm:$0xff] }
  0x1c   : > { %1093 = vmatpush3.bf16.msra.mxu0 %v1092_v3  ;;  %v836_v34 = vld [vmem:[%s1700_s3 + $0x178] sm:$0xff]  ;;  %v901_v37 = vld [vmem:[%s1700_s3 + $0x380] sm:$0xff]  ;;  %v902_v38 = vld [vmem:[%s1700_s3 + $0x388] sm:$0xff]  ;;  %v1104_v39 = vpack.c.bf16 %v297_v30, %v296_v29  ;;  %v1138_v41 = vpack.c.bf16 %v870_v36, %v869_v35 }
  0x1d   : > { %1125 = vmatpush3.bf16.msra.mxu1 %v1124_v4  ;;  %1095 = vmatprep.subr.bf16.mxu0 %v1094_v7  ;;  %v1136_v40 = vpack.c.bf16 %v836_v34, %v835_v33  ;;  %v1170_v42 = vpack.c.bf16 %v902_v38, %v901_v37  ;;  %v240_v43 = vld [vmem:[%s227_s29 + $0x10] sm:$0xff]  ;;  %v241_v44 = vld [vmem:[%s227_s29 + $0x18] sm:$0xff]  ;;  %v238_v46 = vld [vmem:[%s227_s29] sm:$0xff] }
  0x1e   : > { %1127 = vmatprep.subr.bf16.mxu1 %v1126_v8  ;;  %v239_v47 = vld [vmem:[%s227_s29 + $0x8] sm:$0xff]  ;;  %v853_v51 = vld [vmem:[%s1700_s3 + $0x200] sm:$0xff]  ;;  %v871_v63 = vld [vmem:[%s1700_s3 + $0x290] sm:$0xff] }
  0x1f   : > { %v854_v54 = vld [vmem:[%s1700_s3 + $0x208] sm:$0xff]  ;;  %v885_v55 = vld [vmem:[%s1700_s3 + $0x300] sm:$0xff]  ;;  %v872_v2 = vld [vmem:[%s1700_s3 + $0x298] sm:$0xff] }
  0x20   : > { %1097 = vmatpush3.bf16.msra.mxu0 %v1096_v15  ;;  %v886_v56 = vld [vmem:[%s1700_s3 + $0x308] sm:$0xff]  ;;  %v1140_v0 = vpack.c.bf16 %v854_v54, %v853_v51  ;;  %v903_v3 = vld [vmem:[%s1700_s3 + $0x390] sm:$0xff]  ;;  %v904_v4 = vld [vmem:[%s1700_s3 + $0x398] sm:$0xff]  ;;  %v1142_v13 = vpack.c.bf16 %v872_v2, %v871_v63 }
  0x21   : > { %1129 = vmatpush3.bf16.msra.mxu1 %v1128_v16  ;;  %1099 = vmatprep.subr.bf16.mxu0 %v1098_v19  ;;  %v1172_v1 = vpack.c.bf16 %v886_v56, %v885_v55  ;;  %v855_v9 = vld [vmem:[%s1700_s3 + $0x210] sm:$0xff]  ;;  %v856_v10 = vld [vmem:[%s1700_s3 + $0x218] sm:$0xff]  ;;  %v1174_v14 = vpack.c.bf16 %v904_v4, %v903_v3  ;;  %v873_v15 = vld [vmem:[%s1700_s3 + $0x2a0] sm:$0xff] }
  0x22   : > { %1131 = vmatprep.subr.bf16.mxu1 %v1130_v20  ;;  %v887_v11 = vld [vmem:[%s1700_s3 + $0x310] sm:$0xff]  ;;  %v888_v12 = vld [vmem:[%s1700_s3 + $0x318] sm:$0xff]  ;;  %v874_v16 = vld [vmem:[%s1700_s3 + $0x2a8] sm:$0xff]  ;;  %v1144_v19 = vpack.c.bf16 %v856_v10, %v855_v9 }
  0x23   : > { %v905_v17 = vld [vmem:[%s1700_s3 + $0x3a0] sm:$0xff]  ;;  %v906_v18 = vld [vmem:[%s1700_s3 + $0x3a8] sm:$0xff]  ;;  %v1176_v20 = vpack.c.bf16 %v888_v12, %v887_v11  ;;  %v875_v25 = vld [vmem:[%s1700_s3 + $0x2b0] sm:$0xff]  ;;  %v1146_v26 = vpack.c.bf16 %v874_v16, %v873_v15 }
  0x24   : > { %1101 = vmatpush3.bf16.msra.mxu0 %v1100_v27  ;;  %v857_v21 = vld [vmem:[%s1700_s3 + $0x220] sm:$0xff]  ;;  %v858_v22 = vld [vmem:[%s1700_s3 + $0x228] sm:$0xff]  ;;  %v1178_v27 = vpack.c.bf16 %v906_v18, %v905_v17  ;;  %v907_v29 = vld [vmem:[%s1700_s3 + $0x3b0] sm:$0xff] }
  0x25   : > { %1133 = vmatpush3.bf16.msra.mxu1 %v1132_v28  ;;  %1103 = vmatprep.subr.bf16.mxu0 %v1102_v31  ;;  %v889_v23 = vld [vmem:[%s1700_s3 + $0x320] sm:$0xff]  ;;  %v890_v24 = vld [vmem:[%s1700_s3 + $0x328] sm:$0xff]  ;;  %v876_v28 = vld [vmem:[%s1700_s3 + $0x2b8] sm:$0xff]  ;;  %v1148_v31 = vpack.c.bf16 %v858_v22, %v857_v21 }
  0x26   : > { %1135 = vmatprep.subr.bf16.mxu1 %v1134_v32  ;;  %v908_v30 = vld [vmem:[%s1700_s3 + $0x3b8] sm:$0xff]  ;;  %v1180_v32 = vpack.c.bf16 %v890_v24, %v889_v23  ;;  %v859_v33 = vld [vmem:[%s1700_s3 + $0x230] sm:$0xff]  ;;  %v1150_v35 = vpack.c.bf16 %v876_v28, %v875_v25  ;;  %v881_v63 = vld [vmem:[%s1700_s3 + $0x2e0] sm:$0xff] }
  0x27   : > { %v860_v34 = vld [vmem:[%s1700_s3 + $0x238] sm:$0xff]  ;;  %v1182_v36 = vpack.c.bf16 %v908_v30, %v907_v29  ;;  %v891_v37 = vld [vmem:[%s1700_s3 + $0x330] sm:$0xff]  ;;  %v914_v2 = vld [vmem:[%s1700_s3 + $0x3e8] sm:$0xff] }
  0x28   : > { %1105 = vmatpush3.bf16.msra.mxu0 %v1104_v39  ;;  %v892_v38 = vld [vmem:[%s1700_s3 + $0x338] sm:$0xff]  ;;  %v877_v39 = vld [vmem:[%s1700_s3 + $0x2c0] sm:$0xff]  ;;  %v879_v51 = vld [vmem:[%s1700_s3 + $0x2d0] sm:$0xff] }
  0x29   : > { %1137 = vmatpush3.bf16.msra.mxu1 %v1136_v40  ;;  %1139 = vmatprep.subr.bf16.mxu0 %v1138_v41  ;;  %v878_v40 = vld [vmem:[%s1700_s3 + $0x2c8] sm:$0xff]  ;;  %v909_v41 = vld [vmem:[%s1700_s3 + $0x3c0] sm:$0xff]  ;;  %v912_v54 = vld [vmem:[%s1700_s3 + $0x3d8] sm:$0xff] }
  0x2a   : > { %1171 = vmatprep.subr.bf16.mxu1 %v1170_v42  ;;  %v910_v42 = vld [vmem:[%s1700_s3 + $0x3c8] sm:$0xff]  ;;  %v897_v12 = vld [vmem:[%s1700_s3 + $0x360] sm:$0xff]  ;;  %v884_v15 = vld [vmem:[%s1700_s3 + $0x2f8] sm:$0xff] }
  0x2b   : > { %v866_v9 = vld [vmem:[%s1700_s3 + $0x268] sm:$0xff]  ;;  %v915_v16 = vld [vmem:[%s1700_s3 + $0x3f0] sm:$0xff]  ;;  %v916_v17 = vld [vmem:[%s1700_s3 + $0x3f8] sm:$0xff] }
  0x2c   : > { %v1198_v22 = vpack.c.bf16 %v916_v17, %v915_v16  ;;  %v868_v23 = vld [vmem:[%s1700_s3 + $0x278] sm:$0xff]  ;;  %v899_v24 = vld [vmem:[%s1700_s3 + $0x370] sm:$0xff] }
  0x2d   : > { %v900_v25 = vld [vmem:[%s1700_s3 + $0x378] sm:$0xff] }
  0x86   : > { %v247_v45 = vpop.permute.xlu0 %246  ;;  %v252_v48 = vpop.permute.xlu1 %251 }
  0x87   : > { %v256_v49 = vmul.f32 %v252_v48, %v240_v43  ;;  %v257_v50 = vmul.f32 %v252_v48, %v241_v44  ;;  %v254_v52 = vmul.f32 %v247_v45, %v238_v46  ;;  %v255_v53 = vmul.f32 %v247_v45, %v239_v47  ;;  %v861_v45 = vld [vmem:[%s1700_s3 + $0x240] sm:$0xff]  ;;  %v862_v46 = vld [vmem:[%s1700_s3 + $0x248] sm:$0xff] }
  0x88   : > { %v1152_v43 = vpack.c.bf16 %v860_v34, %v859_v33  ;;  %v1184_v44 = vpack.c.bf16 %v892_v38, %v891_v37  ;;  %v1154_v47 = vpack.c.bf16 %v878_v40, %v877_v39  ;;  %v1186_v48 = vpack.c.bf16 %v910_v42, %v909_v41 }
  0x89   : > { %v1156_v55 = vpack.c.bf16 %v862_v46, %v861_v45 }
  0x8a   : > { %v263_v57 = vpop.permute.xlu0 %262 }
  0x8b   : > { %v268_v58 = vpop.permute.xlu1 %267  ;;  %v270_v59 = vadd.f32 %v263_v57, %v254_v52  ;;  %v271_v60 = vadd.f32 %v263_v57, %v255_v53  ;;  %v880_v52 = vld [vmem:[%s1700_s3 + $0x2d8] sm:$0xff]  ;;  %v911_v53 = vld [vmem:[%s1700_s3 + $0x3d0] sm:$0xff] }
  0x8c   : > { %v272_v61 = vadd.f32 %v268_v58, %v256_v49  ;;  %v273_v62 = vadd.f32 %v268_v58, %v257_v50  ;;  %v893_v49 = vld [vmem:[%s1700_s3 + $0x340] sm:$0xff]  ;;  %v894_v50 = vld [vmem:[%s1700_s3 + $0x348] sm:$0xff]  ;;  %v863_v57 = vld [vmem:[%s1700_s3 + $0x250] sm:$0xff] }
  0x8d   : > { %v1513_v5 = vmax.f32 %v270_v59, 0.0  ;;  %v275_v6 = vmax.f32 %v271_v60, 0.0  ;;  %v1188_v56 = vpack.c.bf16 %v894_v50, %v893_v49  ;;  %v864_v58 = vld [vmem:[%s1700_s3 + $0x258] sm:$0xff]  ;;  %v1158_v59 = vpack.c.bf16 %v880_v52, %v879_v51 }
  0x8e   : > { %v1515_v7 = vmax.f32 %v272_v61, 0.0  ;;  %v1517_v8 = vmax.f32 %v273_v62, 0.0  ;;  %v1190_v60 = vpack.c.bf16 %v912_v54, %v911_v53  ;;  %v895_v61 = vld [vmem:[%s1700_s3 + $0x350] sm:$0xff]  ;;  %v896_v62 = vld [vmem:[%s1700_s3 + $0x358] sm:$0xff]  ;;  %v1160_v3 = vpack.c.bf16 %v864_v58, %v863_v57 }
  0x8f   : > { %278 = vst [vmem:[%s232_s17] sm:$0xff] %v1513_v5  ;;  %279 = vst [vmem:[%s232_s17 + $0x8] sm:$0xff] %v275_v6  ;;  %378 = vmatprep.mubr.f32.mxu0 %v275_v6  ;;  %486 = vmatprep.mubr.f32.mxu1 %v275_v6  ;;  %v1192_v4 = vpack.c.bf16 %v896_v62, %v895_v61 }
  0x90   : > { %280 = vst [vmem:[%s232_s17 + $0x10] sm:$0xff] %v1515_v7  ;;  %281 = vst [vmem:[%s232_s17 + $0x18] sm:$0xff] %v1517_v8  ;;  %379 = vmatmul.mubr.f32.vlgmr.msra.gmra.mrb[0].mxu0 %v1513_v5  ;;  %487 = vmatmul.mubr.f32.vlgmr.msra.gmra.mrb[0].mxu1 %v1513_v5 }
  0x91   : > { %1141 = vmatpush3.bf16.msra.mxu0 %v1140_v0  ;;  %1173 = vmatpush3.bf16.msra.mxu1 %v1172_v1  ;;  %v882_v0 = vld [vmem:[%s1700_s3 + $0x2e8] sm:$0xff]  ;;  %v913_v1 = vld [vmem:[%s1700_s3 + $0x3e0] sm:$0xff] }
  0x92   : > { %383 = vmatprep.mubr.f32.mxu0 %v1517_v8  ;;  %491 = vmatprep.mubr.f32.mxu1 %v1517_v8  ;;  %v1162_v10 = vpack.c.bf16 %v882_v0, %v881_v63  ;;  %v1194_v11 = vpack.c.bf16 %v914_v2, %v913_v1 }
  0x93   : > { %1143 = vmatprep.subr.bf16.mxu0 %v1142_v13  ;;  %1175 = vmatprep.subr.bf16.mxu1 %v1174_v14  ;;  %v898_v13 = vld [vmem:[%s1700_s3 + $0x368] sm:$0xff]  ;;  %v883_v14 = vld [vmem:[%s1700_s3 + $0x2f0] sm:$0xff] }
  0x94   : > { %384 = vmatmul.mubr.f32.gmra.mrb[2].mxu0 %v1515_v7  ;;  %492 = vmatmul.mubr.f32.gmra.mrb[2].mxu1 %v1515_v7  ;;  %v1166_v21 = vpack.c.bf16 %v884_v15, %v883_v14 }
  0x95   : > { %1145 = vmatpush3.bf16.msra.mxu0 %v1144_v19  ;;  %1177 = vmatpush3.bf16.msra.mxu1 %v1176_v20  ;;  %v1196_v19 = vpack.c.bf16 %v898_v13, %v897_v12  ;;  %v867_v20 = vld [vmem:[%s1700_s3 + $0x270] sm:$0xff] }
  0x96   : > { %594 = vmatprep.mubr.f32.mxu0 %v275_v6  ;;  %702 = vmatprep.mubr.f32.mxu1 %v275_v6  ;;  %v865_v6 = vld [vmem:[%s1700_s3 + $0x260] sm:$0xff] }
  0x97   : > { %1147 = vmatprep.subr.bf16.mxu0 %v1146_v26  ;;  %1179 = vmatprep.subr.bf16.mxu1 %v1178_v27  ;;  %v1164_v18 = vpack.c.bf16 %v866_v9, %v865_v6  ;;  %v1168_v26 = vpack.c.bf16 %v868_v23, %v867_v20  ;;  %v1200_v27 = vpack.c.bf16 %v900_v25, %v899_v24 }
  0x99   : > { %1149 = vmatpush3.bf16.msra.mxu0 %v1148_v31  ;;  %1181 = vmatpush3.bf16.msra.mxu1 %v1180_v32 }
  0x9a   : > { %1151 = vmatprep.subr.bf16.mxu0 %v1150_v35  ;;  %1183 = vmatprep.subr.bf16.mxu1 %v1182_v36 }
  0x9d   : > { %1153 = vmatpush3.bf16.msra.mxu0 %v1152_v43  ;;  %1185 = vmatpush3.bf16.msra.mxu1 %v1184_v44 }
  0x9e   : > { %1155 = vmatprep.subr.bf16.mxu0 %v1154_v47  ;;  %1187 = vmatprep.subr.bf16.mxu1 %v1186_v48 }
  0xa1   : > { %1157 = vmatpush3.bf16.msra.mxu0 %v1156_v55  ;;  %1189 = vmatpush3.bf16.msra.mxu1 %v1188_v56 }
  0xa2   : > { %1159 = vmatprep.subr.bf16.mxu0 %v1158_v59  ;;  %1191 = vmatprep.subr.bf16.mxu1 %v1190_v60 }
  0xa5   : > { %1161 = vmatpush3.bf16.msra.mxu0 %v1160_v3  ;;  %1193 = vmatpush3.bf16.msra.mxu1 %v1192_v4 }
  0xa6   : > { %1163 = vmatprep.subr.bf16.mxu0 %v1162_v10  ;;  %1195 = vmatprep.subr.bf16.mxu1 %v1194_v11 }
  0xa9   : > { %1165 = vmatpush3.bf16.msra.mxu0 %v1164_v18  ;;  %1197 = vmatpush3.bf16.msra.mxu1 %v1196_v19 }
  0xaa   : > { %1167 = vmatprep.subr.bf16.mxu0 %v1166_v21  ;;  %1199 = vmatprep.subr.bf16.mxu1 %v1198_v22 }
  0xad   : > { %1169 = vmatpush3.bf16.msra.mxu0 %v1168_v26  ;;  %1201 = vmatpush3.bf16.msra.mxu1 %v1200_v27 }
  0xb0   : > { %595 = vmatmul.mubr.f32.vlgmr.msra.gmra.mrb[4].mxu0 %v1513_v5  ;;  %703 = vmatmul.mubr.f32.vlgmr.msra.gmra.mrb[4].mxu1 %v1513_v5 }
  0xb1   : > { %599 = vmatprep.mubr.f32.mxu0 %v1517_v8  ;;  %707 = vmatprep.mubr.f32.mxu1 %v1517_v8 }
  0xb4   : > { %600 = vmatmul.mubr.f32.gmra.mrb[6].mxu0 %v1515_v7  ;;  %708 = vmatmul.mubr.f32.gmra.mrb[6].mxu1 %v1515_v7 }
 0x163   : > { %v954_v28 = vpop.f32.mrb[0].mxu0  ;;  %v992_v29 = vpop.f32.mrb[0].mxu1 }
 0x164   : > { %v955_v30 = vpop.f32.mrb[1].mxu0  ;;  %v993_v31 = vpop.f32.mrb[1].mxu1 }
 0x165   : > { %v956_v32 = vadd.f32 %v955_v30, %v954_v28  ;;  %v994_v33 = vadd.f32 %v993_v31, %v992_v29 }
 0x167   : > { %v713_v34 = vmax.f32 %v956_v32, %v994_v33  ;;  %v957_v35 = vpop.f32.mrb[2].mxu0  ;;  %v995_v36 = vpop.f32.mrb[2].mxu1 }
 0x168   : > { %v958_v37 = vpop.f32.mrb[3].mxu0  ;;  %v996_v5 = vpop.f32.mrb[3].mxu1 }
 0x169   : > { %v959_v38 = vadd.f32 %v958_v37, %v957_v35  ;;  %v997_v39 = vadd.f32 %v996_v5, %v995_v36 }
 0x16b   : > { %v714_v40 = vmax.f32 %v959_v38, %v997_v39 }
 0x183   : > { %v1030_v8 = vpop.f32.mrb[4].mxu0  ;;  %v1068_v41 = vpop.f32.mrb[4].mxu1 }
 0x184   : > { %v1031_v42 = vpop.f32.mrb[5].mxu0  ;;  %v1069_v43 = vpop.f32.mrb[5].mxu1 }
 0x185   : > { %v1032_v7 = vadd.f32 %v1031_v42, %v1030_v8  ;;  %v1070_v44 = vadd.f32 %v1069_v43, %v1068_v41 }
 0x187   : > { %v715_v45 = vmax.f32 %v1032_v7, %v1070_v44  ;;  %v1033_v46 = vpop.f32.mrb[6].mxu0  ;;  %v1071_v47 = vpop.f32.mrb[6].mxu1 }
 0x188   : > { %v1034_v48 = vpop.f32.mrb[7].mxu0  ;;  %v1072_v49 = vpop.f32.mrb[7].mxu1 }
 0x189   : > { %v717_v50 = vmax.f32 %v713_v34, %v715_v45  ;;  %v1035_v51 = vadd.f32 %v1034_v48, %v1033_v46  ;;  %v1073_v52 = vadd.f32 %v1072_v49, %v1071_v47 }
 0x18b   : > { %720 = vst.msk [vmem:[%s237_s16] sm:$0xff] %vm719_vm0, %v717_v50  ;;  %v716_v53 = vmax.f32 %v1035_v51, %v1073_v52 }
 0x18d   : > { %v718_v54 = vmax.f32 %v714_v40, %v716_v53 }
 0x18f   : > { %721 = vst.msk [vmem:[%s237_s16 + $0x8] sm:$0xff] %vm719_vm0, %v718_v54 }
 0x190 PF: > { %s16_s18 = sadd.s32 1, %s1219_s18  }
 0x191   : > { %p13_p4 = scmp.ge.s32.totalorder %s16_s18, 4  }
 0x193   :  { %15 = sbr.rel (!%p13_p4) target bundleno = 1 (0x1), region = 81 }

// kernel: downsample_forward.3
= control target key start
LH: loop header
LB: loop body
LE: loop exit
PB: predicated region body
PF: predicated region fallthrough
CT: control target
= control target key end

     0   :  { %s4510_s18 = smov 0   ;;  %s5888_s0 = inlined_call_operand.vmem [shape: f32[2,8,256], index: 0, kind: input, shape index: {}]   ;;  %s5889_s1 = inlined_call_operand.vmem [shape: f32[9,16,8], index: 1, kind: input, shape index: {}]   ;;  %s5890_s2 = inlined_call_operand.vmem [shape: f32[16,1], index: 2, kind: input, shape index: {}]   ;;  %s5891_s3 = inlined_call_operand.vmem [shape: f32[2,16,256], index: 3, kind: output, shape index: {0}]   ;;  %s5892_s4 = inlined_call_operand.vmem [shape: f32[2,16,1], index: 4, kind: output, shape index: {1}]   ;;  %s5893_s5 = inlined_call_operand.vmem [shape: f32[2,16,1], index: 5, kind: output, shape index: {2}]  }
   0x1 LB: > { %s3309_s19 = sadd.s32 4294967295, %s4476_s18   ;;  %p3313_p0 = scmp.ge.s32.totalorder %s4476_s18, 1  ;;  %s4476_s18 = sphi %s4510_s18, %s16_s18  }
   0x2   : > { %p192_p1 = scmp.lt.s32.totalorder %s4476_s18, 3 }
   0x4   : > { %p193_p2 = pnand %p3313_p0, %p192_p1 }
   0x6   : > { %196 = sbr.rel (%p193_p2) target bundleno = 920 (0x398), region = 32 }
   0xd   : > { %p4520_p3 = scmp.lt.s32.totalorder %s3309_s19, 1  ;;  %vm316_vm0 = vcmask 64512   ;;  %v4478_v0 = vmov 0.0   ;;  %v387_v3 = vlaneseq  ;;  %v4579_v5 = vld [vmem:[%s5889_s1] sm:$0xff]  ;;  %v5968_v39 = vmov 0 }
   0xe   : > { %320 = vst.msk [vmem:[#allocation2 + $0x18] sm:$0xff] %vm316_vm0, %v4478_v0  ;;  %317 = vst.msk [vmem:[#allocation2] sm:$0xff] %vm316_vm0, %v4478_v0  ;;  %3682 = vmatprep.mubr.msk.f32.mxu1 %vm316_vm0, %v4579_v5  ;;  %v4598_v13 = vld [vmem:[%s5889_s1 + $0x40] sm:$0xff]  ;;  %v5976_v55 = vmov 0  ;;  %v5978_v58 = vmov 0 }
   0xf   : > { %318 = vst.msk [vmem:[#allocation2 + $0x8] sm:$0xff] %vm316_vm0, %v4478_v0  ;;  %319 = vst.msk [vmem:[#allocation2 + $0x10] sm:$0xff] %vm316_vm0, %v4478_v0  ;;  %s6192_s19 = smov (!%p4520_p3, %s3309_s19), 1  ;;  %v4583_v6 = vshrl.u32 %v387_v3, 7  ;;  %3826 = vmatprep.mubr.msk.f32.mxu0 %vm316_vm0, %v4598_v13 }
  0x10   : > { %321 = vst.msk [vmem:[#allocation2 + $0x20] sm:$0xff] %vm316_vm0, %v4478_v0  ;;  %322 = vst.msk [vmem:[#allocation2 + $0x28] sm:$0xff] %vm316_vm0, %v4478_v0  ;;  %s4569_s21 = sshll.u32 %s6192_s19, 4  ;;  %s3647_s20 = sshll.u32 %s6192_s19, 5 }
  0x11   : > { %323 = vst.msk [vmem:[#allocation2 + $0x30] sm:$0xff] %vm316_vm0, %v4478_v0  ;;  %324 = vst.msk [vmem:[#allocation2 + $0x38] sm:$0xff] %vm316_vm0, %v4478_v0  ;;  %s234_s24 = scalar_lea.vmem %s5888_s0, %s4569_s21  ;;  %v424_v8 = vand.u32 15, %v4583_v6  ;;  %v391_v9 = vadd.s32 24, %v4583_v6  ;;  %v393_v20 = vadd.s32 40, %v4583_v6  ;;  %v390_v22 = vadd.s32 16, %v4583_v6  ;;  %s244_s26 = scalar_lea.vmem %s5892_s4, %s4569_s21 }
  0x12   : > { %325 = vst.msk [vmem:[#allocation2 + $0x40] sm:$0xff] %vm316_vm0, %v4478_v0  ;;  %326 = vst.msk [vmem:[#allocation2 + $0x48] sm:$0xff] %vm316_vm0, %v4478_v0  ;;  %v250_v1 = vld [vmem:[%s234_s24] sm:$0xff]  ;;  %v251_v2 = vld [vmem:[%s234_s24 + $0x8] sm:$0xff]  ;;  %v389_v25 = vadd.s32 8, %v4583_v6  ;;  %v395_v37 = vadd.s32 56, %v4583_v6  ;;  %s239_s24 = scalar_lea.vmem %s5891_s3, %s3647_s20  ;;  %s249_s29 = scalar_lea.vmem %s5893_s5, %s4569_s21 }
  0x13   : > { %327 = vst.msk [vmem:[#allocation2 + $0x50] sm:$0xff] %vm316_vm0, %v4478_v0  ;;  %328 = vst.msk [vmem:[#allocation2 + $0x58] sm:$0xff] %vm316_vm0, %v4478_v0  ;;  %252 = vxpose.xlu0.b32.start.end [1/1] (short) %v250_v1, 128  ;;  %vm4589_vm1 = vcmp.ge.s32.totalorder %v424_v8, 1  ;;  %v445_v14 = vand.u32 15, %v391_v9  ;;  %v459_v28 = vand.u32 15, %v393_v20  ;;  %v438_v33 = vand.u32 15, %v390_v22 }
  0x14   : > { %329 = vst.msk [vmem:[#allocation2 + $0x60] sm:$0xff] %vm316_vm0, %v4478_v0  ;;  %330 = vst.msk [vmem:[#allocation2 + $0x68] sm:$0xff] %vm316_vm0, %v4478_v0  ;;  %v431_v35 = vand.u32 15, %v389_v25  ;;  %v392_v40 = vadd.s32 32, %v4583_v6  ;;  %v473_v47 = vand.u32 15, %v395_v37  ;;  %v397_v56 = vadd.s32 72, %v4583_v6 }
  0x15   : > { %331 = vst.msk [vmem:[#allocation2 + $0x70] sm:$0xff] %vm316_vm0, %v4478_v0  ;;  %332 = vst.msk [vmem:[#allocation2 + $0x78] sm:$0xff] %vm316_vm0, %v4478_v0  ;;  %vm4611_vm2 = vcmp.le.s32.totalorder %v445_v14, 14  ;;  %vm4640_vm3 = vcmp.le.s32.totalorder %v459_v28, 14  ;;  %vm4645_vm4 = vcmp.ge.s32.totalorder %v438_v33, 1  ;;  %v394_v59 = vadd.s32 48, %v4583_v6 }
  0x16   : > { %333 = vst.msk [vmem:[#allocation2 + $0x80] sm:$0xff] %vm316_vm0, %v4478_v0  ;;  %334 = vst.msk [vmem:[#allocation2 + $0x88] sm:$0xff] %vm316_vm0, %v4478_v0  ;;  %v5969_v39 = vsel %vm4645_vm4, 4294967295, %v5968_v39  ;;  %vm4655_vm5 = vcmp.le.s32.totalorder %v431_v35, 14  ;;  %v452_v52 = vand.u32 15, %v392_v40  ;;  %vm4682_vm6 = vcmp.le.s32.totalorder %v473_v47, 14 }
  0x17   : > { %335 = vst.msk [vmem:[#allocation2 + $0x90] sm:$0xff] %vm316_vm0, %v4478_v0  ;;  %336 = vst.msk [vmem:[#allocation2 + $0x98] sm:$0xff] %vm316_vm0, %v4478_v0  ;;  %v5977_v55 = vsel %vm4682_vm6, 4294967295, %v5976_v55  ;;  %v487_v1 = vand.u32 15, %v397_v56  ;;  %v466_v8 = vand.u32 15, %v394_v59  ;;  %v5984_v14 = vmov 0 }
  0x18   : > { %337 = vst.msk [vmem:[#allocation2 + $0xa0] sm:$0xff] %vm316_vm0, %v4478_v0  ;;  %338 = vst.msk [vmem:[#allocation2 + $0xa8] sm:$0xff] %vm316_vm0, %v4478_v0  ;;  %vm4687_vm7 = vcmp.ge.s32.totalorder %v452_v52, 1  ;;  %v5987_v20 = vmov 0  ;;  %v401_v52 = vadd.s32 104, %v4583_v6 }
  0x19   : > { %339 = vst.msk [vmem:[#allocation2 + $0xb0] sm:$0xff] %vm316_vm0, %v4478_v0  ;;  %340 = vst.msk [vmem:[#allocation2 + $0xb8] sm:$0xff] %vm316_vm0, %v4478_v0  ;;  %v5979_v58 = vsel %vm4687_vm7, 4294967295, %v5978_v58  ;;  %vm4720_vm8 = vcmp.le.s32.totalorder %v487_v1, 14  ;;  %vm4725_vm9 = vcmp.ge.s32.totalorder %v466_v8, 1  ;;  %v400_v1 = vadd.s32 96, %v4583_v6 }
  0x1a   : > { %341 = vst.msk [vmem:[#allocation2 + $0xc0] sm:$0xff] %vm316_vm0, %v4478_v0  ;;  %342 = vst.msk [vmem:[#allocation2 + $0xc8] sm:$0xff] %vm316_vm0, %v4478_v0  ;;  %v5985_v14 = vsel %vm4720_vm8, 4294967295, %v5984_v14  ;;  %v5988_v20 = vsel %vm4725_vm9, 4294967295, %v5987_v20 }
  0x1b   : > { %343 = vst.msk [vmem:[#allocation2 + $0xd0] sm:$0xff] %vm316_vm0, %v4478_v0  ;;  %344 = vst.msk [vmem:[#allocation2 + $0xd8] sm:$0xff] %vm316_vm0, %v4478_v0 }
  0x1c   : > { %345 = vst.msk [vmem:[#allocation2 + $0xe0] sm:$0xff] %vm316_vm0, %v4478_v0  ;;  %346 = vst.msk [vmem:[#allocation2 + $0xe8] sm:$0xff] %vm316_vm0, %v4478_v0 }
  0x1d   : > { %347 = vst.msk [vmem:[#allocation2 + $0xf0] sm:$0xff] %vm316_vm0, %v4478_v0  ;;  %348 = vst.msk [vmem:[#allocation2 + $0xf8] sm:$0xff] %vm316_vm0, %v4478_v0 }
  0x1e   : > { %349 = vst.msk [vmem:[#allocation2 + $0x100] sm:$0xff] %vm316_vm0, %v4478_v0  ;;  %350 = vst.msk [vmem:[#allocation2 + $0x108] sm:$0xff] %vm316_vm0, %v4478_v0 }
  0x1f   : > { %351 = vst.msk [vmem:[#allocation2 + $0x110] sm:$0xff] %vm316_vm0, %v4478_v0  ;;  %352 = vst.msk [vmem:[#allocation2 + $0x118] sm:$0xff] %vm316_vm0, %v4478_v0 }
  0x20   : > { %353 = vst.msk [vmem:[#allocation2 + $0x120] sm:$0xff] %vm316_vm0, %v4478_v0  ;;  %354 = vst.msk [vmem:[#allocation2 + $0x128] sm:$0xff] %vm316_vm0, %v4478_v0 }
  0x21   : > { %5970 = vst [vmem:[#allocation6_spill] sm:$0xff] %v5969_v39  ;;  %5980 = vst [vmem:[#allocation10_spill] sm:$0xff] %v5979_v58 }
  0x22   : > { %5986 = vst [vmem:[#allocation14_spill] sm:$0xff] %v5985_v14  ;;  %5989 = vst [vmem:[#allocation15_spill] sm:$0xff] %v5988_v20 }
  0x50   : > { %284 = vxpose.xlu0.b32.start.end [1/1] (short) %v251_v2, 128 }
  0x93   : > { %v268_v4 = vpop.trf.xlu0 }
  0x94   : > { %355 = vst.msk [vmem:[#allocation2 + $0x18] sm:$0xff] %vm316_vm0, %v268_v4 }
  0x97   : > { %v269_v7 = vpop.trf.xlu0 }
  0x98   : > { %356 = vst.msk [vmem:[#allocation2 + $0x20] sm:$0xff] %vm316_vm0, %v269_v7 }
  0x9b   : > { %v270_v10 = vpop.trf.xlu0  ;;  %v4593_v12 = vld [vmem:[#allocation2 + $0x17] sm:$0xff] }
  0x9c   : > { %357 = vst.msk [vmem:[#allocation2 + $0x28] sm:$0xff] %vm316_vm0, %v270_v10  ;;  %v1759_v17 = vsel %vm4589_vm1, %v4593_v12, 0.0 }
  0x9f   : > { %v271_v15 = vpop.trf.xlu0  ;;  %v4602_v16 = vld [vmem:[#allocation2 + $0x1f] sm:$0xff] }
  0xa0   : > { %358 = vst.msk [vmem:[#allocation2 + $0x30] sm:$0xff] %vm316_vm0, %v271_v15  ;;  %v4609_v18 = vpack.c.bf16 %v4602_v16, %v1759_v17  ;;  %v4623_v26 = vld [vmem:[#allocation2 + $0x19] sm:$0xff]  ;;  %v399_v15 = vadd.s32 88, %v4583_v6 }
  0xa2   : > { %5961 = vst [vmem:[#allocation3_spill] sm:$0xff] %v4609_v18  ;;  %v501_v33 = vand.u32 15, %v399_v15  ;;  %v515_v15 = vand.u32 15, %v401_v52  ;;  %v403_v52 = vadd.s32 120, %v4583_v6 }
  0xa3   : > { %v272_v21 = vpop.trf.xlu0  ;;  %v4617_v23 = vld [vmem:[#allocation2 + $0x21] sm:$0xff] }
  0xa4   : > { %359 = vst.msk [vmem:[#allocation2 + $0x38] sm:$0xff] %vm316_vm0, %v272_v21  ;;  %v4620_v24 = vld [vmem:[#allocation2 + $0x27] sm:$0xff]  ;;  %v1512_v27 = vsel %vm4611_vm2, %v4617_v23, 0.0  ;;  %v396_v21 = vadd.s32 64, %v4583_v6  ;;  %vm4759_vm10 = vcmp.le.s32.totalorder %v501_v33, 14  ;;  %vm4807_vm13 = vcmp.le.s32.totalorder %v515_v15, 14 }
  0xa5   : > { %v4629_v29 = vpack.c.bf16 %v1512_v27, %v4623_v26  ;;  %v2477_v32 = vsel %vm4589_vm1, %v4620_v24, 0.0  ;;  %v398_v27 = vadd.s32 80, %v4583_v6 }
  0xa7   : > { %5964 = vst [vmem:[#allocation4_spill] sm:$0xff] %v4629_v29  ;;  %v273_v30 = vpop.trf.xlu0  ;;  %v4631_v31 = vld [vmem:[#allocation2 + $0x2f] sm:$0xff]  ;;  %v494_v47 = vand.u32 15, %v398_v27 }
  0xa8   : > { %360 = vst.msk [vmem:[#allocation2 + $0x40] sm:$0xff] %vm316_vm0, %v273_v30  ;;  %v4638_v34 = vpack.c.bf16 %v4631_v31, %v2477_v32  ;;  %v4659_v44 = vld [vmem:[#allocation2 + $0x29] sm:$0xff] }
  0xa9   : > { %vm4773_vm12 = vcmp.ge.s32.totalorder %v494_v47, 1  ;;  %v6008_v47 = vmov 0 }
  0xaa   : > { %5965 = vst [vmem:[#allocation5_spill] sm:$0xff] %v4638_v34  ;;  %v6009_v47 = vsel %vm4807_vm13, 4294967295, %v6008_v47  ;;  %v407_v34 = vadd.s32 152, %v4583_v6 }
  0xab   : > { %v274_v38 = vpop.trf.xlu0  ;;  %v4650_v41 = vld [vmem:[#allocation2 + $0x37] sm:$0xff]  ;;  %6010 = vst [vmem:[#allocation28_spill] sm:$0xff] %v6009_v47 }
  0xac   : > { %v4652_v42 = vld [vmem:[#allocation2 + $0x31] sm:$0xff]  ;;  %361 = vst.msk [vmem:[#allocation2 + $0x48] sm:$0xff] %vm316_vm0, %v274_v38  ;;  %v2479_v46 = vsel %vm4645_vm4, %v4650_v41, 0.0 }
  0xad   : > { %v1514_v45 = vsel %vm4640_vm3, %v4652_v42, 0.0  ;;  %v2946_v49 = vsel %vm4655_vm5, %v4652_v42, 0.0 }
  0xae   : > { %v4668_v48 = vpack.c.bf16 %v1514_v45, %v4659_v44  ;;  %v4674_v50 = vpack.c.bf16 %v2946_v49, %v4659_v44  ;;  %v480_v45 = vand.u32 15, %v396_v21 }
  0xaf   : > { %v275_v51 = vpop.trf.xlu0  ;;  %v4676_v53 = vld [vmem:[#allocation2 + $0x3f] sm:$0xff] }
  0xb0   : > { %5973 = vst [vmem:[#allocation7_spill] sm:$0xff] %v4668_v48  ;;  %5974 = vst [vmem:[#allocation8_spill] sm:$0xff] %v4674_v50  ;;  %v4680_v54 = vpack.c.bf16 %v4676_v53, %v2479_v46  ;;  %v4697_v62 = vld [vmem:[#allocation2 + $0x39] sm:$0xff]  ;;  %vm4764_vm11 = vcmp.ge.s32.totalorder %v480_v45, 1 }
  0xb1   : > { %362 = vst.msk [vmem:[#allocation2 + $0x50] sm:$0xff] %vm316_vm0, %v275_v51  ;;  %v5994_v51 = vmov 0 }
  0xb2   : > { %5975 = vst [vmem:[#allocation9_spill] sm:$0xff] %v4680_v54  ;;  %v5995_v51 = vsel %vm4759_vm10, 4294967295, %v5994_v51 }
  0xb3   : > { %v276_v57 = vpop.trf.xlu0  ;;  %v4692_v60 = vld [vmem:[#allocation2 + $0x47] sm:$0xff]  ;;  %5996 = vst [vmem:[#allocation20_spill] sm:$0xff] %v5995_v51 }
  0xb4   : > { %v4694_v61 = vld [vmem:[#allocation2 + $0x41] sm:$0xff]  ;;  %363 = vst.msk [vmem:[#allocation2 + $0x58] sm:$0xff] %vm316_vm0, %v276_v57  ;;  %v2481_v0 = vsel %vm4687_vm7, %v4692_v60, 0.0  ;;  %v5997_v57 = vmov 0 }
  0xb5   : > { %v1516_v63 = vsel %vm4682_vm6, %v4694_v61, 0.0  ;;  %v2948_v3 = vsel %vm4611_vm2, %v4694_v61, 0.0  ;;  %v5998_v57 = vsel %vm4764_vm11, 4294967295, %v5997_v57  ;;  %v1983_v14 = vld [vmem:[#allocation2 + $0x48] sm:$0xff]  ;;  %v2232_v19 = vsel %vm4640_vm3, %v4694_v61, 0.0 }
  0xb6   : > { %v4706_v2 = vpack.c.bf16 %v1516_v63, %v4697_v62  ;;  %v4712_v4 = vpack.c.bf16 %v2948_v3, %v4697_v62  ;;  %5999 = vst [vmem:[#allocation21_spill] sm:$0xff] %v5998_v57 }
  0xb7   : > { %v277_v7 = vpop.trf.xlu0 }
  0xb8   : > { %5981 = vst [vmem:[#allocation11_spill] sm:$0xff] %v4706_v2  ;;  %5982 = vst [vmem:[#allocation12_spill] sm:$0xff] %v4712_v4  ;;  %v4714_v9 = vld [vmem:[#allocation2 + $0x4f] sm:$0xff] }
  0xb9   : > { %364 = vst.msk [vmem:[#allocation2 + $0x60] sm:$0xff] %vm316_vm0, %v277_v7  ;;  %v4718_v10 = vpack.c.bf16 %v4714_v9, %v2481_v0  ;;  %v4736_v28 = vld [vmem:[#allocation2 + $0x49] sm:$0xff]  ;;  %v6083_v0 = vmov 0 }
  0xba   : > { %5990 = vst [vmem:[#allocation16_spill] sm:$0xff] %v4736_v28 }
  0xbb   : > { %5983 = vst [vmem:[#allocation13_spill] sm:$0xff] %v4718_v10  ;;  %v278_v17 = vpop.trf.xlu0  ;;  %v4730_v22 = vld [vmem:[#allocation2 + $0x57] sm:$0xff] }
  0xbc   : > { %v4732_v25 = vld [vmem:[#allocation2 + $0x51] sm:$0xff]  ;;  %365 = vst.msk [vmem:[#allocation2 + $0x68] sm:$0xff] %vm316_vm0, %v278_v17  ;;  %v2483_v32 = vsel %vm4725_vm9, %v4730_v22, 0.0 }
  0xbd   : > { %v1518_v30 = vsel %vm4720_vm8, %v4732_v25, 0.0  ;;  %v2950_v37 = vsel %vm4640_vm3, %v4732_v25, 0.0 }
  0xbe   : > { %v4745_v35 = vpack.c.bf16 %v1518_v30, %v4736_v28  ;;  %v4751_v38 = vpack.c.bf16 %v2950_v37, %v4736_v28  ;;  %v508_v37 = vand.u32 15, %v400_v1 }
  0xbf   : > { %v279_v40 = vpop.trf.xlu0 }
  0xc0   : > { %5991 = vst [vmem:[#allocation17_spill] sm:$0xff] %v4745_v35  ;;  %5992 = vst [vmem:[#allocation18_spill] sm:$0xff] %v4751_v38  ;;  %v4753_v46 = vld [vmem:[#allocation2 + $0x5f] sm:$0xff]  ;;  %vm4819_vm14 = vcmp.ge.s32.totalorder %v508_v37, 1  ;;  %v529_v38 = vand.u32 15, %v403_v52 }
  0xc1   : > { %366 = vst.msk [vmem:[#allocation2 + $0x70] sm:$0xff] %vm316_vm0, %v279_v40  ;;  %v4757_v49 = vpack.c.bf16 %v4753_v46, %v2483_v32  ;;  %v4778_v3 = vld [vmem:[#allocation2 + $0x59] sm:$0xff] }
  0xc2   : > { %6003 = vst [vmem:[#allocation23_spill] sm:$0xff] %v4778_v3  ;;  %vm4852_vm15 = vcmp.le.s32.totalorder %v529_v38, 14 }
  0xc3   : > { %5993 = vst [vmem:[#allocation19_spill] sm:$0xff] %v4757_v49  ;;  %v280_v56 = vpop.trf.xlu0  ;;  %v4768_v59 = vld [vmem:[#allocation2 + $0x67] sm:$0xff]  ;;  %v6020_v49 = vmov 0 }
  0xc4   : > { %v4770_v63 = vld [vmem:[#allocation2 + $0x61] sm:$0xff]  ;;  %367 = vst.msk [vmem:[#allocation2 + $0x78] sm:$0xff] %vm316_vm0, %v280_v56  ;;  %v2485_v8 = vsel %vm4764_vm11, %v4768_v59, 0.0  ;;  %v1769_v21 = vsel %vm4773_vm12, %v4768_v59, 0.0  ;;  %v6021_v49 = vsel %vm4852_vm15, 4294967295, %v6020_v49 }
  0xc5   : > { %6000 = vst [vmem:[#allocation22_spill] sm:$0xff] %v4770_v63  ;;  %v1520_v7 = vsel %vm4759_vm10, %v4770_v63, 0.0  ;;  %v2952_v27 = vsel %vm4682_vm6, %v4770_v63, 0.0  ;;  %6022 = vst [vmem:[#allocation36_spill] sm:$0xff] %v6021_v49  ;;  %v980_v49 = vsel %vm4645_vm4, %v4593_v12, 0.0 }
  0xc6   : > { %v4787_v17 = vpack.c.bf16 %v1520_v7, %v4778_v3  ;;  %v4796_v30 = vpack.c.bf16 %v2952_v27, %v4778_v3  ;;  %v404_v7 = vadd.s32 128, %v4583_v6  ;;  %v402_v27 = vadd.s32 112, %v4583_v6 }
  0xc7   : > { %v281_v32 = vpop.trf.xlu0 }
  0xc8   : > { %6004 = vst [vmem:[#allocation24_spill] sm:$0xff] %v4787_v17  ;;  %6005 = vst [vmem:[#allocation25_spill] sm:$0xff] %v4796_v30  ;;  %v4798_v33 = vld [vmem:[#allocation2 + $0x6f] sm:$0xff]  ;;  %v536_v18 = vand.u32 15, %v404_v7 }
  0xc9   : > { %368 = vst.msk [vmem:[#allocation2 + $0x80] sm:$0xff] %vm316_vm0, %v281_v32  ;;  %v4802_v40 = vpack.c.bf16 %v4798_v33, %v2485_v8  ;;  %v4805_v45 = vpack.c.bf16 %v4798_v33, %v1769_v21  ;;  %v6012_v8 = vmov 0  ;;  %v4823_v15 = vld [vmem:[#allocation2 + $0x69] sm:$0xff] }
  0xca   : > { %v6013_v8 = vsel %vm4819_vm14, 4294967295, %v6012_v8  ;;  %6015 = vst [vmem:[#allocation31_spill] sm:$0xff] %v4823_v15  ;;  %v883_v7 = vld [vmem:[#allocation2 + $0xf] sm:$0xff] }
  0xcb   : > { %6006 = vst [vmem:[#allocation26_spill] sm:$0xff] %v4802_v40  ;;  %6007 = vst [vmem:[#allocation27_spill] sm:$0xff] %v4805_v45  ;;  %v282_v56 = vpop.trf.xlu0  ;;  %v4814_v30 = vld [vmem:[#allocation2 + $0x77] sm:$0xff]  ;;  %v522_v40 = vand.u32 15, %v402_v27  ;;  %v6026_v27 = vmov 0 }
  0xcc   : > { %v4816_v1 = vld [vmem:[#allocation2 + $0x71] sm:$0xff]  ;;  %369 = vst.msk [vmem:[#allocation2 + $0x88] sm:$0xff] %vm316_vm0, %v282_v56  ;;  %6014 = vst [vmem:[#allocation30_spill] sm:$0xff] %v6013_v8  ;;  %v2487_v32 = vsel %vm4773_vm12, %v4814_v30, 0.0  ;;  %v1771_v37 = vsel %vm4819_vm14, %v4814_v30, 0.0 }
  0xcd   : > { %6011 = vst [vmem:[#allocation29_spill] sm:$0xff] %v4816_v1  ;;  %v1522_v21 = vsel %vm4807_vm13, %v4816_v1, 0.0  ;;  %v2954_v56 = vsel %vm4720_vm8, %v4816_v1, 0.0  ;;  %vm4856_vm8 = vcmp.ge.s32.totalorder %v536_v18, 1  ;;  %vm4860_vm6 = vcmp.ge.s32.totalorder %v522_v40, 1  ;;  %v1989_v8 = vld [vmem:[#allocation2 + $0x78] sm:$0xff] }
  0xce   : > { %v4832_v4 = vpack.c.bf16 %v1522_v21, %v4823_v15  ;;  %v4841_v50 = vpack.c.bf16 %v2954_v56, %v4823_v15  ;;  %v6027_v27 = vsel %vm4860_vm6, 4294967295, %v6026_v27 }
  0xcf   : > { %v283_v45 = vpop.trf.xlu0  ;;  %6028 = vst [vmem:[#allocation38_spill] sm:$0xff] %v6027_v27 }
  0xd0   : > { %6016 = vst [vmem:[#allocation32_spill] sm:$0xff] %v4832_v4  ;;  %6017 = vst [vmem:[#allocation33_spill] sm:$0xff] %v4841_v50  ;;  %v4843_v17 = vld [vmem:[#allocation2 + $0x7f] sm:$0xff]  ;;  %v882_v4 = vld [vmem:[#allocation2 + $0x7] sm:$0xff]  ;;  %v6023_v50 = vmov 0 }
  0xd1   : > { %370 = vst.msk [vmem:[#allocation2 + $0x90] sm:$0xff] %vm316_vm0, %v283_v45  ;;  %v4847_v52 = vpack.c.bf16 %v4843_v17, %v2487_v32  ;;  %v4850_v21 = vpack.c.bf16 %v4843_v17, %v1771_v37  ;;  %v6024_v50 = vsel %vm4856_vm8, 4294967295, %v6023_v50  ;;  %v978_v38 = vsel %vm4589_vm1, %v882_v4, 0.0  ;;  %vm4890_vm1 = vmpackc.low %vm316_vm0, %vm316_vm0 }
  0xd2   : > { %6025 = vst [vmem:[#allocation37_spill] sm:$0xff] %v6024_v50  ;;  %v406_v37 = vadd.s32 144, %v4583_v6 }
  0xd3   : > { %6018 = vst [vmem:[#allocation34_spill] sm:$0xff] %v4847_v52  ;;  %6019 = vst [vmem:[#allocation35_spill] sm:$0xff] %v4850_v21  ;;  %v300_v56 = vpop.trf.xlu0  ;;  %v4864_v45 = vld [vmem:[#allocation2 + $0x81] sm:$0xff]  ;;  %v4870_v21 = vld [vmem:[#allocation2 + $0x79] sm:$0xff] }
  0xd4   : > { %6029 = vst [vmem:[#allocation39_spill] sm:$0xff] %v4864_v45  ;;  %371 = vst.msk [vmem:[#allocation2 + $0x98] sm:$0xff] %vm316_vm0, %v300_v56  ;;  %v898_v32 = vld [vmem:[#allocation2 + $0x87] sm:$0xff]  ;;  %v1524_v18 = vsel %vm4852_vm15, %v4864_v45, 0.0  ;;  %v2956_v11 = vsel %vm4759_vm10, %v4864_v45, 0.0  ;;  %v550_v54 = vand.u32 15, %v406_v37 }
  0xd5   : > { %6030 = vst [vmem:[#allocation40_spill] sm:$0xff] %v4870_v21  ;;  %v4875_v40 = vld [vmem:[#allocation2 + $0x87] sm:$0xff]  ;;  %v4878_v52 = vpack.c.bf16 %v1524_v18, %v4870_v21  ;;  %v994_v10 = vsel %vm4856_vm8, %v898_v32, 0.0  ;;  %v3977_v18 = vpack.c.bf16 %v883_v7, %v978_v38  ;;  %v408_v37 = vadd.s32 160, %v4583_v6 }
  0xd6   : > { %6031 = vst [vmem:[#allocation41_spill] sm:$0xff] %v4875_v40  ;;  %v1773_v56 = vsel %vm4860_vm6, %v4875_v40, 0.0  ;;  %vm4916_vm15 = vcmp.ge.s32.totalorder %v550_v54, 1 }
  0xd7   : > { %6032 = vst [vmem:[#allocation42_spill] sm:$0xff] %v4878_v52  ;;  %v301_v4 = vpop.trf.xlu0  ;;  %v4895_v52 = vpack.c.bf16 %v2956_v11, %v4870_v21  ;;  %v1977_v21 = vld [vmem:[#allocation2 + $0x18] sm:$0xff] }
  0xd8   : > { %v899_v35 = vld [vmem:[#allocation2 + $0x8f] sm:$0xff]  ;;  %372 = vst.msk [vmem:[#allocation2 + $0xa0] sm:$0xff] %vm316_vm0, %v301_v4  ;;  %v1978_v4 = vld [vmem:[#allocation2 + $0x20] sm:$0xff] }
  0xd9   : > { %6035 = vst [vmem:[#allocation43_spill] sm:$0xff] %v4895_v52  ;;  %v3974_v40 = vpack.c.bf16 %v899_v35, %v994_v10  ;;  %v4898_v48 = vld [vmem:[#allocation2 + $0x8f] sm:$0xff]  ;;  %v6040_v35 = vmov 0 }
  0xda   : > { %6036 = vst [vmem:[#allocation44_spill] sm:$0xff] %v4898_v48  ;;  %v4902_v32 = vpack.c.bf16 %v4898_v48, %v1773_v56  ;;  %v6041_v35 = vsel %vm4916_vm15, 4294967295, %v6040_v35  ;;  %v4921_v56 = vld [vmem:[#allocation2 + $0x89] sm:$0xff] }
  0xdb   : > { %3976 = vmatprep.subr.msk.bf16.mxu1 %vm4890_vm1, %v3974_v40  ;;  %v4906_v29 = vld [vmem:[#allocation2 + $0x97] sm:$0xff]  ;;  %v302_v7 = vpop.trf.xlu0  ;;  %6042 = vst [vmem:[#allocation48_spill] sm:$0xff] %v6041_v35  ;;  %v557_v40 = vand.u32 15, %v407_v34  ;;  %6043 = vst [vmem:[#allocation49_spill] sm:$0xff] %v4921_v56 }
  0xdc   : > { %6037 = vst [vmem:[#allocation45_spill] sm:$0xff] %v4902_v32  ;;  %6038 = vst [vmem:[#allocation46_spill] sm:$0xff] %v4906_v29  ;;  %3979 = vmatpush3.bf16.xpose.msk.msra.mxu1 %vm4890_vm1, %v3977_v18  ;;  %v4910_v38 = vld [vmem:[#allocation2 + $0x91] sm:$0xff]  ;;  %v996_v54 = vsel %vm4916_vm15, %v4906_v29, 0.0  ;;  %v409_v29 = vadd.s32 168, %v4583_v6 }
  0xdd   : > { %6039 = vst [vmem:[#allocation47_spill] sm:$0xff] %v4910_v38  ;;  %373 = vst.msk [vmem:[#allocation2 + $0xa8] sm:$0xff] %vm316_vm0, %v302_v7  ;;  %v2958_v11 = vsel %vm4807_vm13, %v4910_v38, 0.0  ;;  %v1993_v7 = vld [vmem:[#allocation2 + $0x98] sm:$0xff]  ;;  %vm4941_vm13 = vcmp.le.s32.totalorder %v557_v40, 14 }
  0xde   : > { %v4927_v18 = vpack.c.bf16 %v2958_v11, %v4921_v56  ;;  %v564_v11 = vand.u32 15, %v408_v37  ;;  %v4939_v56 = vpack.c.bf16 %v1978_v4, %v1977_v21  ;;  %v571_v4 = vand.u32 15, %v409_v29 }
  0xdf   : > { %v303_v10 = vpop.trf.xlu0  ;;  %v901_v52 = vld [vmem:[#allocation2 + $0x9f] sm:$0xff]  ;;  %v982_v29 = vsel %vm4687_vm7, %v4620_v24, 0.0 }
  0xe0   : > { %6044 = vst [vmem:[#allocation50_spill] sm:$0xff] %v4927_v18  ;;  %v1994_v32 = vld [vmem:[#allocation2 + $0xa0] sm:$0xff]  ;;  %374 = vst.msk [vmem:[#allocation2 + $0xb0] sm:$0xff] %vm316_vm0, %v303_v10  ;;  %v3980_v34 = vpack.c.bf16 %v901_v52, %v996_v54  ;;  %v3983_v18 = vpack.c.bf16 %v4602_v16, %v980_v49  ;;  %v410_v49 = vadd.s32 176, %v4583_v6  ;;  %v405_v52 = vadd.s32 136, %v4583_v6  ;;  %v1980_v54 = vld [vmem:[#allocation2 + $0x30] sm:$0xff] }
  0xe1   : > { %v4933_v48 = vpack.c.bf16 %v1994_v32, %v1993_v7  ;;  %vm4961_vm4 = vcmp.ge.s32.totalorder %v564_v11, 1  ;;  %v6047_v32 = vmov 0  ;;  %v4965_v10 = vld [vmem:[#allocation2 + $0x99] sm:$0xff] }
  0xe2   : > { %3982 = vmatprep.subr.msk.bf16.mxu1 %vm4890_vm1, %v3980_v34  ;;  %v6048_v32 = vsel %vm4961_vm4, 4294967295, %v6047_v32  ;;  %v578_v47 = vand.u32 15, %v410_v49  ;;  %v543_v45 = vand.u32 15, %v405_v52  ;;  %v411_v49 = vadd.s32 184, %v4583_v6 }
  0xe3   : > { %4168 = vmatprep.subr.msk.bf16.mxu0 %vm4890_vm1, %v4933_v48  ;;  %v304_v12 = vpop.trf.xlu0  ;;  %6049 = vst [vmem:[#allocation51_spill] sm:$0xff] %v6048_v32 }
  0xe4   : > { %3985 = vmatpush3.bf16.xpose.msk.msra.mxu1 %vm4890_vm1, %v3983_v18  ;;  %4171 = vmatpush3.bf16.xpose.msk.msra.mxu0 %vm4890_vm1, %v4939_v56  ;;  %v902_v16 = vld [vmem:[#allocation2 + $0xa7] sm:$0xff]  ;;  %375 = vst.msk [vmem:[#allocation2 + $0xb8] sm:$0xff] %vm316_vm0, %v304_v12  ;;  %vm5007_vm7 = vcmp.ge.s32.totalorder %v578_v47, 1  ;;  %vm5011_vm10 = vcmp.le.s32.totalorder %v543_v45, 14 }
  0xe5   : > { %v4958_v21 = vld [vmem:[#allocation2 + $0xa1] sm:$0xff]  ;;  %v2493_v40 = vsel %vm4856_vm8, %v902_v16, 0.0  ;;  %v998_v11 = vsel %vm4961_vm4, %v902_v16, 0.0  ;;  %vm4988_vm8 = vcmp.le.s32.totalorder %v571_v4, 14  ;;  %v6102_v16 = vld [vmem:[#allocation16_spill] sm:$0xff] }
  0xe6   : > { %v1528_v37 = vsel %vm4941_vm13, %v4958_v21, 0.0  ;;  %v1995_v12 = vld [vmem:[#allocation2 + $0xa8] sm:$0xff]  ;;  %v1982_v45 = vld [vmem:[#allocation2 + $0x40] sm:$0xff] }
  0xe7   : > { %v4973_v18 = vpack.c.bf16 %v1528_v37, %v4965_v10  ;;  %v305_v7 = vpop.trf.xlu0  ;;  %v903_v34 = vld [vmem:[#allocation2 + $0xaf] sm:$0xff] }
  0xe8   : > { %v1996_v39 = vld [vmem:[#allocation2 + $0xb0] sm:$0xff]  ;;  %376 = vst.msk [vmem:[#allocation2 + $0xc0] sm:$0xff] %vm316_vm0, %v305_v7  ;;  %v3986_v15 = vpack.c.bf16 %v903_v34, %v998_v11  ;;  %v1979_v37 = vld [vmem:[#allocation2 + $0x28] sm:$0xff]  ;;  %v4983_v50 = vpack.c.bf16 %v903_v34, %v2493_v40  ;;  %v585_v7 = vand.u32 15, %v411_v49 }
  0xe9   : > { %6050 = vst [vmem:[#allocation52_spill] sm:$0xff] %v4973_v18  ;;  %v4978_v51 = vpack.c.bf16 %v1996_v39, %v1995_v12  ;;  %v3989_v18 = vpack.c.bf16 %v4631_v31, %v982_v29  ;;  %v4986_v1 = vpack.c.bf16 %v1980_v54, %v1979_v37  ;;  %v412_v39 = vadd.s32 192, %v4583_v6  ;;  %v5015_v4 = vld [vmem:[#allocation2 + $0xa9] sm:$0xff] }
  0xea   : > { %6051 = vst [vmem:[#allocation53_spill] sm:$0xff] %v4983_v50  ;;  %3988 = vmatprep.subr.msk.bf16.mxu1 %vm4890_vm1, %v3986_v15  ;;  %v6054_v15 = vmov 0  ;;  %v1981_v50 = vld [vmem:[#allocation2 + $0x38] sm:$0xff]  ;;  %v1413_v40 = vld [vmem:[#allocation2 + $0x9] sm:$0xff] }
  0xeb   : > { %4174 = vmatprep.subr.msk.bf16.mxu0 %vm4890_vm1, %v4978_v51  ;;  %v306_v24 = vpop.trf.xlu0  ;;  %v904_v31 = vld [vmem:[#allocation2 + $0xb7] sm:$0xff]  ;;  %v6055_v15 = vsel %vm5007_vm7, 4294967295, %v6054_v15  ;;  %v592_v35 = vand.u32 15, %v412_v39  ;;  %v5042_v3 = vpack.c.bf16 %v1982_v45, %v1981_v50  ;;  %v413_v39 = vadd.s32 200, %v4583_v6 }
  0xec   : > { %3991 = vmatpush3.bf16.xpose.msk.msra.mxu1 %vm4890_vm1, %v3989_v18  ;;  %4177 = vmatpush3.bf16.xpose.msk.msra.mxu0 %vm4890_vm1, %v4986_v1  ;;  %v5004_v52 = vld [vmem:[#allocation2 + $0xb1] sm:$0xff]  ;;  %377 = vst.msk [vmem:[#allocation2 + $0xc8] sm:$0xff] %vm316_vm0, %v306_v24  ;;  %6056 = vst [vmem:[#allocation54_spill] sm:$0xff] %v6055_v15  ;;  %v2495_v54 = vsel %vm4916_vm15, %v904_v31, 0.0  ;;  %v1000_v37 = vsel %vm5007_vm7, %v904_v31, 0.0  ;;  %vm5044_vm15 = vcmp.le.s32.totalorder %v585_v7, 14 }
  0xed   : > { %v1530_v18 = vsel %vm4988_vm8, %v5004_v52, 0.0  ;;  %v2962_v47 = vsel %vm5011_vm10, %v5004_v52, 0.0  ;;  %v1997_v24 = vld [vmem:[#allocation2 + $0xb8] sm:$0xff] }
  0xee   : > { %v5023_v34 = vpack.c.bf16 %v1530_v18, %v5015_v4  ;;  %v5029_v11 = vpack.c.bf16 %v2962_v47, %v5015_v4 }
  0xef   : > { %v307_v12 = vpop.trf.xlu0  ;;  %v905_v29 = vld [vmem:[#allocation2 + $0xbf] sm:$0xff] }
  0xf0   : > { %6059 = vst [vmem:[#allocation55_spill] sm:$0xff] %v5023_v34  ;;  %6060 = vst [vmem:[#allocation56_spill] sm:$0xff] %v5029_v11  ;;  %v1998_v58 = vld [vmem:[#allocation2 + $0xc0] sm:$0xff]  ;;  %v3992_v49 = vpack.c.bf16 %v905_v29, %v1000_v37  ;;  %v984_v34 = vsel %vm4725_vm9, %v4650_v41, 0.0  ;;  %v5039_v47 = vpack.c.bf16 %v905_v29, %v2495_v54  ;;  %vm5063_vm9 = vcmp.ge.s32.totalorder %v592_v35, 1  ;;  %v1984_v29 = vld [vmem:[#allocation2 + $0x50] sm:$0xff] }
  0xf1   : > { %378 = vst.msk [vmem:[#allocation2 + $0xd0] sm:$0xff] %vm316_vm0, %v307_v12  ;;  %v5034_v18 = vpack.c.bf16 %v1998_v58, %v1997_v24  ;;  %v3995_v11 = vpack.c.bf16 %v4676_v53, %v984_v34  ;;  %v414_v53 = vadd.s32 208, %v4583_v6  ;;  %v6064_v54 = vmov 0  ;;  %v5067_v7 = vld [vmem:[#allocation2 + $0xb9] sm:$0xff] }
  0xf2   : > { %6061 = vst [vmem:[#allocation57_spill] sm:$0xff] %v5039_v47  ;;  %3994 = vmatprep.subr.msk.bf16.mxu1 %vm4890_vm1, %v3992_v49  ;;  %v6065_v54 = vsel %vm5063_vm9, 4294967295, %v6064_v54  ;;  %v5094_v63 = vpack.c.bf16 %v1984_v29, %v1983_v14  ;;  %v416_v14 = vadd.s32 224, %v4583_v6  ;;  %v6123_v43 = vld [vmem:[#allocation52_spill] sm:$0xff] }
  0xf3   : > { %4180 = vmatprep.subr.msk.bf16.mxu0 %vm4890_vm1, %v5034_v18  ;;  %v308_v41 = vpop.trf.xlu0  ;;  %v906_v50 = vld [vmem:[#allocation2 + $0xc7] sm:$0xff]  ;;  %6066 = vst [vmem:[#allocation58_spill] sm:$0xff] %v6065_v54  ;;  %v606_v47 = vand.u32 15, %v414_v53  ;;  %v415_v53 = vadd.s32 216, %v4583_v6 }
  0xf4   : > { %3997 = vmatpush3.bf16.xpose.msk.msra.mxu1 %vm4890_vm1, %v3995_v11  ;;  %4183 = vmatpush3.bf16.xpose.msk.msra.mxu0 %vm4890_vm1, %v5042_v3  ;;  %v5060_v58 = vld [vmem:[#allocation2 + $0xc1] sm:$0xff]  ;;  %379 = vst.msk [vmem:[#allocation2 + $0xd8] sm:$0xff] %vm316_vm0, %v308_v41  ;;  %v2497_v45 = vsel %vm4961_vm4, %v906_v50, 0.0  ;;  %v599_v11 = vand.u32 15, %v413_v39  ;;  %v1002_v41 = vsel %vm5063_vm9, %v906_v50, 0.0  ;;  %6070 = vst [vmem:[#allocation62_spill] sm:$0xff] %v5094_v63 }
  0xf5   : > { %v1532_v34 = vsel %vm5044_vm15, %v5060_v58, 0.0  ;;  %v2964_v35 = vsel %vm4941_vm13, %v5060_v58, 0.0  ;;  %v1999_v20 = vld [vmem:[#allocation2 + $0xc8] sm:$0xff]  ;;  %v613_v29 = vand.u32 15, %v415_v53 }
  0xf6   : > { %v5075_v12 = vpack.c.bf16 %v1532_v34, %v5067_v7  ;;  %v5081_v37 = vpack.c.bf16 %v2964_v35, %v5067_v7  ;;  %vm5096_vm4 = vcmp.le.s32.totalorder %v599_v11, 14 }
  0xf7   : > { %v309_v24 = vpop.trf.xlu0 }
  0xf8   : > { %6067 = vst [vmem:[#allocation59_spill] sm:$0xff] %v5075_v12  ;;  %6068 = vst [vmem:[#allocation60_spill] sm:$0xff] %v5081_v37  ;;  %v907_v49 = vld [vmem:[#allocation2 + $0xcf] sm:$0xff]  ;;  %v986_v12 = vsel %vm4764_vm11, %v4692_v60, 0.0  ;;  %vm5115_vm11 = vcmp.ge.s32.totalorder %v606_v47, 1 }
  0xf9   : > { %v2000_v32 = vld [vmem:[#allocation2 + $0xd0] sm:$0xff]  ;;  %380 = vst.msk [vmem:[#allocation2 + $0xe0] sm:$0xff] %vm316_vm0, %v309_v24  ;;  %v3998_v39 = vpack.c.bf16 %v907_v49, %v1002_v41  ;;  %v5091_v35 = vpack.c.bf16 %v907_v49, %v2497_v45  ;;  %v4001_v37 = vpack.c.bf16 %v4714_v9, %v986_v12  ;;  %v1986_v24 = vld [vmem:[#allocation2 + $0x60] sm:$0xff] }
  0xfa   : > { %v5086_v34 = vpack.c.bf16 %v2000_v32, %v1999_v20  ;;  %v5119_v45 = vld [vmem:[#allocation2 + $0xc9] sm:$0xff] }
  0xfb   : > { %6069 = vst [vmem:[#allocation61_spill] sm:$0xff] %v5091_v35  ;;  %4000 = vmatprep.subr.msk.bf16.mxu1 %vm4890_vm1, %v3998_v39  ;;  %v310_v60 = vpop.trf.xlu0  ;;  %v908_v9 = vld [vmem:[#allocation2 + $0xd7] sm:$0xff]  ;;  %v620_v35 = vand.u32 15, %v416_v14  ;;  %v417_v14 = vadd.s32 232, %v4583_v6 }
  0xfc   : > { %4186 = vmatprep.subr.msk.bf16.mxu0 %vm4890_vm1, %v5086_v34  ;;  %4003 = vmatpush3.bf16.xpose.msk.msra.mxu1 %vm4890_vm1, %v4001_v37  ;;  %v5112_v20 = vld [vmem:[#allocation2 + $0xd1] sm:$0xff]  ;;  %381 = vst.msk [vmem:[#allocation2 + $0xe8] sm:$0xff] %vm316_vm0, %v310_v60  ;;  %v2499_v12 = vsel %vm5007_vm7, %v908_v9, 0.0  ;;  %v1004_v60 = vsel %vm5115_vm11, %v908_v9, 0.0  ;;  %vm5148_vm7 = vcmp.le.s32.totalorder %v613_v29, 14  ;;  %v6111_v9 = vld [vmem:[#allocation29_spill] sm:$0xff] }
  0xfd   : > { %4189 = vmatpush3.bf16.xpose.msk.msra.mxu0 %vm4890_vm1, %v5094_v63  ;;  %v1534_v11 = vsel %vm5096_vm4, %v5112_v20, 0.0  ;;  %v2966_v47 = vsel %vm4988_vm8, %v5112_v20, 0.0  ;;  %v2001_v57 = vld [vmem:[#allocation2 + $0xd8] sm:$0xff] }
  0xfe   : > { %v5127_v37 = vpack.c.bf16 %v1534_v11, %v5119_v45  ;;  %v5133_v49 = vpack.c.bf16 %v2966_v47, %v5119_v45  ;;  %v1985_v63 = vld [vmem:[#allocation2 + $0x58] sm:$0xff] }
  0xff   : > { %v311_v41 = vpop.trf.xlu0  ;;  %v5146_v28 = vpack.c.bf16 %v1986_v24, %v1985_v63 }
 0x100   : > { %6075 = vst [vmem:[#allocation63_spill] sm:$0xff] %v5127_v37  ;;  %6076 = vst [vmem:[#allocation64_spill] sm:$0xff] %v5133_v49  ;;  %v909_v39 = vld [vmem:[#allocation2 + $0xdf] sm:$0xff]  ;;  %v988_v37 = vsel %vm4773_vm12, %v4730_v22, 0.0  ;;  %vm5167_vm12 = vcmp.ge.s32.totalorder %v620_v35, 1 }
 0x101   : > { %v2002_v15 = vld [vmem:[#allocation2 + $0xe0] sm:$0xff]  ;;  %382 = vst.msk [vmem:[#allocation2 + $0xf0] sm:$0xff] %vm316_vm0, %v311_v41  ;;  %v4004_v53 = vpack.c.bf16 %v909_v39, %v1004_v60  ;;  %v5143_v47 = vpack.c.bf16 %v909_v39, %v2499_v12  ;;  %v4007_v49 = vpack.c.bf16 %v4753_v46, %v988_v37  ;;  %6079 = vst [vmem:[#allocation67_spill] sm:$0xff] %v5146_v28  ;;  %v6084_v0 = vsel %vm5167_vm12, 4294967295, %v6083_v0  ;;  %v1988_v41 = vld [vmem:[#allocation2 + $0x70] sm:$0xff] }
 0x102   : > { %v5138_v11 = vpack.c.bf16 %v2002_v15, %v2001_v57  ;;  %v418_v57 = vadd.s32 240, %v4583_v6  ;;  %6085 = vst [vmem:[#allocation69_spill] sm:$0xff] %v6084_v0  ;;  %v5171_v15 = vld [vmem:[#allocation2 + $0xd9] sm:$0xff]  ;;  %v627_v37 = vand.u32 15, %v417_v14 }
 0x103   : > { %6078 = vst [vmem:[#allocation66_spill] sm:$0xff] %v5143_v47  ;;  %4006 = vmatprep.subr.msk.bf16.mxu1 %vm4890_vm1, %v4004_v53  ;;  %v312_v22 = vpop.trf.xlu0  ;;  %v910_v46 = vld [vmem:[#allocation2 + $0xe7] sm:$0xff]  ;;  %6086 = vst [vmem:[#allocation70_spill] sm:$0xff] %v5171_v15 }
 0x104   : > { %6077 = vst [vmem:[#allocation65_spill] sm:$0xff] %v5138_v11  ;;  %4192 = vmatprep.subr.msk.bf16.mxu0 %vm4890_vm1, %v5138_v11  ;;  %4009 = vmatpush3.bf16.xpose.msk.msra.mxu1 %vm4890_vm1, %v4007_v49  ;;  %v5164_v63 = vld [vmem:[#allocation2 + $0xe1] sm:$0xff]  ;;  %383 = vst.msk [vmem:[#allocation2 + $0xf8] sm:$0xff] %vm316_vm0, %v312_v22  ;;  %v2501_v29 = vsel %vm5063_vm9, %v910_v46, 0.0  ;;  %v1785_v49 = vsel %vm5115_vm11, %v910_v46, 0.0  ;;  %v1006_v22 = vsel %vm5167_vm12, %v910_v46, 0.0 }
 0x105   : > { %4195 = vmatpush3.bf16.xpose.msk.msra.mxu0 %vm4890_vm1, %v5146_v28  ;;  %6082 = vst [vmem:[#allocation68_spill] sm:$0xff] %v5164_v63  ;;  %v1536_v12 = vsel %vm5148_vm7, %v5164_v63, 0.0  ;;  %v2968_v35 = vsel %vm5044_vm15, %v5164_v63, 0.0  ;;  %v2003_v14 = vld [vmem:[#allocation2 + $0xe8] sm:$0xff]  ;;  %vm5204_vm9 = vcmp.le.s32.totalorder %v627_v37, 14  ;;  %v6115_v63 = vld [vmem:[#allocation39_spill] sm:$0xff] }
 0x106   : > { %v5179_v24 = vpack.c.bf16 %v1536_v12, %v5171_v15  ;;  %v5187_v39 = vpack.c.bf16 %v2968_v35, %v5171_v15  ;;  %v990_v12 = vsel %vm4819_vm14, %v4768_v59, 0.0  ;;  %v1987_v11 = vld [vmem:[#allocation2 + $0x68] sm:$0xff]  ;;  %v419_v59 = vadd.s32 248, %v4583_v6  ;;  %v2459_v6 = vld [vmem:[#allocation2 + $0x97] sm:$0xff] }
 0x107   : > { %v313_v60 = vpop.trf.xlu0  ;;  %v4013_v15 = vpack.c.bf16 %v4798_v33, %v990_v12  ;;  %v5202_v46 = vpack.c.bf16 %v1988_v41, %v1987_v11  ;;  %v1990_v41 = vld [vmem:[#allocation2 + $0x80] sm:$0xff] }
 0x108   : > { %6087 = vst [vmem:[#allocation71_spill] sm:$0xff] %v5179_v24  ;;  %6088 = vst [vmem:[#allocation72_spill] sm:$0xff] %v5187_v39  ;;  %v911_v53 = vld [vmem:[#allocation2 + $0xef] sm:$0xff]  ;;  %v634_v24 = vand.u32 15, %v418_v57 }
 0x109   : > { %v2004_v54 = vld [vmem:[#allocation2 + $0xf0] sm:$0xff]  ;;  %384 = vst.msk [vmem:[#allocation2 + $0x100] sm:$0xff] %vm316_vm0, %v313_v60  ;;  %v4010_v47 = vpack.c.bf16 %v911_v53, %v1006_v22  ;;  %v5197_v35 = vpack.c.bf16 %v911_v53, %v2501_v29  ;;  %v5199_v39 = vpack.c.bf16 %v911_v53, %v1785_v49  ;;  %v641_v29 = vand.u32 15, %v419_v59 }
 0x10a   : > { %v5195_v28 = vpack.c.bf16 %v2004_v54, %v2003_v14  ;;  %vm5222_vm14 = vcmp.ge.s32.totalorder %v634_v24, 1  ;;  %v1212_v60 = vld [vmem:[#allocation2 + $0x90] sm:$0xff] }
 0x10b   : > { %6089 = vst [vmem:[#allocation73_spill] sm:$0xff] %v5197_v35  ;;  %6090 = vst [vmem:[#allocation74_spill] sm:$0xff] %v5199_v39  ;;  %4012 = vmatprep.subr.msk.bf16.mxu1 %vm4890_vm1, %v4010_v47  ;;  %v314_v33 = vpop.trf.xlu0  ;;  %v912_v54 = vld [vmem:[#allocation2 + $0xf7] sm:$0xff]  ;;  %v5226_v47 = vld [vmem:[#allocation2 + $0xe9] sm:$0xff] }
 0x10c   : > { %4198 = vmatprep.subr.msk.bf16.mxu0 %vm4890_vm1, %v5195_v28  ;;  %4015 = vmatpush3.bf16.xpose.msk.msra.mxu1 %vm4890_vm1, %v4013_v15  ;;  %v5219_v11 = vld [vmem:[#allocation2 + $0xf1] sm:$0xff]  ;;  %385 = vst.msk [vmem:[#allocation2 + $0x108] sm:$0xff] %vm316_vm0, %v314_v33  ;;  %v2503_v15 = vsel %vm5115_vm11, %v912_v54, 0.0  ;;  %v1787_v49 = vsel %vm5167_vm12, %v912_v54, 0.0  ;;  %v1008_v32 = vsel %vm5222_vm14, %v912_v54, 0.0  ;;  %v992_v33 = vsel %vm4860_vm6, %v4814_v30, 0.0 }
 0x10d   : > { %4201 = vmatpush3.bf16.xpose.msk.msra.mxu0 %vm4890_vm1, %v5202_v46  ;;  %v1538_v57 = vsel %vm5204_vm9, %v5219_v11, 0.0  ;;  %v2970_v24 = vsel %vm5096_vm4, %v5219_v11, 0.0  ;;  %v2005_v12 = vld [vmem:[#allocation2 + $0xf8] sm:$0xff]  ;;  %v1211_v54 = vld [vmem:[#allocation2 + $0x88] sm:$0xff]  ;;  %vm5259_vm11 = vcmp.le.s32.totalorder %v641_v29, 14  ;;  %v1196_v29 = vld [vmem:[#allocation2 + $0x10] sm:$0xff] }
 0x10e   : > { %v5234_v37 = vpack.c.bf16 %v1538_v57, %v5226_v47  ;;  %v5242_v53 = vpack.c.bf16 %v2970_v24, %v5226_v47  ;;  %v5268_v30 = vpack.c.bf16 %v1212_v60, %v1211_v54  ;;  %v6101_v61 = vld [vmem:[#allocation68_spill] sm:$0xff]  ;;  %v6105_v31 = vld [vmem:[#allocation65_spill] sm:$0xff] }
 0x10f   : > { %v315_v22 = vpop.trf.xlu0 }
 0x110   : > { %6095 = vst [vmem:[#allocation75_spill] sm:$0xff] %v5234_v37  ;;  %6096 = vst [vmem:[#allocation76_spill] sm:$0xff] %v5242_v53  ;;  %v913_v14 = vld [vmem:[#allocation2 + $0xff] sm:$0xff]  ;;  %v4019_v53 = vpack.c.bf16 %v4843_v17, %v992_v33  ;;  %v5257_v37 = vpack.c.bf16 %v1990_v41, %v1989_v8  ;;  %v2244_v33 = vsel %vm5011_vm10, %v4958_v21, 0.0 }
 0x111   : > { %v2006_v59 = vld [vmem:[#allocation2 + $0x100] sm:$0xff]  ;;  %386 = vst.msk [vmem:[#allocation2 + $0x110] sm:$0xff] %vm316_vm0, %v315_v22  ;;  %v4016_v57 = vpack.c.bf16 %v913_v14, %v1008_v32  ;;  %v5252_v0 = vpack.c.bf16 %v913_v14, %v2503_v15  ;;  %v5254_v24 = vpack.c.bf16 %v913_v14, %v1787_v49  ;;  %v1195_v15 = vld [vmem:[#allocation2 + $0x8] sm:$0xff]  ;;  %v4214_v21 = vpack.c.bf16 %v2244_v33, %v4965_v10 }
 0x112   : > { %v5250_v39 = vpack.c.bf16 %v2006_v59, %v2005_v12  ;;  %v5282_v49 = vld [vmem:[#allocation2 + $0xf9] sm:$0xff]  ;;  %v4025_v59 = vpack.c.bf16 %v1196_v29, %v1195_v15  ;;  %v1011_v15 = vld [vmem:[%s5889_s1 + $0x8] sm:$0xff] }
 0x113   : > { %6097 = vst [vmem:[#allocation77_spill] sm:$0xff] %v5254_v24  ;;  %4018 = vmatprep.subr.msk.bf16.mxu1 %vm4890_vm1, %v4016_v57  ;;  %v5275_v17 = vld [vmem:[#allocation2 + $0x101] sm:$0xff] }
 0x114   : > { %4204 = vmatprep.subr.msk.bf16.mxu0 %vm4890_vm1, %v5250_v39  ;;  %4021 = vmatpush3.bf16.xpose.msk.msra.mxu1 %vm4890_vm1, %v4019_v53  ;;  %v5277_v8 = vld [vmem:[#allocation2 + $0x107] sm:$0xff]  ;;  %v1540_v41 = vsel %vm5259_vm11, %v5275_v17, 0.0  ;;  %v2972_v22 = vsel %vm5148_vm7, %v5275_v17, 0.0 }
 0x115   : > { %4207 = vmatpush3.bf16.xpose.msk.msra.mxu0 %vm4890_vm1, %v5257_v37  ;;  %4024 = vmatprep.subr.msk.bf16.mxu1 %vm4890_vm1, %v5268_v30  ;;  %v1789_v60 = vsel %vm5222_vm14, %v5277_v8, 0.0  ;;  %v5291_v53 = vpack.c.bf16 %v1540_v41, %v5282_v49  ;;  %v2007_v14 = vld [vmem:[#allocation2 + $0x108] sm:$0xff]  ;;  %v5297_v32 = vpack.c.bf16 %v2972_v22, %v5282_v49 }
 0x118   : > { %v2008_v12 = vld [vmem:[#allocation2 + $0x110] sm:$0xff] }
 0x119   : > { %v5302_v57 = vld [vmem:[#allocation2 + $0x109] sm:$0xff]  ;;  %v5304_v54 = vld [vmem:[#allocation2 + $0x111] sm:$0xff]  ;;  %v5306_v41 = vpack.c.bf16 %v2008_v12, %v2007_v14 }
 0x11a   : > { %v5308_v24 = vld [vmem:[#allocation2 + $0x10f] sm:$0xff]  ;;  %v2974_v27 = vsel %vm5204_vm9, %v5304_v54, 0.0 }
 0x11b   : > { %v5314_v22 = vpack.c.bf16 %v5308_v24, %v1789_v60  ;;  %4210 = vmatprep.subr.msk.bf16.mxu0 %vm4890_vm1, %v5306_v41  ;;  %3683 = vmatmul.mubr.msk.f32.vlgmr.msra.gmra.mrb[0].mxu1 %vm316_vm0, %v4579_v5  ;;  %v5326_v29 = vpack.c.bf16 %v2974_v27, %v5302_v57  ;;  %v5341_v5 = vld [vmem:[%s5889_s1 + $0x10] sm:$0xff]  ;;  %v2228_v27 = vsel %vm4655_vm5, %v4617_v23, 0.0  ;;  %v3465_v23 = vld [vmem:[%s5889_s1 + $0x48] sm:$0xff] }
 0x11c   : > { %4027 = vmatpush3.bf16.xpose.msk.msra.mxu1 %vm4890_vm1, %v4025_v59  ;;  %3684 = vmatprep.mubr.msk.f32.mxu1 %vm316_vm0, %v1011_v15  ;;  %v4217_v10 = vpack.c.bf16 %v2228_v27, %v4623_v26  ;;  %v2230_v26 = vsel %vm4611_vm2, %v4652_v42, 0.0  ;;  %v2250_v42 = vsel %vm5044_vm15, %v5112_v20, 0.0  ;;  %vm6100_vm2 = vnez %v5977_v55  ;;  %v6106_v55 = vld [vmem:[#allocation22_spill] sm:$0xff]  ;;  %v6114_v12 = vld [vmem:[#allocation31_spill] sm:$0xff] }
 0x11d   : > { %4213 = vmatpush3.bf16.xpose.msk.msra.mxu0 %vm4890_vm1, %v5268_v30  ;;  %4030 = vmatprep.subr.msk.bf16.mxu1 %vm4890_vm1, %v4933_v48  ;;  %v2246_v48 = vsel %vm4941_vm13, %v5004_v52, 0.0  ;;  %v4223_v38 = vpack.c.bf16 %v2230_v26, %v4659_v44  ;;  %v4229_v44 = vpack.c.bf16 %v2232_v19, %v4697_v62  ;;  %v2234_v36 = vsel %vm6100_vm2, %v4732_v25, 0.0  ;;  %v6103_v52 = vld [vmem:[#allocation70_spill] sm:$0xff] }
 0x11e   : > { %4216 = vmatprep.subr.msk.bf16.mxu0 %vm4890_vm1, %v4214_v21  ;;  %v4220_v60 = vpack.c.bf16 %v2246_v48, %v5015_v4  ;;  %v2252_v62 = vsel %vm5096_vm4, %v6101_v61, 0.0  ;;  %v6107_v25 = vld [vmem:[#allocation14_spill] sm:$0xff]  ;;  %v2258_v27 = vsel %vm5259_vm11, %v5304_v54, 0.0  ;;  %v6119_v48 = vld [vmem:[#allocation40_spill] sm:$0xff]  ;;  %v6126_v61 = vld [vmem:[#allocation5_spill] sm:$0xff] }
 0x11f   : > { %3685 = vmatmul.mubr.msk.f32.gmra.mrb[2].mxu1 %vm316_vm0, %v1011_v15  ;;  %v4238_v4 = vpack.c.bf16 %v2252_v62, %v6103_v52  ;;  %vm6108_vm3 = vnez %v6107_v25  ;;  %v6118_v15 = vld [vmem:[#allocation47_spill] sm:$0xff]  ;;  %v4256_v26 = vpack.c.bf16 %v2258_v27, %v5302_v57  ;;  %v6121_v57 = vld [vmem:[#allocation36_spill] sm:$0xff]  ;;  %v6130_v52 = vld [vmem:[#allocation9_spill] sm:$0xff] }
 0x120   : > { %3718 = vmatprep.mubr.msk.f32.mxu1 %vm316_vm0, %v5341_v5  ;;  %v6127_v62 = vld [vmem:[#allocation55_spill] sm:$0xff] }
 0x121   : > { %v6135_v25 = vld [vmem:[#allocation63_spill] sm:$0xff] }
 0x124   : > { %3827 = vmatmul.mubr.msk.f32.vlgmr.msra.gmra.mrb[0].mxu0 %vm316_vm0, %v4598_v13  ;;  %4033 = vmatpush3.bf16.xpose.msk.msra.mxu1 %vm4890_vm1, %v4939_v56  ;;  %v5373_v13 = vld [vmem:[%s5889_s1 + $0x50] sm:$0xff] }
 0x125   : > { %4219 = vmatpush3.bf16.xpose.msk.msra.mxu0 %vm4890_vm1, %v4217_v10  ;;  %4036 = vmatprep.subr.msk.bf16.mxu1 %vm4890_vm1, %v4978_v51  ;;  %v2248_v51 = vsel %vm4988_vm8, %v5060_v58, 0.0  ;;  %v2236_v58 = vsel %vm6108_vm3, %v6106_v55, 0.0  ;;  %vm6122_vm8 = vnez %v6121_v57  ;;  %v6134_v55 = vld [vmem:[#allocation13_spill] sm:$0xff] }
 0x126   : > { %4222 = vmatprep.subr.msk.bf16.mxu0 %vm4890_vm1, %v4220_v60  ;;  %3828 = vmatprep.mubr.msk.f32.mxu0 %vm316_vm0, %v3465_v23  ;;  %v4226_v56 = vpack.c.bf16 %v2248_v51, %v5067_v7  ;;  %v2254_v7 = vsel %vm5148_vm7, %v5219_v11, 0.0  ;;  %v6112_v11 = vld [vmem:[#allocation20_spill] sm:$0xff]  ;;  %v6120_v60 = vld [vmem:[#allocation49_spill] sm:$0xff] }
 0x127   : > { %v4244_v20 = vpack.c.bf16 %v2254_v7, %v5226_v47  ;;  %vm6113_vm4 = vnez %v6112_v11  ;;  %v2256_v47 = vsel %vm5204_vm9, %v5275_v17, 0.0  ;;  %v6116_v17 = vld [vmem:[#allocation28_spill] sm:$0xff]  ;;  %v6137_v7 = vld [vmem:[#allocation17_spill] sm:$0xff]  ;;  %v6143_v11 = vld [vmem:[#allocation75_spill] sm:$0xff] }
 0x128   : > { %3829 = vmatmul.mubr.msk.f32.gmra.mrb[2].mxu0 %vm316_vm0, %v3465_v23  ;;  %v2238_v14 = vsel %vm6113_vm4, %v6111_v9, 0.0  ;;  %v4250_v33 = vpack.c.bf16 %v2256_v47, %v5282_v49  ;;  %vm6117_vm7 = vnez %v6116_v17  ;;  %v1526_v49 = vsel %vm5011_vm10, %v6118_v15, 0.0  ;;  %v1414_v51 = vld [vmem:[#allocation2 + $0x11] sm:$0xff]  ;;  %v6142_v9 = vld [vmem:[#allocation26_spill] sm:$0xff]  ;;  %v6147_v17 = vld [vmem:[#allocation41_spill] sm:$0xff] }
 0x129   : > { %3862 = vmatprep.mubr.msk.f32.mxu0 %vm316_vm0, %v5373_v13  ;;  %v4247_v59 = vpack.c.bf16 %v2238_v14, %v6114_v12  ;;  %v2240_v21 = vsel %vm6117_vm7, %v6115_v63, 0.0  ;;  %v4070_v23 = vpack.c.bf16 %v1526_v49, %v6120_v60  ;;  %v1510_v54 = vsel %vm4655_vm5, %v1414_v51, 0.0  ;;  %v1744_v63 = vld [vmem:[#allocation2 + $0x9f] sm:$0xff]  ;;  %v1745_v51 = vld [vmem:[#allocation2 + $0xa7] sm:$0xff] }
 0x12a   : > { %v4253_v10 = vpack.c.bf16 %v2240_v21, %v6119_v48  ;;  %v2505_v47 = vsel %vm5167_vm12, %v5277_v8, 0.0  ;;  %v2476_v8 = vld [vmem:[#allocation2 + $0x11f] sm:$0xff]  ;;  %v6148_v21 = vld [vmem:[#allocation30_spill] sm:$0xff] }
 0x12b   : > { %v4298_v12 = vpack.c.bf16 %v5308_v24, %v2505_v47  ;;  %vm6149_vm5 = vnez %v6148_v21  ;;  %v6150_v49 = vld [vmem:[#allocation44_spill] sm:$0xff]  ;;  %v6151_v48 = vld [vmem:[#allocation37_spill] sm:$0xff]  ;;  %v3537_v14 = vld [vmem:[%s5889_s1 + $0x68] sm:$0xff] }
 0x12c   : > { %4039 = vmatpush3.bf16.xpose.msk.msra.mxu1 %vm4890_vm1, %v4986_v1  ;;  %v4232_v1 = vpack.c.bf16 %v2250_v42, %v5119_v45  ;;  %v6110_v45 = vld [vmem:[#allocation67_spill] sm:$0xff]  ;;  %v3357_v42 = vld [vmem:[%s5889_s1 + $0x18] sm:$0xff]  ;;  %vm6152_vm9 = vnez %v6151_v48  ;;  %v869_v47 = vld [vmem:[%s5890_s2 + $0x8] sm:$0xff] }
 0x12d   : > { %4225 = vmatpush3.bf16.xpose.msk.msra.mxu0 %vm4890_vm1, %v4223_v38  ;;  %4042 = vmatprep.subr.msk.bf16.mxu1 %vm4890_vm1, %v5034_v18  ;;  %v6104_v18 = vld [vmem:[#allocation62_spill] sm:$0xff]  ;;  %v2242_v38 = vsel %vm6122_vm8, %v6118_v15, 0.0  ;;  %v2489_v15 = vsel %vm6149_vm5, %v6147_v17, 0.0  ;;  %v868_v17 = vld [vmem:[%s5890_s2] sm:$0xff] }
 0x12e   : > { %4228 = vmatprep.subr.msk.bf16.mxu0 %vm4890_vm1, %v4226_v56  ;;  %v4073_v56 = vpack.c.bf16 %v1510_v54, %v1413_v40  ;;  %v4259_v19 = vpack.c.bf16 %v2242_v38, %v6120_v60  ;;  %v4301_v27 = vpack.c.bf16 %v6150_v49, %v2489_v15  ;;  %v1746_v40 = vld [vmem:[#allocation2 + $0xaf] sm:$0xff]  ;;  %v2697_v49 = vld [vmem:[#allocation2 + $0x38] sm:$0xff] }
 0x12f   : > { %v2712_v54 = vld [vmem:[#allocation2 + $0xb0] sm:$0xff]  ;;  %v6164_v21 = vld [vmem:[#allocation10_spill] sm:$0xff]  ;;  %v1752_v38 = vld [vmem:[#allocation2 + $0xdf] sm:$0xff] }
 0x134   : > { %4045 = vmatpush3.bf16.xpose.msk.msra.mxu1 %vm4890_vm1, %v5042_v3  ;;  %v4235_v3 = vpack.c.bf16 %v2234_v36, %v6102_v16  ;;  %v6125_v36 = vld [vmem:[#allocation4_spill] sm:$0xff]  ;;  %v6128_v16 = vld [vmem:[#allocation57_spill] sm:$0xff] }
 0x135   : > { %4231 = vmatpush3.bf16.xpose.msk.msra.mxu0 %vm4890_vm1, %v4229_v44  ;;  %4048 = vmatprep.subr.msk.bf16.mxu1 %vm4890_vm1, %v5086_v34  ;;  %v6109_v34 = vld [vmem:[#allocation23_spill] sm:$0xff]  ;;  %v6124_v44 = vld [vmem:[#allocation53_spill] sm:$0xff] }
 0x136   : > { %4234 = vmatprep.subr.msk.bf16.mxu0 %vm4890_vm1, %v4232_v1  ;;  %v4241_v50 = vpack.c.bf16 %v2236_v58, %v6109_v34  ;;  %v3501_v1 = vld [vmem:[%s5889_s1 + $0x58] sm:$0xff]  ;;  %v6136_v58 = vld [vmem:[#allocation66_spill] sm:$0xff]  ;;  %v6138_v34 = vld [vmem:[#allocation19_spill] sm:$0xff] }
 0x13c   : > { %4051 = vmatpush3.bf16.xpose.msk.msra.mxu1 %vm4890_vm1, %v6104_v18  ;;  %v6132_v18 = vld [vmem:[#allocation61_spill] sm:$0xff] }
 0x13d   : > { %4237 = vmatpush3.bf16.xpose.msk.msra.mxu0 %vm4890_vm1, %v4235_v3  ;;  %4054 = vmatprep.subr.msk.bf16.mxu1 %vm4890_vm1, %v6105_v31  ;;  %v6129_v3 = vld [vmem:[#allocation7_spill] sm:$0xff] }
 0x13e   : > { %4240 = vmatprep.subr.msk.bf16.mxu0 %vm4890_vm1, %v4238_v4  ;;  %v6131_v4 = vld [vmem:[#allocation59_spill] sm:$0xff] }
 0x13f   : > { %v6133_v31 = vld [vmem:[#allocation11_spill] sm:$0xff] }
 0x144   : > { %4057 = vmatpush3.bf16.xpose.msk.msra.mxu1 %vm4890_vm1, %v6110_v45  ;;  %v6141_v45 = vld [vmem:[#allocation24_spill] sm:$0xff] }
 0x145   : > { %4243 = vmatpush3.bf16.xpose.msk.msra.mxu0 %vm4890_vm1, %v4241_v50  ;;  %4060 = vmatprep.subr.msk.bf16.mxu1 %vm4890_vm1, %v5195_v28  ;;  %v6139_v50 = vld [vmem:[#allocation71_spill] sm:$0xff] }
 0x146   : > { %4246 = vmatprep.subr.msk.bf16.mxu0 %vm4890_vm1, %v4244_v20  ;;  %v6140_v20 = vld [vmem:[#allocation73_spill] sm:$0xff] }
 0x14c   : > { %4063 = vmatpush3.bf16.xpose.msk.msra.mxu1 %vm4890_vm1, %v5202_v46 }
 0x14d   : > { %4249 = vmatpush3.bf16.xpose.msk.msra.mxu0 %vm4890_vm1, %v4247_v59  ;;  %4066 = vmatprep.subr.msk.bf16.mxu1 %vm4890_vm1, %v5250_v39  ;;  %v6145_v59 = vld [vmem:[#allocation32_spill] sm:$0xff] }
 0x14e   : > { %4252 = vmatprep.subr.msk.bf16.mxu0 %vm4890_vm1, %v4250_v33  ;;  %v6146_v33 = vld [vmem:[#allocation34_spill] sm:$0xff] }
 0x154   : > { %4069 = vmatpush3.bf16.xpose.msk.msra.mxu1 %vm4890_vm1, %v5257_v37 }
 0x155   : > { %4255 = vmatpush3.bf16.xpose.msk.msra.mxu0 %vm4890_vm1, %v4253_v10  ;;  %4072 = vmatprep.subr.msk.bf16.mxu1 %vm4890_vm1, %v4070_v23  ;;  %v6153_v10 = vld [vmem:[#allocation46_spill] sm:$0xff] }
 0x156   : > { %4258 = vmatprep.subr.msk.bf16.mxu0 %vm4890_vm1, %v4256_v26  ;;  %v6154_v60 = vsel %vm6152_vm9, %v6153_v10, 0.0  ;;  %v6155_v26 = vld [vmem:[#allocation42_spill] sm:$0xff] }
 0x157   : > { %v6166_v10 = vld [vmem:[#allocation54_spill] sm:$0xff] }
 0x158   : > { %vm6167_vm15 = vnez %v6166_v10  ;;  %v6190_v10 = vld [vmem:[#allocation50_spill] sm:$0xff] }
 0x15b   : > { %3719 = vmatmul.mubr.msk.f32.vlgmr.msra.gmra.mrb[0].mxu1 %vm316_vm0, %v5341_v5  ;;  %v3392_v5 = vld [vmem:[%s5889_s1 + $0x20] sm:$0xff] }
 0x15c   : > { %4075 = vmatpush3.bf16.xpose.msk.msra.mxu1 %vm4890_vm1, %v4073_v56  ;;  %3720 = vmatprep.mubr.msk.f32.mxu1 %vm316_vm0, %v3357_v42  ;;  %v2491_v56 = vsel %vm4860_vm6, %v2459_v6, 0.0  ;;  %v1733_v6 = vld [vmem:[#allocation2 + $0x47] sm:$0xff] }
 0x15d   : > { %4261 = vmatpush3.bf16.xpose.msk.msra.mxu0 %vm4890_vm1, %v4259_v19  ;;  %4078 = vmatprep.subr.msk.bf16.mxu1 %vm4890_vm1, %v6123_v43  ;;  %v4307_v19 = vpack.c.bf16 %v1744_v63, %v2491_v56  ;;  %v2718_v56 = vld [vmem:[#allocation2 + $0xe0] sm:$0xff] }
 0x15e   : > { %4264 = vmatprep.subr.msk.bf16.mxu0 %vm4890_vm1, %v6124_v44  ;;  %v2711_v44 = vld [vmem:[#allocation2 + $0xa8] sm:$0xff] }
 0x15f   : > { %3721 = vmatmul.mubr.msk.f32.gmra.mrb[2].mxu1 %vm316_vm0, %v3357_v42  ;;  %v6157_v42 = vld [vmem:[#allocation48_spill] sm:$0xff] }
 0x160   : > { %3754 = vmatprep.mubr.msk.f32.mxu1 %vm316_vm0, %v3392_v5  ;;  %vm6158_vm10 = vnez %v6157_v42 }
 0x161   : > { %v1777_v43 = vsel %vm6158_vm10, %v1745_v51, 0.0  ;;  %v1734_v51 = vld [vmem:[#allocation2 + $0x4f] sm:$0xff] }
 0x164   : > { %3863 = vmatmul.mubr.msk.f32.vlgmr.msra.gmra.mrb[0].mxu0 %vm316_vm0, %v5373_v13  ;;  %4081 = vmatpush3.bf16.xpose.msk.msra.mxu1 %vm4890_vm1, %v6125_v36  ;;  %v5537_v13 = vld [vmem:[%s5889_s1 + $0x60] sm:$0xff]  ;;  %v4310_v36 = vpack.c.bf16 %v2712_v54, %v2711_v44  ;;  %v1751_v54 = vld [vmem:[#allocation2 + $0xd7] sm:$0xff] }
 0x165   : > { %4267 = vmatpush3.bf16.xpose.msk.msra.mxu0 %vm4890_vm1, %v6126_v61  ;;  %4084 = vmatprep.subr.msk.bf16.mxu1 %vm4890_vm1, %v6127_v62  ;;  %v3393_v61 = vld [vmem:[%s5889_s1 + $0x28] sm:$0xff]  ;;  %v6159_v62 = vld [vmem:[#allocation3_spill] sm:$0xff] }
 0x166   : > { %4270 = vmatprep.subr.msk.bf16.mxu0 %vm4890_vm1, %v6128_v16  ;;  %3864 = vmatprep.mubr.msk.f32.mxu0 %vm316_vm0, %v3501_v1  ;;  %v1729_v16 = vld [vmem:[#allocation2 + $0x27] sm:$0xff] }
 0x168   : > { %3865 = vmatmul.mubr.msk.f32.gmra.mrb[2].mxu0 %vm316_vm0, %v3501_v1  ;;  %v4124_v1 = vpack.c.bf16 %v1746_v40, %v1777_v43  ;;  %v2700_v40 = vld [vmem:[#allocation2 + $0x50] sm:$0xff]  ;;  %v2699_v43 = vld [vmem:[#allocation2 + $0x48] sm:$0xff] }
 0x169   : > { %3898 = vmatprep.mubr.msk.f32.mxu0 %vm316_vm0, %v5537_v13 }
 0x16c   : > { %4087 = vmatpush3.bf16.xpose.msk.msra.mxu1 %vm4890_vm1, %v6129_v3  ;;  %v1730_v3 = vld [vmem:[#allocation2 + $0x2f] sm:$0xff] }
 0x16d   : > { %4273 = vmatpush3.bf16.xpose.msk.msra.mxu0 %vm4890_vm1, %v6130_v52  ;;  %4090 = vmatprep.subr.msk.bf16.mxu1 %vm4890_vm1, %v6131_v4  ;;  %v2696_v52 = vld [vmem:[#allocation2 + $0x30] sm:$0xff] }
 0x16e   : > { %4276 = vmatprep.subr.msk.bf16.mxu0 %vm4890_vm1, %v6132_v18  ;;  %v1747_v4 = vld [vmem:[#allocation2 + $0xb7] sm:$0xff]  ;;  %v1748_v18 = vld [vmem:[#allocation2 + $0xbf] sm:$0xff] }
 0x174   : > { %4093 = vmatpush3.bf16.xpose.msk.msra.mxu1 %vm4890_vm1, %v6133_v31  ;;  %v2714_v31 = vld [vmem:[#allocation2 + $0xc0] sm:$0xff] }
 0x175   : > { %4279 = vmatpush3.bf16.xpose.msk.msra.mxu0 %vm4890_vm1, %v6134_v55  ;;  %4096 = vmatprep.subr.msk.bf16.mxu1 %vm4890_vm1, %v6135_v25  ;;  %v6160_v55 = vld [vmem:[#allocation6_spill] sm:$0xff] }
 0x176   : > { %4282 = vmatprep.subr.msk.bf16.mxu0 %vm4890_vm1, %v6136_v58  ;;  %vm6161_vm6 = vnez %v6160_v55  ;;  %v2695_v58 = vld [vmem:[#allocation2 + $0x28] sm:$0xff] }
 0x177   : > { %v1761_v25 = vsel %vm6161_vm6, %v1729_v16, 0.0 }
 0x17c   : > { %4099 = vmatpush3.bf16.xpose.msk.msra.mxu1 %vm4890_vm1, %v6137_v7  ;;  %v4127_v7 = vpack.c.bf16 %v1730_v3, %v1761_v25  ;;  %v2701_v25 = vld [vmem:[#allocation2 + $0x58] sm:$0xff] }
 0x17d   : > { %4285 = vmatpush3.bf16.xpose.msk.msra.mxu0 %vm4890_vm1, %v6138_v34  ;;  %4102 = vmatprep.subr.msk.bf16.mxu1 %vm4890_vm1, %v6139_v50  ;;  %v4313_v34 = vpack.c.bf16 %v2696_v52, %v2695_v58  ;;  %v6162_v50 = vld [vmem:[#allocation51_spill] sm:$0xff] }
 0x17e   : > { %4288 = vmatprep.subr.msk.bf16.mxu0 %vm4890_vm1, %v6140_v20  ;;  %vm6163_vm13 = vnez %v6162_v50  ;;  %v1735_v52 = vld [vmem:[#allocation2 + $0x57] sm:$0xff] }
 0x17f   : > { %v1779_v20 = vsel %vm6163_vm13, %v1747_v4, 0.0  ;;  %v1736_v4 = vld [vmem:[#allocation2 + $0x5f] sm:$0xff]  ;;  %v6175_v50 = vld [vmem:[#allocation27_spill] sm:$0xff] }
 0x184   : > { %4105 = vmatpush3.bf16.xpose.msk.msra.mxu1 %vm4890_vm1, %v6141_v45  ;;  %v2713_v45 = vld [vmem:[#allocation2 + $0xb8] sm:$0xff] }
 0x185   : > { %4291 = vmatpush3.bf16.xpose.msk.msra.mxu0 %vm4890_vm1, %v6142_v9  ;;  %4108 = vmatprep.subr.msk.bf16.mxu1 %vm4890_vm1, %v6143_v11  ;;  %v4130_v9 = vpack.c.bf16 %v1748_v18, %v1779_v20  ;;  %v4316_v11 = vpack.c.bf16 %v2714_v31, %v2713_v45  ;;  %v2702_v18 = vld [vmem:[#allocation2 + $0x60] sm:$0xff]  ;;  %v6177_v45 = vld [vmem:[#allocation35_spill] sm:$0xff] }
 0x186   : > { %4294 = vmatprep.subr.msk.bf16.mxu0 %vm4890_vm1, %v5252_v0  ;;  %v2475_v0 = vld [vmem:[#allocation2 + $0x117] sm:$0xff]  ;;  %v6172_v31 = vld [vmem:[#allocation21_spill] sm:$0xff] }
 0x187   : > { %v2507_v24 = vsel %vm5222_vm14, %v2475_v0, 0.0  ;;  %v2698_v0 = vld [vmem:[#allocation2 + $0x40] sm:$0xff]  ;;  %vm6165_vm14 = vnez %v6164_v21  ;;  %vm6173_vm3 = vnez %v6172_v31 }
 0x188   : > { %v4304_v23 = vpack.c.bf16 %v2476_v8, %v2507_v24  ;;  %v1750_v8 = vld [vmem:[#allocation2 + $0xcf] sm:$0xff]  ;;  %v4319_v48 = vpack.c.bf16 %v2698_v0, %v2697_v49  ;;  %v1767_v55 = vsel %vm6173_vm3, %v1735_v52, 0.0  ;;  %v6176_v20 = vld [vmem:[#allocation77_spill] sm:$0xff] }
 0x189   : > { %v2716_v24 = vld [vmem:[#allocation2 + $0xd0] sm:$0xff]  ;;  %v4145_v58 = vpack.c.bf16 %v1736_v4, %v1767_v55  ;;  %v6184_v0 = vld [vmem:[#allocation18_spill] sm:$0xff]  ;;  %v2943_v49 = vld [vmem:[#allocation2 + $0x119] sm:$0xff] }
 0x18a   : > { %v2944_v21 = vld [vmem:[#allocation2 + $0x121] sm:$0xff] }
 0x18c   : > { %4111 = vmatpush3.bf16.xpose.msk.msra.mxu1 %vm4890_vm1, %v6145_v59  ;;  %v4479_v59 = vmov 0  }
 0x18d   : > { %4297 = vmatpush3.bf16.xpose.msk.msra.mxu0 %vm4890_vm1, %v6146_v33  ;;  %4114 = vmatprep.subr.msk.bf16.mxu1 %vm4890_vm1, %v5291_v53  ;;  %v4118_v53 = vpack.c.bf16 %v1744_v63, %v6154_v60  ;;  %v1732_v33 = vld [vmem:[#allocation2 + $0x3f] sm:$0xff]  ;;  %v1749_v63 = vld [vmem:[#allocation2 + $0xc7] sm:$0xff] }
 0x18e   : > { %4300 = vmatprep.subr.msk.bf16.mxu0 %vm4890_vm1, %v4298_v12  ;;  %v1731_v12 = vld [vmem:[#allocation2 + $0x37] sm:$0xff]  ;;  %4468 = vset.pattern.permute.xlu1 %v4479_v59  ;;  %v1781_v60 = vsel %vm6167_vm15, %v1749_v63, 0.0 }
 0x18f   : > { %877 = vperm.xlu1 %4468, %v869_v47   ;;  %4469 = vset.pattern.permute.xlu0 %v4479_v59  ;;  %v1763_v15 = vsel %vm6165_vm14, %v1731_v12, 0.0  ;;  %v6181_v47 = vld [vmem:[#allocation60_spill] sm:$0xff] }
 0x190   : > { %v3573_v12 = vld [vmem:[%s5889_s1 + $0x78] sm:$0xff] }
 0x191   : > { %v6182_v59 = vld [vmem:[#allocation12_spill] sm:$0xff] }
 0x192   : > { %v6185_v63 = vld [vmem:[#allocation72_spill] sm:$0xff] }
 0x193   : > { %872 = vperm.xlu1 %4468, %v868_v17   ;;  %v6188_v17 = vld [vmem:[#allocation33_spill] sm:$0xff] }
 0x194   : > { %4117 = vmatpush3.bf16.xpose.msk.msra.mxu1 %vm4890_vm1, %v6155_v26 }
 0x195   : > { %4303 = vmatpush3.bf16.xpose.msk.msra.mxu0 %vm4890_vm1, %v4301_v27  ;;  %4120 = vmatprep.subr.msk.bf16.mxu1 %vm4890_vm1, %v4118_v53  ;;  %v4133_v27 = vpack.c.bf16 %v1732_v33, %v1763_v15  ;;  %v2715_v53 = vld [vmem:[#allocation2 + $0xc8] sm:$0xff]  ;;  %v6183_v33 = vld [vmem:[#allocation64_spill] sm:$0xff]  ;;  %v6189_v15 = vld [vmem:[#allocation43_spill] sm:$0xff] }
 0x196   : > { %4306 = vmatprep.subr.msk.bf16.mxu0 %vm4890_vm1, %v4304_v23  ;;  %v4136_v23 = vpack.c.bf16 %v1750_v8, %v1781_v60  ;;  %v4322_v26 = vpack.c.bf16 %v2716_v24, %v2715_v53  ;;  %v6186_v8 = vld [vmem:[#allocation25_spill] sm:$0xff]  ;;  %v6187_v24 = vld [vmem:[#allocation76_spill] sm:$0xff] }
 0x197   : > { %v2928_v60 = vld [vmem:[#allocation2 + $0xa1] sm:$0xff] }
 0x198   : > { %v2960_v35 = vsel %vm6122_vm8, %v2928_v60, 0.0 }
 0x19b   : > { %3755 = vmatmul.mubr.msk.f32.vlgmr.msra.gmra.mrb[0].mxu1 %vm316_vm0, %v3392_v5  ;;  %v5645_v5 = vld [vmem:[%s5889_s1 + $0x30] sm:$0xff] }
 0x19c   : > { %4123 = vmatpush3.bf16.xpose.msk.msra.mxu1 %vm4890_vm1, %v6159_v62  ;;  %3756 = vmatprep.mubr.msk.f32.mxu1 %vm316_vm0, %v3393_v61  ;;  %v2717_v62 = vld [vmem:[#allocation2 + $0xd8] sm:$0xff] }
 0x19d   : > { %4309 = vmatpush3.bf16.xpose.msk.msra.mxu0 %vm4890_vm1, %v4307_v19  ;;  %4126 = vmatprep.subr.msk.bf16.mxu1 %vm4890_vm1, %v4124_v1  ;;  %v6168_v19 = vld [vmem:[#allocation15_spill] sm:$0xff]  ;;  %v4325_v1 = vpack.c.bf16 %v2700_v40, %v2699_v43  ;;  %v4328_v3 = vpack.c.bf16 %v2718_v56, %v2717_v62 }
 0x19e   : > { %4312 = vmatprep.subr.msk.bf16.mxu0 %vm4890_vm1, %v4310_v36  ;;  %vm6169_vm12 = vnez %v6168_v19  ;;  %v6170_v36 = vld [vmem:[#allocation58_spill] sm:$0xff] }
 0x19f   : > { %3757 = vmatmul.mubr.msk.f32.gmra.mrb[2].mxu1 %vm316_vm0, %v3393_v61  ;;  %v1765_v42 = vsel %vm6169_vm12, %v1733_v6, 0.0  ;;  %vm6171_vm2 = vnez %v6170_v36 }
 0x1a0   : > { %3790 = vmatprep.mubr.msk.f32.mxu1 %vm316_vm0, %v5645_v5  ;;  %v4139_v44 = vpack.c.bf16 %v1734_v51, %v1765_v42  ;;  %v1783_v61 = vsel %vm6171_vm2, %v1751_v54, 0.0 }
 0x1a1   : > { %v4142_v16 = vpack.c.bf16 %v1752_v38, %v1783_v61 }
 0x1a4   : > { %3899 = vmatmul.mubr.msk.f32.vlgmr.msra.gmra.mrb[0].mxu0 %vm316_vm0, %v5537_v13  ;;  %4129 = vmatpush3.bf16.xpose.msk.msra.mxu1 %vm4890_vm1, %v4127_v7  ;;  %v5674_v13 = vld [vmem:[%s5889_s1 + $0x70] sm:$0xff]  ;;  %v4331_v7 = vpack.c.bf16 %v2702_v18, %v2701_v25 }
 0x1a5   : > { %4315 = vmatpush3.bf16.xpose.msk.msra.mxu0 %vm4890_vm1, %v4313_v34  ;;  %4132 = vmatprep.subr.msk.bf16.mxu1 %vm4890_vm1, %v4130_v9  ;;  %v6174_v34 = vld [vmem:[#allocation74_spill] sm:$0xff] }
 0x1a6   : > { %4318 = vmatprep.subr.msk.bf16.mxu0 %vm4890_vm1, %v4316_v11  ;;  %3900 = vmatprep.mubr.msk.f32.mxu0 %vm316_vm0, %v3537_v14 }
 0x1a8   : > { %3901 = vmatmul.mubr.msk.f32.gmra.mrb[2].mxu0 %vm316_vm0, %v3537_v14  ;;  %v3429_v14 = vld [vmem:[%s5889_s1 + $0x38] sm:$0xff] }
 0x1a9   : > { %3934 = vmatprep.mubr.msk.f32.mxu0 %vm316_vm0, %v5674_v13 }
 0x1ac   : > { %4135 = vmatpush3.bf16.xpose.msk.msra.mxu1 %vm4890_vm1, %v4133_v27  ;;  %v2976_v27 = vsel %vm5259_vm11, %v2944_v21, 0.0 }
 0x1ad   : > { %4321 = vmatpush3.bf16.xpose.msk.msra.mxu0 %vm4890_vm1, %v4319_v48  ;;  %4138 = vmatprep.subr.msk.bf16.mxu1 %vm4890_vm1, %v4136_v23  ;;  %v4400_v48 = vpack.c.bf16 %v2976_v27, %v2943_v49 }
 0x1ae   : > { %4324 = vmatprep.subr.msk.bf16.mxu0 %vm4890_vm1, %v4322_v26 }
 0x1b4   : > { %4141 = vmatpush3.bf16.xpose.msk.msra.mxu1 %vm4890_vm1, %v4139_v44 }
 0x1b5   : > { %4327 = vmatpush3.bf16.xpose.msk.msra.mxu0 %vm4890_vm1, %v4325_v1  ;;  %4144 = vmatprep.subr.msk.bf16.mxu1 %vm4890_vm1, %v4142_v16 }
 0x1b6   : > { %4330 = vmatprep.subr.msk.bf16.mxu0 %vm4890_vm1, %v4328_v3 }
 0x1bc   : > { %4147 = vmatpush3.bf16.xpose.msk.msra.mxu1 %vm4890_vm1, %v4145_v58 }
 0x1bd   : > { %4333 = vmatpush3.bf16.xpose.msk.msra.mxu0 %vm4890_vm1, %v4331_v7  ;;  %4150 = vmatprep.subr.msk.bf16.mxu1 %vm4890_vm1, %v6174_v34 }
 0x1be   : > { %4336 = vmatprep.subr.msk.bf16.mxu0 %vm4890_vm1, %v5195_v28  ;;  %v2725_v28 = vld [vmem:[#allocation2 + $0x118] sm:$0xff] }
 0x1c4   : > { %4153 = vmatpush3.bf16.xpose.msk.msra.mxu1 %vm4890_vm1, %v6175_v50 }
 0x1c5   : > { %4339 = vmatpush3.bf16.xpose.msk.msra.mxu0 %vm4890_vm1, %v5202_v46  ;;  %4156 = vmatprep.subr.msk.bf16.mxu1 %vm4890_vm1, %v6176_v20  ;;  %v2726_v46 = vld [vmem:[#allocation2 + $0x120] sm:$0xff] }
 0x1c6   : > { %4342 = vmatprep.subr.msk.bf16.mxu0 %vm4890_vm1, %v5250_v39  ;;  %v4352_v9 = vpack.c.bf16 %v2726_v46, %v2725_v28  ;;  %v6178_v39 = vld [vmem:[#allocation45_spill] sm:$0xff] }
 0x1cc   : > { %4159 = vmatpush3.bf16.xpose.msk.msra.mxu1 %vm4890_vm1, %v6177_v45 }
 0x1cd   : > { %4345 = vmatpush3.bf16.xpose.msk.msra.mxu0 %vm4890_vm1, %v5257_v37  ;;  %4162 = vmatprep.subr.msk.bf16.mxu1 %vm4890_vm1, %v5314_v22  ;;  %v6179_v37 = vld [vmem:[#allocation56_spill] sm:$0xff]  ;;  %v2710_v22 = vld [vmem:[#allocation2 + $0xa0] sm:$0xff] }
 0x1ce   : > { %4348 = vmatprep.subr.msk.bf16.mxu0 %vm4890_vm1, %v5306_v41  ;;  %v2709_v41 = vld [vmem:[#allocation2 + $0x98] sm:$0xff] }
 0x1cf   : > { %v4355_v11 = vpack.c.bf16 %v2710_v22, %v2709_v41 }
 0x1d4   : > { %4165 = vmatpush3.bf16.xpose.msk.msra.mxu1 %vm4890_vm1, %v6178_v39 }
 0x1d5   : > { %4351 = vmatpush3.bf16.xpose.msk.msra.mxu0 %vm4890_vm1, %v5268_v30  ;;  %4406 = vmatprep.subr.msk.bf16.mxu1 %vm4890_vm1, %v6179_v37  ;;  %v6180_v30 = vld [vmem:[#allocation8_spill] sm:$0xff] }
 0x1d6   : > { %4354 = vmatprep.subr.msk.bf16.mxu0 %vm4890_vm1, %v4352_v9 }
 0x1db   : > { %3791 = vmatmul.mubr.msk.f32.vlgmr.msra.gmra.mrb[0].mxu1 %vm316_vm0, %v5645_v5  ;;  %v3609_v5 = vld [vmem:[%s5889_s1 + $0x88] sm:$0xff] }
 0x1dc   : > { %4414 = vmatpush3.bf16.xpose.msk.msra.mxu1 %vm4890_vm1, %v6180_v30  ;;  %3792 = vmatprep.mubr.msk.f32.mxu1 %vm316_vm0, %v3429_v14 }
 0x1dd   : > { %4357 = vmatpush3.bf16.xpose.msk.msra.mxu0 %vm4890_vm1, %v4355_v11  ;;  %4407 = vmatprep.subr.msk.bf16.mxu1 %vm4890_vm1, %v6181_v47 }
 0x1de   : > { %4360 = vmatprep.subr.msk.bf16.mxu0 %vm4890_vm1, %v6179_v37 }
 0x1df   : > { %3793 = vmatmul.mubr.msk.f32.gmra.mrb[2].mxu1 %vm316_vm0, %v3429_v14 }
 0x1e0   : > { %3972 = vmatprep.mubr.msk.f32.mxu1 %vm316_vm0, %v3609_v5 }
 0x1e4   : > { %3935 = vmatmul.mubr.msk.f32.vlgmr.msra.gmra.mrb[0].mxu0 %vm316_vm0, %v5674_v13  ;;  %4415 = vmatpush3.bf16.xpose.msk.msra.mxu1 %vm4890_vm1, %v6182_v59  ;;  %v3608_v13 = vld [vmem:[%s5889_s1 + $0x80] sm:$0xff] }
 0x1e5   : > { %4363 = vmatpush3.bf16.xpose.msk.msra.mxu0 %vm4890_vm1, %v6180_v30  ;;  %4408 = vmatprep.subr.msk.bf16.mxu1 %vm4890_vm1, %v6183_v33 }
 0x1e6   : > { %4366 = vmatprep.subr.msk.bf16.mxu0 %vm4890_vm1, %v6181_v47  ;;  %3936 = vmatprep.mubr.msk.f32.mxu0 %vm316_vm0, %v3573_v12 }
 0x1e8   : > { %3937 = vmatmul.mubr.msk.f32.gmra.mrb[2].mxu0 %vm316_vm0, %v3573_v12 }
 0x1e9   : > { %3970 = vmatprep.mubr.msk.f32.mxu0 %vm316_vm0, %v3608_v13 }
 0x1ec   : > { %4416 = vmatpush3.bf16.xpose.msk.msra.mxu1 %vm4890_vm1, %v6184_v0 }
 0x1ed   : > { %4369 = vmatpush3.bf16.xpose.msk.msra.mxu0 %vm4890_vm1, %v6182_v59  ;;  %4409 = vmatprep.subr.msk.bf16.mxu1 %vm4890_vm1, %v6185_v63 }
 0x1ee   : > { %4372 = vmatprep.subr.msk.bf16.mxu0 %vm4890_vm1, %v6183_v33 }
 0x1f4   : > { %4417 = vmatpush3.bf16.xpose.msk.msra.mxu1 %vm4890_vm1, %v6186_v8 }
 0x1f5   : > { %4375 = vmatpush3.bf16.xpose.msk.msra.mxu0 %vm4890_vm1, %v6184_v0  ;;  %4410 = vmatprep.subr.msk.bf16.mxu1 %vm4890_vm1, %v6187_v24 }
 0x1f6   : > { %4378 = vmatprep.subr.msk.bf16.mxu0 %vm4890_vm1, %v6185_v63 }
 0x1fc   : > { %4418 = vmatpush3.bf16.xpose.msk.msra.mxu1 %vm4890_vm1, %v6188_v17 }
 0x1fd   : > { %4381 = vmatpush3.bf16.xpose.msk.msra.mxu0 %vm4890_vm1, %v6186_v8  ;;  %4411 = vmatprep.subr.msk.bf16.mxu1 %vm4890_vm1, %v5297_v32 }
 0x1fe   : > { %4384 = vmatprep.subr.msk.bf16.mxu0 %vm4890_vm1, %v6187_v24 }
 0x204   : > { %4419 = vmatpush3.bf16.xpose.msk.msra.mxu1 %vm4890_vm1, %v6189_v15 }
 0x205   : > { %4387 = vmatpush3.bf16.xpose.msk.msra.mxu0 %vm4890_vm1, %v6188_v17  ;;  %4412 = vmatprep.subr.msk.bf16.mxu1 %vm4890_vm1, %v5326_v29 }
 0x206   : > { %4390 = vmatprep.subr.msk.bf16.mxu0 %vm4890_vm1, %v5297_v32  ;;  %v2927_v32 = vld [vmem:[#allocation2 + $0x99] sm:$0xff] }
 0x207   : > { %v4403_v53 = vpack.c.bf16 %v2960_v35, %v2927_v32 }
 0x20c   : > { %4420 = vmatpush3.bf16.xpose.msk.msra.mxu1 %vm4890_vm1, %v6190_v10 }
 0x20d   : > { %4393 = vmatpush3.bf16.xpose.msk.msra.mxu0 %vm4890_vm1, %v6189_v15  ;;  %4413 = vmatprep.subr.msk.bf16.mxu1 %vm4890_vm1, %v4400_v48 }
 0x20e   : > { %4396 = vmatprep.subr.msk.bf16.mxu0 %vm4890_vm1, %v5326_v29  ;;  %v878_v6 = vpop.permute.xlu1 %877 }
 0x212   : > { %v873_v36 = vpop.permute.xlu1 %872 }
 0x214   : > { %4421 = vmatpush3.bf16.xpose.msk.msra.mxu1 %vm4890_vm1, %v4403_v53 }
 0x215   : > { %4399 = vmatpush3.bf16.xpose.msk.msra.mxu0 %vm4890_vm1, %v6190_v10 }
 0x216   : > { %4402 = vmatprep.subr.msk.bf16.mxu0 %vm4890_vm1, %v4400_v48 }
 0x21b   : > { %3973 = vmatmul.mubr.msk.f32.vlgmr.msra.gmra.mrb[4].mxu1 %vm316_vm0, %v3609_v5 }
 0x21d   : > { %4405 = vmatpush3.bf16.xpose.msk.msra.mxu0 %vm4890_vm1, %v4403_v53 }
 0x224   : > { %3971 = vmatmul.mubr.msk.f32.vlgmr.msra.gmra.mrb[0].mxu0 %vm316_vm0, %v3608_v13  ;;  %vm3173_vm0 = vcmask 7168  }
 0x2ae   : > { %v1962_v29 = vpop.f32.mrb[0].mxu1 }
 0x2af   : > { %v1964_v57 = vpop.f32.mrb[1].mxu1  ;;  %v4422_v3 = vadd.f32 %v1962_v29, %v873_v36 }
 0x2b0   : > { %v4424_v52 = vadd.f32 %v1964_v57, %v873_v36 }
 0x2b2   : > { %v1968_v23 = vpop.f32.mrb[2].mxu1 }
 0x2b3   : > { %v1970_v26 = vpop.f32.mrb[3].mxu1  ;;  %v4426_v51 = vadd.f32 %v1968_v23, %v878_v6 }
 0x2b4   : > { %v4429_v40 = vadd.f32 %v1970_v26, %v878_v6 }
 0x2bb   : > { %v2904_v54 = vpop.f32.mrb[2].mxu0 }
 0x2bc   : > { %v4427_v38 = vadd.f32 %v4426_v51, %v2904_v54  ;;  %v2906_v56 = vpop.f32.mrb[3].mxu0 }
 0x2bd   : > { %v4430_v19 = vadd.f32 %v4429_v40, %v2906_v56 }
 0x2ee   : > { %v3154_v2 = vpop.f32.mrb[4].mxu1 }
 0x2ef   : > { %v4428_v42 = vadd.f32 %v4427_v38, %v3154_v2  ;;  %v3156_v43 = vpop.f32.mrb[5].mxu1 }
 0x2f0   : > { %v4431_v44 = vadd.f32 %v4430_v19, %v3156_v43 }
 0x2f1   : > { %3165 = vst [vmem:[%s239_s24 + $0x10] sm:$0xff] %v4428_v42  ;;  %v3178_v1 = vmul.f32 %v4428_v42, %v4428_v42 }
 0x2f2   : > { %3166 = vst [vmem:[%s239_s24 + $0x18] sm:$0xff] %v4431_v44  ;;  %v3170_v61 = vadd.f32 %v4431_v44, %v4428_v42  ;;  %v3179_v62 = vmul.f32 %v4431_v44, %v4431_v44 }
 0x2f4   : > { %v3183_v16 = vadd.f32 %v3179_v62, %v3178_v1 }
 0x2f7   : > { %v3148_v4 = vpop.f32.mrb[0].mxu0 }
 0x2f8   : > { %v4423_v18 = vadd.f32 %v4422_v3, %v3148_v4  ;;  %v3150_v31 = vpop.f32.mrb[1].mxu0 }
 0x2f9   : > { %v4425_v55 = vadd.f32 %v4424_v52, %v3150_v31 }
 0x2fa   : > { %3163 = vst [vmem:[%s239_s24] sm:$0xff] %v4423_v18  ;;  %v3176_v25 = vmul.f32 %v4423_v18, %v4423_v18 }
 0x2fb   : > { %3164 = vst [vmem:[%s239_s24 + $0x8] sm:$0xff] %v4425_v55  ;;  %v3167_v58 = vadd.f32 %v4425_v55, %v4423_v18  ;;  %v3177_v7 = vmul.f32 %v4425_v55, %v4425_v55 }
 0x2fd   : > { %3168 = vadd.xlane.f32.xlu1 %v3167_v58  ;;  %v3180_v34 = vadd.f32 %v3177_v7, %v3176_v25 }
 0x301   : > { %3181 = vadd.xlane.f32.xlu1 %v3180_v34 }
 0x305   : > { %3171 = vadd.xlane.f32.xlu1 %v3170_v61 }
 0x309   : > { %3184 = vadd.xlane.f32.xlu1 %v3183_v16 }
 0x38a   : > { %v3169_v50 = vpop.xlane.xlu1 %3168 }
 0x38b   : > { %3174 = vst.msk [vmem:[%s244_s26] sm:$0xff] %vm3173_vm0, %v3169_v50 }
 0x38e   : > { %v3182_v20 = vpop.xlane.xlu1 %3181 }
 0x38f   : > { %3186 = vst.msk [vmem:[%s249_s29] sm:$0xff] %vm3173_vm0, %v3182_v20 }
 0x392   : > { %v3172_v45 = vpop.xlane.xlu1 %3171 }
 0x393   : > { %3175 = vst.msk [vmem:[%s244_s26 + $0x8] sm:$0xff] %vm3173_vm0, %v3172_v45 }
 0x396   : > { %v3185_v28 = vpop.xlane.xlu1 %3184 }
 0x397   : > { %3187 = vst.msk [vmem:[%s249_s29 + $0x8] sm:$0xff] %vm3173_vm0, %v3185_v28 }
 0x398 PF: > { %s16_s18 = sadd.s32 1, %s4476_s18  }
 0x399   : > { %p13_p4 = scmp.ge.s32.totalorder %s16_s18, 4  }
 0x39b   :  { %15 = sbr.rel (!%p13_p4) target bundleno = 1 (0x1), region = 94 }

// kernel: downsample_forward.4
= control target key start
LH: loop header
LB: loop body
LE: loop exit
PB: predicated region body
PF: predicated region fallthrough
CT: control target
= control target key end

     0   :  { %s4612_s24 = smov 0   ;;  %s6035_s0 = inlined_call_operand.vmem [shape: f32[2,16,256], index: 0, kind: input, shape index: {}]   ;;  %s6036_s1 = inlined_call_operand.vmem [shape: f32[9,16,16], index: 1, kind: input, shape index: {}]   ;;  %s6037_s2 = inlined_call_operand.vmem [shape: f32[16,1], index: 2, kind: input, shape index: {}]   ;;  %s6038_s3 = inlined_call_operand.vmem [shape: f32[16,1], index: 3, kind: input, shape index: {}]   ;;  %s6039_s4 = inlined_call_operand.vmem [shape: f32[16,1], index: 4, kind: input, shape index: {}]   ;;  %s6040_s5 = inlined_call_operand.vmem [shape: f32[2,16,256], index: 5, kind: output, shape index: {0}]   ;;  %s6041_s6 = inlined_call_operand.vmem [shape: f32[2,16,1], index: 6, kind: output, shape index: {1}]   ;;  %s6042_s7 = inlined_call_operand.vmem [shape: f32[2,16,1], index: 7, kind: output, shape index: {2}]  }
   0x1 LB: > { %s3401_s25 = sadd.s32 4294967295, %s4568_s24   ;;  %p3405_p0 = scmp.ge.s32.totalorder %s4568_s24, 1  ;;  %s4568_s24 = sphi %s4612_s24, %s18_s24  }
   0x2   : > { %p242_p1 = scmp.lt.s32.totalorder %s4568_s24, 3 }
   0x4   : > { %p243_p2 = pnand %p3405_p0, %p242_p1 }
   0x6   : > { %246 = sbr.rel (%p243_p2) target bundleno = 1041 (0x411), region = 40 }
   0xd   : > { %v324_v0 = vld [vmem:[%s6039_s4] sm:$0xff]  ;;  %v4570_v2 = vmov 0   ;;  %v325_v3 = vld [vmem:[%s6039_s4 + $0x8] sm:$0xff]  ;;  %vm6060_vm0 = vcmask 130048   ;;  %v4571_v5 = vmov 0.0   ;;  %p284_p3 = scmp.lt.s32.totalorder %s3401_s25, 1  ;;  %v479_v29 = vlaneseq }
   0xe   : > { %v308_v1 = vld [vmem:[%s6038_s3] sm:$0xff]  ;;  %4561 = vset.pattern.permute.xlu1 %v4570_v2  ;;  %4560 = vset.pattern.permute.xlu0 %v4570_v2  ;;  %v309_v4 = vld [vmem:[%s6038_s3 + $0x8] sm:$0xff]  ;;  %428 = vst.msk [vmem:[#allocation2 + $0x98] sm:$0xff] %vm6060_vm0, %v4571_v5  ;;  %409 = vst.msk [vmem:[#allocation2] sm:$0xff] %vm6060_vm0, %v4571_v5  ;;  %v6169_v41 = vmov 0 }
   0xf   : > { %328 = vperm.xlu1 %4561, %v324_v0   ;;  %312 = vperm.xlu0 %4560, %v308_v1   ;;  %410 = vst.msk [vmem:[#allocation2 + $0x8] sm:$0xff] %vm6060_vm0, %v4571_v5  ;;  %411 = vst.msk [vmem:[#allocation2 + $0x10] sm:$0xff] %vm6060_vm0, %v4571_v5  ;;  %s6482_s25 = smov (!%p284_p3, %s3401_s25), 1  ;;  %v4685_v26 = vld [vmem:[%s6036_s1 + $0x40] sm:$0xff]  ;;  %v961_v28 = vld [vmem:[%s6037_s2 + $0x8] sm:$0xff]  ;;  %v4704_v33 = vshrl.u32 %v479_v29, 7 }
  0x10   : > { %412 = vst.msk [vmem:[#allocation2 + $0x18] sm:$0xff] %vm6060_vm0, %v4571_v5  ;;  %413 = vst.msk [vmem:[#allocation2 + $0x20] sm:$0xff] %vm6060_vm0, %v4571_v5  ;;  %s3738_s11 = sshll.u32 %s6482_s25, 5  ;;  %3918 = vmatprep.mubr.msk.f32.mxu0 %vm6060_vm0, %v4685_v26  ;;  %v960_v27 = vld [vmem:[%s6037_s2] sm:$0xff]  ;;  %v3557_v60 = vld [vmem:[%s6036_s1 + $0x48] sm:$0xff] }
  0x11   : > { %414 = vst.msk [vmem:[#allocation2 + $0x28] sm:$0xff] %vm6060_vm0, %v4571_v5  ;;  %415 = vst.msk [vmem:[#allocation2 + $0x30] sm:$0xff] %vm6060_vm0, %v4571_v5  ;;  %s288_s14 = scalar_lea.vmem %s6035_s0, %s3738_s11  ;;  %v4700_v32 = vld [vmem:[%s6036_s1] sm:$0xff]  ;;  %v516_v36 = vand.u32 15, %v4704_v33  ;;  %v499_v39 = vadd.s32 152, %v4704_v33  ;;  %v483_v40 = vadd.s32 24, %v4704_v33  ;;  %s293_s17 = scalar_lea.vmem %s6040_s5, %s3738_s11 }
  0x12   : > { %416 = vst.msk [vmem:[#allocation2 + $0x38] sm:$0xff] %vm6060_vm0, %v4571_v5  ;;  %417 = vst.msk [vmem:[#allocation2 + $0x40] sm:$0xff] %vm6060_vm0, %v4571_v5  ;;  %v304_v6 = vld [vmem:[%s288_s14] sm:$0xff]  ;;  %v305_v7 = vld [vmem:[%s288_s14 + $0x8] sm:$0xff]  ;;  %3774 = vmatprep.mubr.msk.f32.mxu1 %vm6060_vm0, %v4700_v32  ;;  %v501_v57 = vadd.s32 168, %v4704_v33  ;;  %v485_v1 = vadd.s32 40, %v4704_v33 }
  0x13   : > { %333 = vperm.xlu1 %4561, %v325_v3   ;;  %317 = vperm.xlu0 %4560, %v309_v4   ;;  %418 = vst.msk [vmem:[#allocation2 + $0x48] sm:$0xff] %vm6060_vm0, %v4571_v5  ;;  %419 = vst.msk [vmem:[#allocation2 + $0x50] sm:$0xff] %vm6060_vm0, %v4571_v5  ;;  %v306_v12 = vld [vmem:[%s288_s14 + $0x10] sm:$0xff]  ;;  %v307_v13 = vld [vmem:[%s288_s14 + $0x18] sm:$0xff]  ;;  %vm4713_vm1 = vcmp.ge.s32.totalorder %v516_v36, 1  ;;  %v649_v52 = vand.u32 15, %v499_v39 }
  0x14   : > { %420 = vst.msk [vmem:[#allocation2 + $0x58] sm:$0xff] %vm6060_vm0, %v4571_v5  ;;  %421 = vst.msk [vmem:[#allocation2 + $0x60] sm:$0xff] %vm6060_vm0, %v4571_v5  ;;  %v6170_v41 = vsel %vm4713_vm1, 4294967295, %v6169_v41  ;;  %v537_v53 = vand.u32 15, %v483_v40  ;;  %v663_v3 = vand.u32 15, %v501_v57  ;;  %v505_v57 = vadd.s32 200, %v4704_v33 }
  0x15   : > { %422 = vst.msk [vmem:[#allocation2 + $0x68] sm:$0xff] %vm6060_vm0, %v4571_v5  ;;  %423 = vst.msk [vmem:[#allocation2 + $0x70] sm:$0xff] %vm6060_vm0, %v4571_v5  ;;  %vm4746_vm3 = vcmp.le.s32.totalorder %v649_v52, 14  ;;  %s3740_s11 = sshll.u32 %s6482_s25, 4 }
  0x16   : > { %424 = vst.msk [vmem:[#allocation2 + $0x78] sm:$0xff] %vm6060_vm0, %v4571_v5  ;;  %425 = vst.msk [vmem:[#allocation2 + $0x80] sm:$0xff] %vm6060_vm0, %v4571_v5  ;;  %vm4750_vm4 = vcmp.le.s32.totalorder %v537_v53, 14  ;;  %vm4783_vm5 = vcmp.le.s32.totalorder %v663_v3, 14  ;;  %v6193_v53 = vmov 0  ;;  %s298_s20 = scalar_lea.vmem %s6041_s6, %s3740_s11  ;;  %s303_s23 = scalar_lea.vmem %s6042_s7, %s3740_s11 }
  0x17   : > { %426 = vst.msk [vmem:[#allocation2 + $0x88] sm:$0xff] %vm6060_vm0, %v4571_v5  ;;  %427 = vst.msk [vmem:[#allocation2 + $0x90] sm:$0xff] %vm6060_vm0, %v4571_v5 }
  0x18   : > { %429 = vst.msk [vmem:[#allocation2 + $0xa0] sm:$0xff] %vm6060_vm0, %v4571_v5  ;;  %430 = vst.msk [vmem:[#allocation2 + $0xa8] sm:$0xff] %vm6060_vm0, %v4571_v5 }
  0x19   : > { %431 = vst.msk [vmem:[#allocation2 + $0xb0] sm:$0xff] %vm6060_vm0, %v4571_v5  ;;  %432 = vst.msk [vmem:[#allocation2 + $0xb8] sm:$0xff] %vm6060_vm0, %v4571_v5 }
  0x1a   : > { %433 = vst.msk [vmem:[#allocation2 + $0xc0] sm:$0xff] %vm6060_vm0, %v4571_v5  ;;  %434 = vst.msk [vmem:[#allocation2 + $0xc8] sm:$0xff] %vm6060_vm0, %v4571_v5 }
  0x1b   : > { %435 = vst.msk [vmem:[#allocation2 + $0xd0] sm:$0xff] %vm6060_vm0, %v4571_v5  ;;  %436 = vst.msk [vmem:[#allocation2 + $0xd8] sm:$0xff] %vm6060_vm0, %v4571_v5 }
  0x1c   : > { %437 = vst.msk [vmem:[#allocation2 + $0xe0] sm:$0xff] %vm6060_vm0, %v4571_v5  ;;  %438 = vst.msk [vmem:[#allocation2 + $0xe8] sm:$0xff] %vm6060_vm0, %v4571_v5 }
  0x1d   : > { %439 = vst.msk [vmem:[#allocation2 + $0xf0] sm:$0xff] %vm6060_vm0, %v4571_v5  ;;  %440 = vst.msk [vmem:[#allocation2 + $0xf8] sm:$0xff] %vm6060_vm0, %v4571_v5 }
  0x1e   : > { %441 = vst.msk [vmem:[#allocation2 + $0x100] sm:$0xff] %vm6060_vm0, %v4571_v5  ;;  %442 = vst.msk [vmem:[#allocation2 + $0x108] sm:$0xff] %vm6060_vm0, %v4571_v5 }
  0x1f   : > { %443 = vst.msk [vmem:[#allocation2 + $0x110] sm:$0xff] %vm6060_vm0, %v4571_v5  ;;  %444 = vst.msk [vmem:[#allocation2 + $0x118] sm:$0xff] %vm6060_vm0, %v4571_v5 }
  0x20   : > { %445 = vst.msk [vmem:[#allocation2 + $0x120] sm:$0xff] %vm6060_vm0, %v4571_v5  ;;  %446 = vst.msk [vmem:[#allocation2 + $0x128] sm:$0xff] %vm6060_vm0, %v4571_v5 }
  0x21   : > { %6168 = vst [vmem:[#allocation3_spill] sm:$0xff] %v4700_v32  ;;  %6171 = vst [vmem:[#allocation4_spill] sm:$0xff] %v6170_v41  ;;  %v509_v32 = vadd.s32 232, %v4704_v33 }
  0x22   : > { %vm4721_vm2 = vmpackc.low %vm6060_vm0, %vm6060_vm0 }
  0x8e   : > { %v329_v8 = vpop.permute.xlu1 %328  ;;  %v313_v9 = vpop.permute.xlu0 %312 }
  0x8f   : > { %v320_v10 = vmul.f32 %v313_v9, %v304_v6  ;;  %v321_v11 = vmul.f32 %v313_v9, %v305_v7 }
  0x91   : > { %v336_v14 = vadd.f32 %v329_v8, %v320_v10  ;;  %v337_v15 = vadd.f32 %v329_v8, %v321_v11 }
  0x92   : > { %v318_v16 = vpop.permute.xlu0 %317  ;;  %v334_v21 = vpop.permute.xlu1 %333 }
  0x93   : > { %v322_v17 = vmul.f32 %v318_v16, %v306_v12  ;;  %v323_v18 = vmul.f32 %v318_v16, %v307_v13  ;;  %v341_v19 = vmax.f32 %v337_v15, 0.0  ;;  %v340_v20 = vmax.f32 %v336_v14, 0.0 }
  0x94   : > { %v551_v16 = vand.u32 15, %v485_v1 }
  0x95   : > { %v338_v22 = vadd.f32 %v334_v21, %v322_v17  ;;  %v339_v23 = vadd.f32 %v334_v21, %v323_v18  ;;  %376 = vxpose.xlu1.b32.start [1/2] (short) %v341_v19, 128  ;;  %344 = vxpose.xlu0.b32.start [1/2] (short) %v340_v20, 128  ;;  %v503_v18 = vadd.s32 184, %v4704_v33  ;;  %v484_v19 = vadd.s32 32, %v4704_v33 }
  0x96   : > { %vm4804_vm6 = vcmp.le.s32.totalorder %v551_v16, 14  ;;  %v489_v16 = vadd.s32 72, %v4704_v33 }
  0x97   : > { %v342_v24 = vmax.f32 %v338_v22, 0.0  ;;  %v343_v25 = vmax.f32 %v339_v23, 0.0 }
  0x99   : > { %377 = vxpose.xlu1.b32.end [2/2] (short) %v343_v25, 128  ;;  %345 = vxpose.xlu0.b32.end [2/2] (short) %v342_v24, 128  ;;  %v487_v24 = vadd.s32 56, %v4704_v33 }
  0xef   : > { %964 = vperm.xlu1 %4561, %v960_v27   ;;  %v6187_v27 = vmov 0 }
  0xf0   : > { %v6188_v27 = vsel %vm4804_vm6, 4294967295, %v6187_v27 }
  0xfa   : > { %969 = vperm.xlu0 %4560, %v961_v28  }
 0x115   : > { %v392_v30 = vpop.trf.xlu1  ;;  %v360_v31 = vpop.trf.xlu0 }
 0x116   : > { %463 = vst.msk [vmem:[#allocation2 + $0x98] sm:$0xff] %vm6060_vm0, %v392_v30  ;;  %447 = vst.msk [vmem:[#allocation2 + $0x18] sm:$0xff] %vm6060_vm0, %v360_v31  ;;  %v677_v30 = vand.u32 15, %v503_v18  ;;  %v544_v31 = vand.u32 15, %v484_v19 }
 0x118   : > { %vm4831_vm7 = vcmp.le.s32.totalorder %v677_v30, 14  ;;  %vm4842_vm8 = vcmp.ge.s32.totalorder %v544_v31, 1  ;;  %v504_v30 = vadd.s32 192, %v4704_v33  ;;  %v488_v31 = vadd.s32 64, %v4704_v33 }
 0x119   : > { %v393_v34 = vpop.trf.xlu1  ;;  %v361_v35 = vpop.trf.xlu0  ;;  %v6194_v53 = vsel %vm4831_vm7, 4294967295, %v6193_v53 }
 0x11a   : > { %464 = vst.msk [vmem:[#allocation2 + $0xa0] sm:$0xff] %vm6060_vm0, %v393_v34  ;;  %448 = vst.msk [vmem:[#allocation2 + $0x20] sm:$0xff] %vm6060_vm0, %v361_v35  ;;  %v502_v34 = vadd.s32 176, %v4704_v33 }
 0x11c   : > { %v670_v1 = vand.u32 15, %v502_v34 }
 0x11d   : > { %v394_v37 = vpop.trf.xlu1  ;;  %v362_v38 = vpop.trf.xlu0  ;;  %v4717_v42 = vld [vmem:[#allocation2 + $0x17] sm:$0xff] }
 0x11e   : > { %465 = vst.msk [vmem:[#allocation2 + $0xa8] sm:$0xff] %vm6060_vm0, %v394_v37  ;;  %449 = vst.msk [vmem:[#allocation2 + $0x28] sm:$0xff] %vm6060_vm0, %v362_v38  ;;  %v2085_v43 = vld [vmem:[#allocation2 + $0x98] sm:$0xff]  ;;  %v1851_v51 = vsel %vm4713_vm1, %v4717_v42, 0.0  ;;  %vm4876_vm10 = vcmp.ge.s32.totalorder %v670_v1, 1 }
 0x11f   : > { %v2069_v45 = vld [vmem:[#allocation2 + $0x18] sm:$0xff] }
 0x121   : > { %v395_v46 = vpop.trf.xlu1  ;;  %v363_v47 = vpop.trf.xlu0  ;;  %v2086_v48 = vld [vmem:[#allocation2 + $0xa0] sm:$0xff] }
 0x122   : > { %v2070_v49 = vld [vmem:[#allocation2 + $0x20] sm:$0xff]  ;;  %466 = vst.msk [vmem:[#allocation2 + $0xb0] sm:$0xff] %vm6060_vm0, %v395_v46  ;;  %450 = vst.msk [vmem:[#allocation2 + $0x30] sm:$0xff] %vm6060_vm0, %v363_v47  ;;  %v4732_v54 = vpack.c.bf16 %v2086_v48, %v2085_v43  ;;  %v486_v43 = vadd.s32 48, %v4704_v33 }
 0x123   : > { %v4725_v50 = vld [vmem:[#allocation2 + $0x1f] sm:$0xff]  ;;  %v4734_v55 = vpack.c.bf16 %v2070_v49, %v2069_v45  ;;  %v565_v45 = vand.u32 15, %v487_v24  ;;  %v691_v24 = vand.u32 15, %v505_v57 }
 0x124   : > { %6174 = vst [vmem:[#allocation5_spill] sm:$0xff] %v4732_v54  ;;  %v4737_v56 = vpack.c.bf16 %v4725_v50, %v1851_v51  ;;  %4260 = vmatprep.subr.msk.bf16.mxu0 %vm4721_vm2, %v4732_v54  ;;  %v4756_v62 = vld [vmem:[#allocation2 + $0x99] sm:$0xff] }
 0x125   : > { %6175 = vst [vmem:[#allocation6_spill] sm:$0xff] %v4734_v55  ;;  %v396_v58 = vpop.trf.xlu1  ;;  %4263 = vmatpush3.bf16.xpose.msk.msra.mxu0 %vm4721_vm2, %v4734_v55  ;;  %v364_v59 = vpop.trf.xlu0  ;;  %v4758_v63 = vld [vmem:[#allocation2 + $0xa1] sm:$0xff]  ;;  %v4763_v4 = vld [vmem:[#allocation2 + $0x19] sm:$0xff]  ;;  %vm4853_vm9 = vcmp.le.s32.totalorder %v565_v45, 14  ;;  %vm4915_vm12 = vcmp.le.s32.totalorder %v691_v24, 14 }
 0x126   : > { %6176 = vst [vmem:[#allocation7_spill] sm:$0xff] %v4737_v56  ;;  %467 = vst.msk [vmem:[#allocation2 + $0xb8] sm:$0xff] %vm6060_vm0, %v396_v58  ;;  %v4760_v0 = vld [vmem:[#allocation2 + $0x21] sm:$0xff]  ;;  %v1620_v5 = vsel %vm4746_vm3, %v4758_v63, 0.0  ;;  %v491_v56 = vadd.s32 88, %v4704_v33 }
 0x127   : > { %451 = vst.msk [vmem:[#allocation2 + $0x38] sm:$0xff] %vm6060_vm0, %v364_v59  ;;  %v2087_v2 = vld [vmem:[#allocation2 + $0xa8] sm:$0xff]  ;;  %v1604_v6 = vsel %vm4750_vm4, %v4760_v0, 0.0  ;;  %v4772_v12 = vpack.c.bf16 %v1620_v5, %v4756_v62  ;;  %v6196_v59 = vmov 0 }
 0x128   : > { %v2071_v10 = vld [vmem:[#allocation2 + $0x28] sm:$0xff]  ;;  %v4775_v13 = vpack.c.bf16 %v1604_v6, %v4763_v4  ;;  %v6197_v59 = vsel %vm4842_vm8, 4294967295, %v6196_v59  ;;  %v593_v55 = vand.u32 15, %v491_v56 }
 0x129   : > { %v397_v7 = vpop.trf.xlu1  ;;  %v365_v8 = vpop.trf.xlu0  ;;  %v2088_v9 = vld [vmem:[#allocation2 + $0xb0] sm:$0xff]  ;;  %6181 = vst [vmem:[#allocation8_spill] sm:$0xff] %v4772_v12 }
 0x12a   : > { %v2072_v11 = vld [vmem:[#allocation2 + $0x30] sm:$0xff]  ;;  %6182 = vst [vmem:[#allocation9_spill] sm:$0xff] %v4775_v13  ;;  %468 = vst.msk [vmem:[#allocation2 + $0xc0] sm:$0xff] %vm6060_vm0, %v397_v7  ;;  %v4779_v14 = vpack.c.bf16 %v2088_v9, %v2087_v2  ;;  %v558_v7 = vand.u32 15, %v486_v43 }
 0x12b   : > { %452 = vst.msk [vmem:[#allocation2 + $0x40] sm:$0xff] %vm6060_vm0, %v365_v8  ;;  %v4781_v15 = vpack.c.bf16 %v2072_v11, %v2071_v10  ;;  %v4795_v22 = vld [vmem:[#allocation2 + $0xa9] sm:$0xff]  ;;  %v6198_v8 = vmov 0 }
 0x12c   : > { %6183 = vst [vmem:[#allocation10_spill] sm:$0xff] %v4779_v14  ;;  %4266 = vmatprep.subr.msk.bf16.mxu0 %vm4721_vm2, %v4779_v14  ;;  %v4825_v49 = vld [vmem:[#allocation2 + $0x29] sm:$0xff]  ;;  %v6199_v8 = vsel %vm4853_vm9, 4294967295, %v6198_v8  ;;  %vm4907_vm11 = vcmp.ge.s32.totalorder %v558_v7, 1  ;;  %v684_v7 = vand.u32 15, %v504_v30  ;;  %v490_v30 = vadd.s32 80, %v4704_v33 }
 0x12d   : > { %6184 = vst [vmem:[#allocation11_spill] sm:$0xff] %v4781_v15  ;;  %v398_v20 = vpop.trf.xlu1  ;;  %4269 = vmatpush3.bf16.xpose.msk.msra.mxu0 %vm4721_vm2, %v4781_v15  ;;  %v366_v21 = vpop.trf.xlu0  ;;  %v4797_v23 = vld [vmem:[#allocation2 + $0xb1] sm:$0xff]  ;;  %6200 = vst [vmem:[#allocation17_spill] sm:$0xff] %v6199_v8 }
 0x12e   : > { %469 = vst.msk [vmem:[#allocation2 + $0xc8] sm:$0xff] %vm6060_vm0, %v398_v20  ;;  %453 = vst.msk [vmem:[#allocation2 + $0x48] sm:$0xff] %vm6060_vm0, %v366_v21  ;;  %v4802_v25 = vld [vmem:[#allocation2 + $0x31] sm:$0xff]  ;;  %v1622_v28 = vsel %vm4783_vm5, %v4797_v23, 0.0  ;;  %vm4963_vm14 = vcmp.ge.s32.totalorder %v684_v7, 1 }
 0x12f   : > { %v2089_v29 = vld [vmem:[#allocation2 + $0xb8] sm:$0xff]  ;;  %v4813_v35 = vpack.c.bf16 %v1622_v28, %v4795_v22  ;;  %v1606_v46 = vsel %vm4804_vm6, %v4802_v25, 0.0 }
 0x130   : > { %v2073_v39 = vld [vmem:[#allocation2 + $0x38] sm:$0xff]  ;;  %v4837_v58 = vpack.c.bf16 %v1606_v46, %v4825_v49 }
 0x131   : > { %6189 = vst [vmem:[#allocation12_spill] sm:$0xff] %v4813_v35  ;;  %v399_v36 = vpop.trf.xlu1  ;;  %v367_v37 = vpop.trf.xlu0  ;;  %v2090_v38 = vld [vmem:[#allocation2 + $0xc0] sm:$0xff]  ;;  %v4827_v51 = vld [vmem:[#allocation2 + $0x37] sm:$0xff] }
 0x132   : > { %v2074_v40 = vld [vmem:[#allocation2 + $0x40] sm:$0xff]  ;;  %470 = vst.msk [vmem:[#allocation2 + $0xd0] sm:$0xff] %vm6060_vm0, %v399_v36  ;;  %454 = vst.msk [vmem:[#allocation2 + $0x50] sm:$0xff] %vm6060_vm0, %v367_v37  ;;  %v4821_v47 = vpack.c.bf16 %v2090_v38, %v2089_v29  ;;  %v1855_v9 = vsel %vm4842_vm8, %v4827_v51, 0.0 }
 0x133   : > { %v4823_v48 = vpack.c.bf16 %v2074_v40, %v2073_v39  ;;  %v4829_v52 = vld [vmem:[#allocation2 + $0x3f] sm:$0xff]  ;;  %6195 = vst [vmem:[#allocation16_spill] sm:$0xff] %v4837_v58  ;;  %v506_v58 = vadd.s32 208, %v4704_v33 }
 0x134   : > { %6190 = vst [vmem:[#allocation13_spill] sm:$0xff] %v4821_v47  ;;  %6192 = vst [vmem:[#allocation15_spill] sm:$0xff] %v4829_v52  ;;  %4272 = vmatprep.subr.msk.bf16.mxu0 %vm4721_vm2, %v4821_v47  ;;  %v4849_v5 = vld [vmem:[#allocation2 + $0xb9] sm:$0xff]  ;;  %v4874_v20 = vpack.c.bf16 %v4829_v52, %v1855_v9  ;;  %v6210_v9 = vmov 0 }
 0x135   : > { %6191 = vst [vmem:[#allocation14_spill] sm:$0xff] %v4823_v48  ;;  %v400_v2 = vpop.trf.xlu1  ;;  %4275 = vmatpush3.bf16.xpose.msk.msra.mxu0 %vm4721_vm2, %v4823_v48  ;;  %v368_v3 = vpop.trf.xlu0  ;;  %v4851_v6 = vld [vmem:[#allocation2 + $0xc1] sm:$0xff]  ;;  %v6211_v9 = vsel %vm4907_vm11, 4294967295, %v6210_v9 }
 0x136   : > { %471 = vst.msk [vmem:[#allocation2 + $0xd8] sm:$0xff] %vm6060_vm0, %v400_v2  ;;  %455 = vst.msk [vmem:[#allocation2 + $0x58] sm:$0xff] %vm6060_vm0, %v368_v3  ;;  %v4862_v10 = vld [vmem:[#allocation2 + $0x41] sm:$0xff]  ;;  %v1624_v18 = vsel %vm4831_vm7, %v4851_v6, 0.0  ;;  %v3056_v19 = vsel %vm4746_vm3, %v4851_v6, 0.0 }
 0x137   : > { %v4864_v11 = vld [vmem:[#allocation2 + $0xc7] sm:$0xff]  ;;  %6201 = vst [vmem:[#allocation18_spill] sm:$0xff] %v4874_v20  ;;  %v4885_v36 = vpack.c.bf16 %v1624_v18, %v4849_v5  ;;  %v1608_v45 = vsel %vm4853_vm9, %v4862_v10, 0.0  ;;  %v4893_v46 = vpack.c.bf16 %v3056_v19, %v4849_v5  ;;  %v3040_v57 = vsel %vm4750_vm4, %v4862_v10, 0.0  ;;  %6212 = vst [vmem:[#allocation25_spill] sm:$0xff] %v6211_v9  ;;  %v4911_v18 = vld [vmem:[#allocation2 + $0x39] sm:$0xff] }
 0x138   : > { %v2091_v21 = vld [vmem:[#allocation2 + $0xc8] sm:$0xff]  ;;  %v1873_v1 = vsel %vm4876_vm10, %v4864_v11, 0.0  ;;  %6213 = vst [vmem:[#allocation26_spill] sm:$0xff] %v4911_v18  ;;  %v579_v20 = vand.u32 15, %v489_v16 }
 0x139   : > { %v2075_v28 = vld [vmem:[#allocation2 + $0x48] sm:$0xff]  ;;  %6205 = vst [vmem:[#allocation20_spill] sm:$0xff] %v4885_v36  ;;  %v401_v37 = vpop.trf.xlu1  ;;  %v369_v38 = vpop.trf.xlu0  ;;  %v2092_v39 = vld [vmem:[#allocation2 + $0xd0] sm:$0xff]  ;;  %6207 = vst [vmem:[#allocation22_spill] sm:$0xff] %v4893_v46  ;;  %v6215_v46 = vmov 0  ;;  %v6228_v36 = vmov 0 }
 0x13a   : > { %v4882_v34 = vld [vmem:[#allocation2 + $0x47] sm:$0xff]  ;;  %v2076_v40 = vld [vmem:[#allocation2 + $0x50] sm:$0xff]  ;;  %472 = vst.msk [vmem:[#allocation2 + $0xe0] sm:$0xff] %vm6060_vm0, %v401_v37  ;;  %456 = vst.msk [vmem:[#allocation2 + $0x60] sm:$0xff] %vm6060_vm0, %v369_v38  ;;  %v4903_v2 = vpack.c.bf16 %v2092_v39, %v2091_v21  ;;  %v6216_v46 = vsel %vm4915_vm12, 4294967295, %v6215_v46  ;;  %v507_v37 = vadd.s32 216, %v4704_v33  ;;  %v4921_v21 = vpack.c.bf16 %v1608_v45, %v4911_v18 }
 0x13b   : > { %6204 = vst [vmem:[#allocation19_spill] sm:$0xff] %v4882_v34  ;;  %v4887_v43 = vld [vmem:[#allocation2 + $0xcf] sm:$0xff]  ;;  %v4905_v3 = vpack.c.bf16 %v2076_v40, %v2075_v28  ;;  %6217 = vst [vmem:[#allocation28_spill] sm:$0xff] %v6216_v46  ;;  %v4924_v28 = vpack.c.bf16 %v3040_v57, %v4911_v18  ;;  %v572_v38 = vand.u32 15, %v488_v31  ;;  %v1857_v24 = vsel %vm4907_vm11, %v4882_v34, 0.0 }
 0x13c   : > { %6206 = vst [vmem:[#allocation21_spill] sm:$0xff] %v4887_v43  ;;  %6208 = vst [vmem:[#allocation23_spill] sm:$0xff] %v4903_v2  ;;  %v4913_v19 = vld [vmem:[#allocation2 + $0x4f] sm:$0xff]  ;;  %4278 = vmatprep.subr.msk.bf16.mxu0 %vm4721_vm2, %v4903_v2  ;;  %v4930_v16 = vpack.c.bf16 %v4887_v43, %v1873_v1  ;;  %vm4952_vm13 = vcmp.le.s32.totalorder %v579_v20, 14  ;;  %v6229_v36 = vsel %vm4963_vm14, 4294967295, %v6228_v36  ;;  %v6230_v20 = vmov 0 }
 0x13d   : > { %6209 = vst [vmem:[#allocation24_spill] sm:$0xff] %v4905_v3  ;;  %6214 = vst [vmem:[#allocation27_spill] sm:$0xff] %v4913_v19  ;;  %v402_v39 = vpop.trf.xlu1  ;;  %4281 = vmatpush3.bf16.xpose.msk.msra.mxu0 %vm4721_vm2, %v4905_v3  ;;  %v370_v40 = vpop.trf.xlu0  ;;  %v4938_v45 = vld [vmem:[#allocation2 + $0xc9] sm:$0xff]  ;;  %v4940_v57 = vld [vmem:[#allocation2 + $0xd1] sm:$0xff]  ;;  %v4944_v31 = vpack.c.bf16 %v4913_v19, %v1857_v24  ;;  %vm4967_vm15 = vcmp.ge.s32.totalorder %v572_v38, 1 }
 0x13e   : > { %6218 = vst [vmem:[#allocation29_spill] sm:$0xff] %v4921_v21  ;;  %6219 = vst [vmem:[#allocation30_spill] sm:$0xff] %v4924_v28  ;;  %v4948_v1 = vld [vmem:[#allocation2 + $0x51] sm:$0xff]  ;;  %v6225_v28 = vmov 0  ;;  %v1626_v21 = vsel %vm4915_vm12, %v4940_v57, 0.0  ;;  %v3058_v24 = vsel %vm4783_vm5, %v4940_v57, 0.0 }
 0x13f   : > { %6220 = vst [vmem:[#allocation31_spill] sm:$0xff] %v4930_v16  ;;  %6221 = vst [vmem:[#allocation32_spill] sm:$0xff] %v4938_v45  ;;  %v4950_v16 = vld [vmem:[#allocation2 + $0xd7] sm:$0xff]  ;;  %v6226_v28 = vsel %vm4952_vm13, 4294967295, %v6225_v28  ;;  %v6231_v20 = vsel %vm4967_vm15, 4294967295, %v6230_v20  ;;  %v4975_v13 = vpack.c.bf16 %v1626_v21, %v4938_v45  ;;  %v1610_v7 = vsel %vm4952_vm13, %v4948_v1, 0.0 }
 0x140   : > { %6222 = vst [vmem:[#allocation33_spill] sm:$0xff] %v4944_v31  ;;  %473 = vst.msk [vmem:[#allocation2 + $0xe8] sm:$0xff] %vm6060_vm0, %v402_v39  ;;  %v2093_v39 = vld [vmem:[#allocation2 + $0xd8] sm:$0xff]  ;;  %v4983_v38 = vpack.c.bf16 %v3058_v24, %v4938_v45  ;;  %v3042_v47 = vsel %vm4804_vm6, %v4948_v1, 0.0  ;;  %v1875_v21 = vsel %vm4963_vm14, %v4950_v16, 0.0  ;;  %v4997_v14 = vld [vmem:[#allocation2 + $0x49] sm:$0xff] }
 0x141   : > { %457 = vst.msk [vmem:[#allocation2 + $0x68] sm:$0xff] %vm6060_vm0, %v370_v40  ;;  %6223 = vst [vmem:[#allocation34_spill] sm:$0xff] %v4948_v1  ;;  %v705_v40 = vand.u32 15, %v507_v37  ;;  %v2077_v31 = vld [vmem:[#allocation2 + $0x58] sm:$0xff]  ;;  %v403_v12 = vpop.trf.xlu1  ;;  %v371_v3 = vpop.trf.xlu0  ;;  %v2094_v2 = vld [vmem:[#allocation2 + $0xe0] sm:$0xff]  ;;  %v586_v24 = vand.u32 15, %v490_v30 }
 0x142   : > { %6224 = vst [vmem:[#allocation35_spill] sm:$0xff] %v4950_v16  ;;  %6227 = vst [vmem:[#allocation36_spill] sm:$0xff] %v6226_v28  ;;  %v4972_v35 = vld [vmem:[#allocation2 + $0x57] sm:$0xff]  ;;  %v2078_v37 = vld [vmem:[#allocation2 + $0x60] sm:$0xff]  ;;  %v492_v30 = vadd.s32 96, %v4704_v33  ;;  %v5087_v1 = vadd.s32 136, %v4704_v33 }
 0x143   : > { %6232 = vst [vmem:[#allocation37_spill] sm:$0xff] %v6231_v20  ;;  %6233 = vst [vmem:[#allocation38_spill] sm:$0xff] %v4972_v35  ;;  %v4977_v48 = vld [vmem:[#allocation2 + $0xdf] sm:$0xff]  ;;  %v4995_v15 = vpack.c.bf16 %v2078_v37, %v2077_v31  ;;  %vm5001_vm11 = vcmp.le.s32.totalorder %v705_v40, 14  ;;  %v1859_v31 = vsel %vm4967_vm15, %v4972_v35, 0.0  ;;  %vm5038_vm15 = vcmp.le.s32.totalorder %v593_v55, 14 }
 0x144   : > { %6234 = vst [vmem:[#allocation39_spill] sm:$0xff] %v4975_v13  ;;  %6235 = vst [vmem:[#allocation40_spill] sm:$0xff] %v4977_v48  ;;  %v4993_v13 = vpack.c.bf16 %v2094_v2, %v2093_v39  ;;  %v5010_v2 = vpack.c.bf16 %v3042_v47, %v4997_v14  ;;  %v5017_v56 = vpack.c.bf16 %v4977_v48, %v1875_v21  ;;  %v5025_v40 = vld [vmem:[#allocation2 + $0xd9] sm:$0xff]  ;;  %v719_v55 = vand.u32 15, %v509_v32 }
 0x145   : > { %6236 = vst [vmem:[#allocation41_spill] sm:$0xff] %v4983_v38  ;;  %474 = vst.msk [vmem:[#allocation2 + $0xf0] sm:$0xff] %vm6060_vm0, %v403_v12  ;;  %v4999_v38 = vld [vmem:[#allocation2 + $0x5f] sm:$0xff]  ;;  %v5007_v12 = vpack.c.bf16 %v1610_v7, %v4997_v14  ;;  %v404_v39 = vpop.trf.xlu1  ;;  %v372_v47 = vpop.trf.xlu0  ;;  %v600_v35 = vand.u32 15, %v492_v30 }
 0x146   : > { %458 = vst.msk [vmem:[#allocation2 + $0x70] sm:$0xff] %vm6060_vm0, %v371_v3  ;;  %6237 = vst [vmem:[#allocation42_spill] sm:$0xff] %v4993_v13  ;;  %4284 = vmatprep.subr.msk.bf16.mxu0 %vm4721_vm2, %v4993_v13  ;;  %v698_v3 = vand.u32 15, %v506_v58  ;;  %v5030_v58 = vpack.c.bf16 %v4999_v38, %v1859_v31  ;;  %v6256_v13 = vmov 0 }
 0x147   : > { %6238 = vst [vmem:[#allocation43_spill] sm:$0xff] %v4995_v15  ;;  %6239 = vst [vmem:[#allocation44_spill] sm:$0xff] %v4997_v14  ;;  %4287 = vmatpush3.bf16.xpose.msk.msra.mxu0 %vm4721_vm2, %v4995_v15  ;;  %v5027_v37 = vld [vmem:[#allocation2 + $0xe1] sm:$0xff] }
 0x148   : > { %6240 = vst [vmem:[#allocation45_spill] sm:$0xff] %v4999_v38  ;;  %6243 = vst [vmem:[#allocation46_spill] sm:$0xff] %v5007_v12  ;;  %v5034_v7 = vld [vmem:[#allocation2 + $0x61] sm:$0xff]  ;;  %v1628_v12 = vsel %vm5001_vm11, %v5027_v37, 0.0  ;;  %v3060_v31 = vsel %vm4831_vm7, %v5027_v37, 0.0  ;;  %vm5056_vm14 = vcmp.ge.s32.totalorder %v698_v3, 1 }
 0x149   : > { %6244 = vst [vmem:[#allocation47_spill] sm:$0xff] %v5010_v2  ;;  %6245 = vst [vmem:[#allocation48_spill] sm:$0xff] %v5017_v56  ;;  %v5036_v21 = vld [vmem:[#allocation2 + $0xe7] sm:$0xff]  ;;  %v493_v2 = vadd.s32 104, %v4704_v33  ;;  %v6257_v13 = vsel %vm5056_vm14, 4294967295, %v6256_v13  ;;  %v508_v38 = vadd.s32 224, %v4704_v33  ;;  %v5064_v14 = vpack.c.bf16 %v1628_v12, %v5025_v40  ;;  %v405_v19 = vpop.trf.xlu1  ;;  %v373_v20 = vpop.trf.xlu0 }
 0x14a   : > { %6246 = vst [vmem:[#allocation49_spill] sm:$0xff] %v5025_v40  ;;  %6247 = vst [vmem:[#allocation50_spill] sm:$0xff] %v5027_v37  ;;  %v2079_v15 = vld [vmem:[#allocation2 + $0x68] sm:$0xff]  ;;  %v1612_v32 = vsel %vm5038_vm15, %v5034_v7, 0.0  ;;  %v5072_v3 = vpack.c.bf16 %v3060_v31, %v5025_v40  ;;  %v3044_v30 = vsel %vm4853_vm9, %v5034_v7, 0.0  ;;  %v1877_v12 = vsel %vm5056_vm14, %v5036_v21, 0.0 }
 0x14b   : > { %6248 = vst [vmem:[#allocation51_spill] sm:$0xff] %v5030_v58  ;;  %475 = vst.msk [vmem:[#allocation2 + $0xf8] sm:$0xff] %vm6060_vm0, %v404_v39  ;;  %v2095_v39 = vld [vmem:[#allocation2 + $0xe8] sm:$0xff]  ;;  %v6253_v58 = vmov 0  ;;  %vm6263_vm7 = vcmask 130048   ;;  %v5089_v31 = vld [vmem:[#allocation2 + $0x59] sm:$0xff] }
 0x14c   : > { %459 = vst.msk [vmem:[#allocation2 + $0x78] sm:$0xff] %vm6060_vm0, %v372_v47  ;;  %6249 = vst [vmem:[#allocation52_spill] sm:$0xff] %v5034_v7  ;;  %v5050_v47 = vadd.s32 16, %v4704_v33  ;;  %vm5052_vm0 = vcmp.ge.s32.totalorder %v586_v24, 1  ;;  %v5061_v48 = vld [vmem:[#allocation2 + $0x67] sm:$0xff]  ;;  %v2096_v24 = vld [vmem:[#allocation2 + $0xf0] sm:$0xff] }
 0x14d   : > { %6250 = vst [vmem:[#allocation53_spill] sm:$0xff] %v5036_v21  ;;  %v6254_v58 = vsel %vm5052_vm0, 4294967295, %v6253_v58  ;;  %6258 = vst [vmem:[#allocation55_spill] sm:$0xff] %v6257_v13  ;;  %v2080_v34 = vld [vmem:[#allocation2 + $0x70] sm:$0xff]  ;;  %v607_v7 = vand.u32 15, %v493_v2  ;;  %vm5093_vm9 = vcmp.le.s32.totalorder %v719_v55, 14 }
 0x14e   : > { %6255 = vst [vmem:[#allocation54_spill] sm:$0xff] %v6254_v58  ;;  %6259 = vst [vmem:[#allocation56_spill] sm:$0xff] %v5061_v48  ;;  %v5066_v37 = vld [vmem:[#allocation2 + $0xef] sm:$0xff]  ;;  %v5084_v16 = vpack.c.bf16 %v2080_v34, %v2079_v15  ;;  %v5104_v15 = vpack.c.bf16 %v3044_v30, %v5089_v31  ;;  %v712_v34 = vand.u32 15, %v508_v38  ;;  %v511_v2 = vadd.s32 248, %v4704_v33 }
 0x14f   : > { %6260 = vst [vmem:[#allocation57_spill] sm:$0xff] %v5064_v14  ;;  %6261 = vst [vmem:[#allocation58_spill] sm:$0xff] %v5066_v37  ;;  %v5082_v14 = vpack.c.bf16 %v2096_v24, %v2095_v39  ;;  %v5111_v39 = vpack.c.bf16 %v5066_v37, %v1877_v12  ;;  %v1861_v55 = vsel %vm5052_vm0, %v5061_v48, 0.0  ;;  %v406_v24 = vpop.trf.xlu1  ;;  %v5123_v38 = vld [vmem:[#allocation2 + $0xe9] sm:$0xff]  ;;  %v496_v30 = vadd.s32 128, %v4704_v33 }
 0x150   : > { %6262 = vst [vmem:[#allocation59_spill] sm:$0xff] %v5072_v3  ;;  %476 = vst.msk [vmem:[#allocation2 + $0x100] sm:$0xff] %vm6263_vm7, %v405_v19  ;;  %v5091_v3 = vld [vmem:[#allocation2 + $0x6f] sm:$0xff]  ;;  %v5098_v19 = vadd.s32 120, %v4704_v33  ;;  %vm5141_vm14 = vcmp.le.s32.totalorder %v607_v7, 14  ;;  %v5155_v7 = vadd.s32 112, %v4704_v33 }
 0x151   : > { %vm6264_vm6 = vmmov %vm6263_vm7  ;;  %6265 = vst [vmem:[#allocation60_spill] sm:$0xff] %v5082_v14  ;;  %4290 = vmatprep.subr.msk.bf16.mxu0 %vm4721_vm2, %v5082_v14  ;;  %v6284_v58 = vmov 0  ;;  %v733_v46 = vand.u32 15, %v511_v2  ;;  %v628_v9 = vand.u32 15, %v496_v30  ;;  %v6301_v30 = vmov 0  ;;  %v1287_v48 = vld [vmem:[#allocation2 + $0x8] sm:$0xff] }
 0x152   : > { %460 = vst.msk [vmem:[#allocation2 + $0x80] sm:$0xff] %vm6264_vm6, %v373_v20  ;;  %6266 = vst [vmem:[#allocation61_spill] sm:$0xff] %v5084_v16  ;;  %v5101_v20 = vpack.c.bf16 %v1612_v32, %v5089_v31  ;;  %4293 = vmatpush3.bf16.xpose.msk.msra.mxu0 %vm4721_vm2, %v5084_v16  ;;  %v374_v32 = vpop.trf.xlu0  ;;  %vm5127_vm6 = vcmp.ge.s32.totalorder %v600_v35, 1  ;;  %v5139_v14 = vld [vmem:[#allocation2 + $0xf7] sm:$0xff] }
 0x153   : > { %6267 = vst [vmem:[#allocation62_spill] sm:$0xff] %v5089_v31  ;;  %6268 = vst [vmem:[#allocation63_spill] sm:$0xff] %v5091_v3  ;;  %v5137_v16 = vld [vmem:[#allocation2 + $0x71] sm:$0xff]  ;;  %v974_v31 = vld [vmem:[#allocation2 + $0x7] sm:$0xff] }
 0x154   : > { %6271 = vst [vmem:[#allocation64_spill] sm:$0xff] %v5101_v20  ;;  %6272 = vst [vmem:[#allocation65_spill] sm:$0xff] %v5104_v15  ;;  %v5121_v15 = vadd.s32 8, %v4704_v33  ;;  %v5125_v20 = vld [vmem:[#allocation2 + $0xf1] sm:$0xff] }
 0x155   : > { %6273 = vst [vmem:[#allocation66_spill] sm:$0xff] %v5111_v39  ;;  %6274 = vst [vmem:[#allocation67_spill] sm:$0xff] %v5123_v38  ;;  %v5132_v39 = vpack.c.bf16 %v5091_v3, %v1861_v55  ;;  %v1630_v35 = vsel %vm5093_vm9, %v5125_v20, 0.0  ;;  %v3062_v55 = vsel %vm4915_vm12, %v5125_v20, 0.0  ;;  %v510_v3 = vadd.s32 240, %v4704_v33  ;;  %v2081_v37 = vld [vmem:[#allocation2 + $0x78] sm:$0xff] }
 0x156   : > { %6275 = vst [vmem:[#allocation68_spill] sm:$0xff] %v5125_v20  ;;  %477 = vst.msk [vmem:[#allocation2 + $0x108] sm:$0xff] %vm6263_vm7, %v406_v24  ;;  %v2097_v24 = vld [vmem:[#allocation2 + $0xf8] sm:$0xff]  ;;  %v621_v20 = vand.u32 15, %v5098_v19  ;;  %v5165_v13 = vpack.c.bf16 %v1630_v35, %v5123_v38  ;;  %v375_v8 = vpop.trf.xlu0  ;;  %v5173_v52 = vpack.c.bf16 %v3062_v55, %v5123_v38  ;;  %v3046_v19 = vsel %vm4952_vm13, %v5137_v16, 0.0 }
 0x157   : > { %6278 = vst [vmem:[#allocation69_spill] sm:$0xff] %v5132_v39  ;;  %vm6279_vm0 = vmmov %vm6263_vm7  ;;  %v635_v39 = vand.u32 15, %v5087_v1  ;;  %v5161_v21 = vld [vmem:[#allocation2 + $0x77] sm:$0xff]  ;;  %v407_v1 = vpop.trf.xlu1  ;;  %v2098_v45 = vld [vmem:[#allocation2 + $0x100] sm:$0xff]  ;;  %v5188_v55 = vadd.s32 160, %v4704_v33  ;;  %v726_v28 = vand.u32 15, %v510_v3 }
 0x158   : > { %461 = vst.msk [vmem:[#allocation2 + $0x88] sm:$0xff] %vm6279_vm0, %v374_v32  ;;  %6280 = vst [vmem:[#allocation70_spill] sm:$0xff] %v5137_v16  ;;  %v498_v32 = vadd.s32 144, %v4704_v33  ;;  %vm5157_vm0 = vcmp.ge.s32.totalorder %v712_v34, 1  ;;  %v5167_v18 = vld [vmem:[#allocation2 + $0xff] sm:$0xff]  ;;  %v1614_v34 = vsel %vm5141_vm14, %v5137_v16, 0.0  ;;  %v5183_v35 = vpack.c.bf16 %v2098_v45, %v2097_v24 }
 0x159   : > { %6281 = vst [vmem:[#allocation71_spill] sm:$0xff] %v5139_v14  ;;  %v6285_v58 = vsel %vm5157_vm0, 4294967295, %v6284_v58  ;;  %6286 = vst [vmem:[#allocation72_spill] sm:$0xff] %v5161_v21  ;;  %v2082_v43 = vld [vmem:[#allocation2 + $0x80] sm:$0xff]  ;;  %v1879_v2 = vsel %vm5157_vm0, %v5139_v14, 0.0  ;;  %v1070_v33 = vsel %vm4713_vm1, %v974_v31, 0.0 }
 0x15a   : > { %6287 = vst [vmem:[#allocation73_spill] sm:$0xff] %v5165_v13  ;;  %6288 = vst [vmem:[#allocation74_spill] sm:$0xff] %v5167_v18  ;;  %v5185_v13 = vpack.c.bf16 %v2082_v43, %v2081_v37  ;;  %v5192_v38 = vld [vmem:[#allocation2 + $0x7f] sm:$0xff]  ;;  %v642_v16 = vand.u32 15, %v498_v32  ;;  %4296 = vmatprep.subr.msk.bf16.mxu0 %vm4721_vm2, %v5183_v35  ;;  %v6297_v43 = vmov 0  ;;  %v5210_v45 = vpack.c.bf16 %v5167_v18, %v1879_v2 }
 0x15b   : > { %6289 = vst [vmem:[#allocation75_spill] sm:$0xff] %v5173_v52  ;;  %478 = vst.msk [vmem:[#allocation2 + $0x110] sm:$0xff] %vm6263_vm7, %v407_v1  ;;  %v5190_v52 = vld [vmem:[#allocation2 + $0x69] sm:$0xff]  ;;  %v1863_v37 = vsel %vm5127_vm6, %v5161_v21, 0.0  ;;  %v614_v31 = vand.u32 15, %v5155_v7  ;;  %vm5225_vm1 = vcmp.le.s32.totalorder %v621_v20, 14 }
 0x15c   : > { %vm6290_vm12 = vmmov %vm6263_vm7  ;;  %6291 = vst [vmem:[#allocation76_spill] sm:$0xff] %v5183_v35  ;;  %v5195_v14 = vpack.c.bf16 %v1614_v34, %v5190_v52  ;;  %v5198_v1 = vpack.c.bf16 %v3046_v19, %v5190_v52  ;;  %4299 = vmatpush3.bf16.xpose.msk.msra.mxu0 %vm4721_vm2, %v5185_v13  ;;  %vm5218_vm7 = vcmp.le.s32.totalorder %v635_v39, 14  ;;  %v6304_v24 = vmov 0 }
 0x15d   : > { %462 = vst.msk [vmem:[#allocation2 + $0x90] sm:$0xff] %vm6290_vm12, %v375_v8  ;;  %6292 = vst [vmem:[#allocation77_spill] sm:$0xff] %v5185_v13  ;;  %v975_v8 = vld [vmem:[#allocation2 + $0xf] sm:$0xff]  ;;  %vm5205_vm12 = vcmp.le.s32.totalorder %v733_v46, 14  ;;  %v6302_v30 = vsel %vm5218_vm7, 4294967295, %v6301_v30  ;;  %v5222_v46 = vld [vmem:[#allocation2 + $0xf9] sm:$0xff]  ;;  %v5230_v32 = vpack.c.bf16 %v5192_v38, %v1863_v37 }
 0x15e   : > { %6293 = vst [vmem:[#allocation78_spill] sm:$0xff] %v5190_v52  ;;  %6294 = vst [vmem:[#allocation79_spill] sm:$0xff] %v5192_v38  ;;  %v6298_v43 = vsel %vm5205_vm12, 4294967295, %v6297_v43  ;;  %v6305_v24 = vsel %vm5225_vm1, 4294967295, %v6304_v24  ;;  %vm5232_vm0 = vcmp.ge.s32.totalorder %v628_v9, 1  ;;  %v6308_v34 = vmov 0 }
 0x15f   : > { %6295 = vst [vmem:[#allocation80_spill] sm:$0xff] %v5195_v14  ;;  %6296 = vst [vmem:[#allocation81_spill] sm:$0xff] %v5198_v1  ;;  %v990_v3 = vld [vmem:[#allocation2 + $0x87] sm:$0xff]  ;;  %v6309_v34 = vsel %vm5232_vm0, 4294967295, %v6308_v34  ;;  %v656_v39 = vand.u32 15, %v5188_v55  ;;  %v4069_v1 = vpack.c.bf16 %v975_v8, %v1070_v33  ;;  %vm5245_vm13 = vcmp.ge.s32.totalorder %v642_v16, 1 }
 0x160   : > { %6299 = vst [vmem:[#allocation82_spill] sm:$0xff] %v6298_v43  ;;  %6300 = vst [vmem:[#allocation83_spill] sm:$0xff] %v5210_v45  ;;  %v5237_v19 = vld [vmem:[#allocation2 + $0x101] sm:$0xff]  ;;  %v2581_v20 = vsel %vm5127_vm6, %v990_v3, 0.0  ;;  %v6311_v37 = vmov 0  ;;  %vm5249_vm8 = vcmp.ge.s32.totalorder %v726_v28, 1 }
 0x161   : > { %6303 = vst [vmem:[#allocation84_spill] sm:$0xff] %v6302_v30  ;;  %6306 = vst [vmem:[#allocation85_spill] sm:$0xff] %v6305_v24  ;;  %v5239_v2 = vld [vmem:[#allocation2 + $0x81] sm:$0xff]  ;;  %v6312_v37 = vsel %vm5245_vm13, 4294967295, %v6311_v37  ;;  %v1632_v55 = vsel %vm5205_vm12, %v5237_v19, 0.0  ;;  %v2336_v14 = vsel %vm5218_vm7, %v4758_v63, 0.0 }
 0x162   : > { %6307 = vst [vmem:[#allocation86_spill] sm:$0xff] %v5230_v32  ;;  %6310 = vst [vmem:[#allocation87_spill] sm:$0xff] %v5239_v2  ;;  %v5241_v45 = vld [vmem:[#allocation2 + $0x107] sm:$0xff]  ;;  %v1086_v32 = vsel %vm5232_vm0, %v990_v3, 0.0  ;;  %v5261_v8 = vld [vmem:[#allocation2 + $0x79] sm:$0xff]  ;;  %v5264_v16 = vpack.c.bf16 %v1632_v55, %v5222_v46  ;;  %v1616_v28 = vsel %vm5225_vm1, %v5239_v2, 0.0 }
 0x163   : > { %v2099_v7 = vld [vmem:[#allocation2 + $0x108] sm:$0xff]  ;;  %v2100_v35 = vld [vmem:[#allocation2 + $0x110] sm:$0xff]  ;;  %v5272_v41 = vpack.c.bf16 %v1616_v28, %v5261_v8  ;;  %v3064_v63 = vsel %vm5001_vm11, %v5237_v19, 0.0  ;;  %v3048_v3 = vsel %vm5038_vm15, %v5239_v2, 0.0  ;;  %v1881_v55 = vsel %vm5249_vm8, %v5241_v45, 0.0  ;;  %v993_v38 = vld [vmem:[#allocation2 + $0x9f] sm:$0xff] }
 0x164   : > { %6315 = vst [vmem:[#allocation88_spill] sm:$0xff] %v5264_v16  ;;  %v991_v33 = vld [vmem:[#allocation2 + $0x8f] sm:$0xff]  ;;  %v5269_v13 = vld [vmem:[#allocation2 + $0x97] sm:$0xff]  ;;  %v4300_v24 = vpack.c.bf16 %v2100_v35, %v2099_v7  ;;  %v523_v18 = vand.u32 15, %v5121_v15  ;;  %v4306_v35 = vpack.c.bf16 %v2336_v14, %v4756_v62  ;;  %vm5301_vm7 = vcmp.ge.s32.totalorder %v614_v31, 1  ;;  %v5319_v14 = vld [vmem:[#allocation2 + $0xa7] sm:$0xff] }
 0x165   : > { %6316 = vst [vmem:[#allocation89_spill] sm:$0xff] %v5269_v13  ;;  %6317 = vst [vmem:[#allocation90_spill] sm:$0xff] %v5272_v41  ;;  %v4066_v16 = vpack.c.bf16 %v991_v33, %v1086_v32  ;;  %v2083_v28 = vld [vmem:[#allocation2 + $0x88] sm:$0xff]  ;;  %v2084_v41 = vld [vmem:[#allocation2 + $0x90] sm:$0xff]  ;;  %v1088_v21 = vsel %vm5245_vm13, %v5269_v13, 0.0  ;;  %v5294_v32 = vpack.c.bf16 %v991_v33, %v2581_v20  ;;  %v6318_v7 = vmov 0 }
 0x166   : > { %v5289_v43 = vpack.c.bf16 %v2084_v41, %v2083_v28  ;;  %v4072_v2 = vpack.c.bf16 %v993_v38, %v1088_v21  ;;  %v5292_v52 = vld [vmem:[#allocation2 + $0x111] sm:$0xff]  ;;  %4302 = vmatprep.subr.msk.bf16.mxu0 %vm4721_vm2, %v4300_v24  ;;  %v6319_v7 = vsel %vm5301_vm7, 4294967295, %v6318_v7  ;;  %v5310_v41 = vld [vmem:[#allocation2 + $0x109] sm:$0xff]  ;;  %v2583_v62 = vsel %vm5301_vm7, %v5269_v13, 0.0 }
 0x167   : > { %4068 = vmatprep.subr.msk.bf16.mxu1 %vm4721_vm2, %v4066_v16  ;;  %v5312_v21 = vld [vmem:[#allocation2 + $0x91] sm:$0xff]  ;;  %vm5325_vm13 = vcmp.ge.s32.totalorder %v656_v39, 1  ;;  %v5329_v31 = vld [vmem:[#allocation2 + $0x89] sm:$0xff]  ;;  %v5331_v24 = vpack.c.bf16 %v993_v38, %v2583_v62  ;;  %v3066_v20 = vsel %vm5093_vm9, %v5292_v52, 0.0  ;;  %v6322_v16 = vand.u32 15, %v5050_v47 }
 0x168   : > { %4071 = vmatpush3.bf16.xpose.msk.msra.mxu1 %vm4721_vm2, %v4069_v1  ;;  %4305 = vmatpush3.bf16.xpose.msk.msra.mxu0 %vm4721_vm2, %v5289_v43  ;;  %v5314_v15 = vld [vmem:[#allocation2 + $0x10f] sm:$0xff]  ;;  %v6323_v33 = vmov 0  ;;  %vm5342_vm1 = vcmp.le.s32.totalorder %v523_v18, 14  ;;  %v5347_v39 = vpack.c.bf16 %v3064_v63, %v5222_v46  ;;  %v5350_v38 = vpack.c.bf16 %v3048_v3, %v5261_v8 }
 0x169   : > { %4074 = vmatprep.subr.msk.bf16.mxu1 %vm4721_vm2, %v4072_v2  ;;  %4308 = vmatprep.subr.msk.bf16.mxu0 %vm4721_vm2, %v4306_v35  ;;  %vm5338_vm0 = vcmp.ge.s32.totalorder %v6322_v16, 1  ;;  %v6325_v2 = vmov 0  ;;  %v2320_v28 = vsel %vm5342_vm1, %v4760_v0, 0.0  ;;  %v5356_v47 = vpack.c.bf16 %v5314_v15, %v1881_v55  ;;  %v5364_v62 = vld [vmem:[#allocation2 + $0xaf] sm:$0xff] }
 0x16a   : > { %v6324_v33 = vsel %vm5338_vm0, 4294967295, %v6323_v33  ;;  %v6326_v2 = vsel %vm5342_vm1, 4294967295, %v6325_v2  ;;  %6327 = vst [vmem:[#allocation91_spill] sm:$0xff] %v5347_v39  ;;  %6328 = vst [vmem:[#allocation92_spill] sm:$0xff] %v5350_v38  ;;  %v5359_v35 = vpack.c.bf16 %v3066_v20, %v5310_v41  ;;  %v3050_v18 = vsel %vm5141_vm14, %v5312_v21, 0.0  ;;  %v6371_v38 = vld [vmem:[#allocation58_spill] sm:$0xff] }
 0x16b   : > { %6329 = vst [vmem:[#allocation93_spill] sm:$0xff] %v5356_v47  ;;  %v1090_v63 = vsel %vm5325_vm13, %v5319_v14, 0.0  ;;  %v2338_v0 = vsel %vm4746_vm3, %v4797_v23, 0.0  ;;  %v5373_v3 = vpack.c.bf16 %v3050_v18, %v5329_v31  ;;  %v1072_v55 = vsel %vm5338_vm0, %v4717_v42, 0.0  ;;  %v5400_v42 = vld [vmem:[%s6036_s1 + $0x50] sm:$0xff]  ;;  %v5411_v23 = vld [vmem:[#allocation2 + $0xbf] sm:$0xff] }
 0x16c   : > { %6330 = vst [vmem:[#allocation94_spill] sm:$0xff] %v5359_v35  ;;  %v4075_v20 = vpack.c.bf16 %v4725_v50, %v1072_v55  ;;  %v4309_v16 = vpack.c.bf16 %v2320_v28, %v4763_v4  ;;  %vm6332_vm1 = vcmask 130048   ;;  %v4078_v30 = vpack.c.bf16 %v5364_v62, %v1090_v63  ;;  %v5402_v50 = vld [vmem:[#allocation2 + $0x27] sm:$0xff]  ;;  %v5405_v4 = vld [vmem:[#allocation2 + $0x2f] sm:$0xff] }
 0x16d   : > { %6331 = vst [vmem:[#allocation95_spill] sm:$0xff] %v5373_v3  ;;  %v4312_v35 = vpack.c.bf16 %v2338_v0, %v4795_v22  ;;  %v2322_v22 = vsel %vm4750_vm4, %v4802_v25, 0.0  ;;  %vm6333_vm3 = vmmov %vm6332_vm1  ;;  %v2340_v28 = vsel %vm4783_vm5, %v4851_v6, 0.0  ;;  %vm6334_vm0 = vnez %v6197_v59  ;;  %v6338_v6 = vld [vmem:[#allocation25_spill] sm:$0xff]  ;;  %v6340_v55 = vld [vmem:[#allocation15_spill] sm:$0xff] }
 0x16e   : > { %v1074_v61 = vsel %vm6334_vm0, %v5402_v50, 0.0  ;;  %v4318_v63 = vpack.c.bf16 %v2340_v28, %v4849_v5  ;;  %vm6335_vm4 = vnez %v6188_v27  ;;  %vm6336_vm5 = vnez %v6229_v36  ;;  %v6343_v27 = vld [vmem:[#allocation32_spill] sm:$0xff]  ;;  %v6370_v47 = vld [vmem:[#allocation62_spill] sm:$0xff]  ;;  %v6379_v40 = vld [vmem:[#allocation87_spill] sm:$0xff] }
 0x16f   : > { %3919 = vmatmul.mubr.msk.f32.vlgmr.msra.gmra.mrb[0].mxu0 %vm6332_vm1, %v4685_v26  ;;  %v5395_v26 = vld [vmem:[#allocation2 + $0xb7] sm:$0xff]  ;;  %v4081_v25 = vpack.c.bf16 %v5405_v4, %v1074_v61  ;;  %v2324_v17 = vsel %vm6335_vm4, %v4862_v10, 0.0  ;;  %v6373_v54 = vld [vmem:[#allocation70_spill] sm:$0xff]  ;;  %v2332_v12 = vsel %vm5141_vm14, %v6379_v40, 0.0  ;;  %vm6387_vm14 = vcmask 130048  }
 0x170   : > { %4077 = vmatpush3.bf16.xpose.msk.msra.mxu1 %vm4721_vm2, %v4075_v20  ;;  %4311 = vmatpush3.bf16.xpose.msk.msra.mxu0 %vm4721_vm2, %v4309_v16  ;;  %v6341_v16 = vld [vmem:[#allocation26_spill] sm:$0xff]  ;;  %v6347_v61 = vld [vmem:[#allocation35_spill] sm:$0xff] }
 0x171   : > { %4080 = vmatprep.subr.msk.bf16.mxu1 %vm4721_vm2, %v4078_v30  ;;  %4314 = vmatprep.subr.msk.bf16.mxu0 %vm4721_vm2, %v4312_v35  ;;  %v1092_v30 = vsel %vm4876_vm10, %v5395_v26, 0.0  ;;  %v4315_v35 = vpack.c.bf16 %v2322_v22, %v4825_v49  ;;  %v1094_v49 = vsel %vm6336_vm5, %v4864_v11, 0.0  ;;  %v6342_v22 = vld [vmem:[#allocation21_spill] sm:$0xff]  ;;  %v1103_v40 = vld [vmem:[%s6036_s1 + $0x8] sm:$0xff] }
 0x172   : > { %3920 = vmatprep.mubr.msk.f32.mxu0 %vm6332_vm1, %v3557_v60  ;;  %v4084_v18 = vpack.c.bf16 %v5411_v23, %v1092_v30  ;;  %v4090_v30 = vpack.c.bf16 %v6342_v22, %v1094_v49  ;;  %v6353_v49 = vld [vmem:[#allocation19_spill] sm:$0xff]  ;;  %v6449_v1 = vld [vmem:[#allocation22_spill] sm:$0xff] }
 0x173   : > { %3921 = vmatmul.mubr.msk.f32.gmra.mrb[2].mxu0 %vm6333_vm3, %v3557_v60  ;;  %vm6337_vm3 = vnez %v6194_v53  ;;  %v4321_v60 = vpack.c.bf16 %v2324_v17, %v6341_v16  ;;  %v6344_v53 = vld [vmem:[#allocation34_spill] sm:$0xff] }
 0x174   : > { %3954 = vmatprep.mubr.msk.f32.mxu0 %vm6332_vm1, %v5400_v42  ;;  %v2342_v5 = vsel %vm6337_vm3, %v4940_v57, 0.0  ;;  %vm6339_vm1 = vnez %v6338_v6  ;;  %v6345_v57 = vld [vmem:[#allocation17_spill] sm:$0xff]  ;;  %v1505_v9 = vld [vmem:[#allocation2 + $0x9] sm:$0xff] }
 0x175   : > { %v1076_v0 = vsel %vm6339_vm1, %v4827_v51, 0.0  ;;  %v4324_v10 = vpack.c.bf16 %v2342_v5, %v6343_v27  ;;  %vm6346_vm4 = vnez %v6345_v57  ;;  %v6354_v5 = vld [vmem:[#allocation37_spill] sm:$0xff]  ;;  %v6358_v27 = vld [vmem:[#allocation40_spill] sm:$0xff] }
 0x176   : > { %v4087_v20 = vpack.c.bf16 %v6340_v55, %v1076_v0  ;;  %v2326_v28 = vsel %vm6346_vm4, %v6344_v53, 0.0  ;;  %vm6355_vm5 = vnez %v6354_v5  ;;  %v6359_v57 = vld [vmem:[#allocation49_spill] sm:$0xff]  ;;  %vm6364_vm4 = vnez %v6285_v58  ;;  %v2567_v58 = vld [vmem:[#allocation2 + $0x117] sm:$0xff] }
 0x177   : > { %v1078_v0 = vsel %vm6355_vm5, %v6353_v49, 0.0 }
 0x178   : > { %4083 = vmatpush3.bf16.xpose.msk.msra.mxu1 %vm4721_vm2, %v4081_v25  ;;  %4317 = vmatpush3.bf16.xpose.msk.msra.mxu0 %vm4721_vm2, %v4315_v35  ;;  %v6348_v25 = vld [vmem:[#allocation55_spill] sm:$0xff] }
 0x179   : > { %4086 = vmatprep.subr.msk.bf16.mxu1 %vm4721_vm2, %v4084_v18  ;;  %4320 = vmatprep.subr.msk.bf16.mxu0 %vm4721_vm2, %v4318_v63  ;;  %vm6349_vm3 = vnez %v6348_v25  ;;  %v6350_v18 = vld [vmem:[#allocation50_spill] sm:$0xff]  ;;  %v6351_v63 = vld [vmem:[#allocation28_spill] sm:$0xff]  ;;  %v2597_v25 = vsel %vm6364_vm4, %v5241_v45, 0.0 }
 0x17a   : > { %v1096_v35 = vsel %vm6349_vm3, %v6347_v61, 0.0  ;;  %vm6352_vm1 = vnez %v6351_v63  ;;  %v6361_v63 = vld [vmem:[#allocation36_spill] sm:$0xff] }
 0x17b   : > { %v2344_v17 = vsel %vm6352_vm1, %v6350_v18, 0.0  ;;  %v6360_v18 = vld [vmem:[#allocation52_spill] sm:$0xff]  ;;  %vm6362_vm1 = vnez %v6361_v63  ;;  %v6372_v63 = vld [vmem:[#allocation67_spill] sm:$0xff] }
 0x17c   : > { %v4330_v53 = vpack.c.bf16 %v2344_v17, %v6359_v57  ;;  %v6365_v17 = vld [vmem:[#allocation68_spill] sm:$0xff] }
 0x17d   : > { %v6415_v45 = vld [vmem:[#allocation84_spill] sm:$0xff] }
 0x180   : > { %4089 = vmatpush3.bf16.xpose.msk.msra.mxu1 %vm4721_vm2, %v4087_v20  ;;  %4323 = vmatpush3.bf16.xpose.msk.msra.mxu0 %vm4721_vm2, %v4321_v60  ;;  %v6356_v20 = vld [vmem:[#allocation27_spill] sm:$0xff]  ;;  %v6357_v60 = vld [vmem:[#allocation44_spill] sm:$0xff] }
 0x181   : > { %4092 = vmatprep.subr.msk.bf16.mxu1 %vm4721_vm2, %v4090_v30  ;;  %4326 = vmatprep.subr.msk.bf16.mxu0 %vm4721_vm2, %v4324_v10  ;;  %v4093_v16 = vpack.c.bf16 %v6356_v20, %v1078_v0  ;;  %v4327_v30 = vpack.c.bf16 %v2326_v28, %v6357_v60  ;;  %v4096_v10 = vpack.c.bf16 %v6358_v27, %v1096_v35  ;;  %v2328_v28 = vsel %vm6362_vm1, %v6360_v18, 0.0  ;;  %v6363_v0 = vld [vmem:[#allocation53_spill] sm:$0xff]  ;;  %v6366_v60 = vld [vmem:[#allocation38_spill] sm:$0xff] }
 0x182   : > { %v1098_v35 = vsel %vm6364_vm4, %v6363_v0, 0.0  ;;  %vm6391_vm1 = vnez %v6312_v37  ;;  %v3006_v37 = vld [vmem:[#allocation2 + $0x31] sm:$0xff] }
 0x183   : > { %v4102_v39 = vpack.c.bf16 %v6371_v38, %v1098_v35 }
 0x188   : > { %4095 = vmatpush3.bf16.xpose.msk.msra.mxu1 %vm4721_vm2, %v4093_v16  ;;  %4329 = vmatpush3.bf16.xpose.msk.msra.mxu0 %vm4721_vm2, %v4327_v30  ;;  %v2346_v16 = vsel %vm5001_vm11, %v6365_v17, 0.0  ;;  %v6367_v30 = vld [vmem:[#allocation54_spill] sm:$0xff]  ;;  %v6375_v17 = vld [vmem:[#allocation56_spill] sm:$0xff]  ;;  %vm6385_vm11 = vnez %v6309_v34  ;;  %v2802_v34 = vld [vmem:[#allocation2 + $0xa0] sm:$0xff] }
 0x189   : > { %4098 = vmatprep.subr.msk.bf16.mxu1 %vm4721_vm2, %v4096_v10  ;;  %4332 = vmatprep.subr.msk.bf16.mxu0 %vm4721_vm2, %v4330_v53  ;;  %vm6368_vm5 = vnez %v6367_v30  ;;  %v6369_v10 = vld [vmem:[#allocation45_spill] sm:$0xff]  ;;  %v4333_v53 = vpack.c.bf16 %v2328_v28, %v6370_v47  ;;  %v4336_v18 = vpack.c.bf16 %v2346_v16, %v6372_v63  ;;  %v2330_v47 = vsel %vm5038_vm15, %v6373_v54, 0.0  ;;  %v6374_v28 = vld [vmem:[#allocation71_spill] sm:$0xff]  ;;  %v6381_v54 = vld [vmem:[#allocation72_spill] sm:$0xff] }
 0x18a   : > { %v1080_v57 = vsel %vm6368_vm5, %v6366_v60, 0.0  ;;  %v1100_v35 = vsel %vm5249_vm8, %v6374_v28, 0.0  ;;  %v1082_v16 = vsel %vm5127_vm6, %v6375_v17, 0.0  ;;  %vm6389_vm15 = vmmov %vm6387_vm14 }
 0x18b   : > { %v4099_v3 = vpack.c.bf16 %v6369_v10, %v1080_v57  ;;  %vm6390_vm6 = vmmov %vm6387_vm14 }
 0x190   : > { %4101 = vmatpush3.bf16.xpose.msk.msra.mxu1 %vm4721_vm2, %v4099_v3  ;;  %4335 = vmatpush3.bf16.xpose.msk.msra.mxu0 %vm4721_vm2, %v4333_v53  ;;  %v2348_v3 = vsel %vm5093_vm9, %v5237_v19, 0.0  ;;  %v6377_v53 = vld [vmem:[#allocation78_spill] sm:$0xff]  ;;  %v3019_v19 = vld [vmem:[#allocation2 + $0x99] sm:$0xff] }
 0x191   : > { %4104 = vmatprep.subr.msk.bf16.mxu1 %vm4721_vm2, %v4102_v39  ;;  %4338 = vmatprep.subr.msk.bf16.mxu0 %vm4721_vm2, %v4336_v18  ;;  %v6376_v39 = vld [vmem:[#allocation63_spill] sm:$0xff]  ;;  %v4339_v63 = vpack.c.bf16 %v2330_v47, %v6377_v53  ;;  %v6378_v18 = vld [vmem:[#allocation74_spill] sm:$0xff]  ;;  %v4342_v56 = vpack.c.bf16 %v2348_v3, %v5222_v46  ;;  %v2350_v46 = vsel %vm5205_vm12, %v5292_v52, 0.0  ;;  %v1084_v47 = vsel %vm5301_vm7, %v6381_v54, 0.0  ;;  %vm6395_vm7 = vmmov %vm6390_vm6 }
 0x192   : > { %v4105_v57 = vpack.c.bf16 %v6376_v39, %v1082_v16  ;;  %v4108_v13 = vpack.c.bf16 %v6378_v18, %v1100_v35  ;;  %v6382_v35 = vld [vmem:[#allocation79_spill] sm:$0xff]  ;;  %v4345_v16 = vpack.c.bf16 %v2332_v12, %v5261_v8  ;;  %v6388_v12 = vld [vmem:[#allocation5_spill] sm:$0xff] }
 0x193   : > { %v4111_v3 = vpack.c.bf16 %v6382_v35, %v1084_v47  ;;  %v1288_v52 = vld [vmem:[#allocation2 + $0x10] sm:$0xff] }
 0x194   : > { %v4117_v53 = vpack.c.bf16 %v1288_v52, %v1287_v48  ;;  %v6396_v48 = vld [vmem:[#allocation6_spill] sm:$0xff] }
 0x198   : > { %4107 = vmatpush3.bf16.xpose.msk.msra.mxu1 %vm4721_vm2, %v4105_v57  ;;  %4341 = vmatpush3.bf16.xpose.msk.msra.mxu0 %vm4721_vm2, %v4339_v63  ;;  %v6383_v57 = vld [vmem:[#allocation85_spill] sm:$0xff] }
 0x199   : > { %4110 = vmatprep.subr.msk.bf16.mxu1 %vm4721_vm2, %v4108_v13  ;;  %4344 = vmatprep.subr.msk.bf16.mxu0 %vm4721_vm2, %v4342_v56  ;;  %v4348_v13 = vpack.c.bf16 %v2350_v46, %v5310_v41  ;;  %vm6384_vm9 = vnez %v6383_v57  ;;  %v2585_v41 = vsel %vm6385_vm11, %v5319_v14, 0.0  ;;  %v6386_v56 = vld [vmem:[#allocation3_spill] sm:$0xff]  ;;  %v6393_v46 = vld [vmem:[#allocation4_spill] sm:$0xff] }
 0x19a   : > { %v2334_v8 = vsel %vm6384_vm9, %v5312_v21, 0.0  ;;  %v5578_v14 = vld [vmem:[%s6036_s1 + $0x10] sm:$0xff]  ;;  %vm6394_vm9 = vnez %v6393_v46 }
 0x19b   : > { %v4351_v63 = vpack.c.bf16 %v2334_v8, %v5329_v31  ;;  %v2569_v47 = vsel %vm6394_vm9, %v5402_v50, 0.0  ;;  %vm6399_vm9 = vmmov %vm6390_vm6  ;;  %v2589_v50 = vsel %vm5325_vm13, %v4864_v11, 0.0  ;;  %v6402_v8 = vld [vmem:[#allocation11_spill] sm:$0xff]  ;;  %v2573_v11 = vsel %vm6334_vm0, %v6353_v49, 0.0 }
 0x19c   : > { %v4366_v52 = vpack.c.bf16 %v6342_v22, %v2589_v50  ;;  %vm6407_vm0 = vnez %v6338_v6  ;;  %v3629_v50 = vld [vmem:[%s6036_s1 + $0x68] sm:$0xff] }
 0x19d   : > { %v2575_v29 = vsel %vm6407_vm0, %v6366_v60, 0.0  ;;  %v6411_v60 = vld [vmem:[#allocation43_spill] sm:$0xff] }
 0x1a0   : > { %4113 = vmatpush3.bf16.xpose.msk.msra.mxu1 %vm4721_vm2, %v4111_v3  ;;  %4347 = vmatpush3.bf16.xpose.msk.msra.mxu0 %vm4721_vm2, %v4345_v16  ;;  %v4357_v3 = vpack.c.bf16 %v5405_v4, %v2569_v47  ;;  %v6420_v47 = vld [vmem:[#allocation8_spill] sm:$0xff] }
 0x1a1   : > { %4116 = vmatprep.subr.msk.bf16.mxu1 %vm4721_vm2, %v5289_v43  ;;  %4350 = vmatprep.subr.msk.bf16.mxu0 %vm4721_vm2, %v4348_v13  ;;  %v4354_v43 = vpack.c.bf16 %v5364_v62, %v2585_v41  ;;  %v2587_v62 = vsel %vm6391_vm1, %v5395_v26, 0.0  ;;  %v3593_v13 = vld [vmem:[%s6036_s1 + $0x58] sm:$0xff]  ;;  %v6397_v26 = vld [vmem:[#allocation10_spill] sm:$0xff]  ;;  %v6403_v41 = vld [vmem:[#allocation13_spill] sm:$0xff] }
 0x1a2   : > { %v4360_v16 = vpack.c.bf16 %v5411_v23, %v2587_v62 }
 0x1a7   : > { %3775 = vmatmul.mubr.msk.f32.vlgmr.msra.gmra.mrb[0].mxu1 %vm6387_vm14, %v6386_v56  ;;  %vm6392_vm14 = vmmov %vm6390_vm6 }
 0x1a8   : > { %4119 = vmatpush3.bf16.xpose.msk.msra.mxu1 %vm4721_vm2, %v4117_v53  ;;  %4353 = vmatpush3.bf16.xpose.msk.msra.mxu0 %vm4721_vm2, %v4351_v63  ;;  %v6404_v53 = vld [vmem:[#allocation14_spill] sm:$0xff]  ;;  %v6405_v63 = vld [vmem:[#allocation23_spill] sm:$0xff] }
 0x1a9   : > { %4122 = vmatprep.subr.msk.bf16.mxu1 %vm4721_vm2, %v6388_v12  ;;  %4356 = vmatprep.subr.msk.bf16.mxu0 %vm4721_vm2, %v4354_v43  ;;  %v6417_v43 = vld [vmem:[#allocation77_spill] sm:$0xff]  ;;  %v2804_v12 = vld [vmem:[#allocation2 + $0xb0] sm:$0xff] }
 0x1aa   : > { %3776 = vmatprep.mubr.msk.f32.mxu1 %vm6389_vm15, %v1103_v40  ;;  %vm6400_vm15 = vmmov %vm6390_vm6 }
 0x1ab   : > { %3777 = vmatmul.mubr.msk.f32.gmra.mrb[2].mxu1 %vm6390_vm6, %v1103_v40  ;;  %v1506_v40 = vld [vmem:[#allocation2 + $0x11] sm:$0xff] }
 0x1ac   : > { %3810 = vmatprep.mubr.msk.f32.mxu1 %vm6392_vm14, %v5578_v14  ;;  %vm6410_vm14 = vnez %v6354_v5  ;;  %v2579_v5 = vsel %vm6368_vm5, %v6381_v54, 0.0  ;;  %vm6416_vm5 = vnez %v6415_v45  ;;  %v2599_v54 = vsel %vm5249_vm8, %v2567_v58, 0.0  ;;  %v2795_v58 = vld [vmem:[#allocation2 + $0x68] sm:$0xff]  ;;  %v1839_v45 = vld [vmem:[#allocation2 + $0xb7] sm:$0xff] }
 0x1ad   : > { %v1618_v30 = vsel %vm6416_vm5, %v5312_v21, 0.0  ;;  %vm6418_vm8 = vnez %v6326_v2  ;;  %v3665_v2 = vld [vmem:[%s6036_s1 + $0x78] sm:$0xff] }
 0x1ae   : > { %v1602_v21 = vsel %vm6418_vm8, %v1506_v40, 0.0  ;;  %v2816_v40 = vld [vmem:[#allocation2 + $0x110] sm:$0xff] }
 0x1af   : > { %3955 = vmatmul.mubr.msk.f32.vlgmr.msra.gmra.mrb[0].mxu0 %vm6395_vm7, %v5400_v42  ;;  %v5610_v42 = vld [vmem:[%s6036_s1 + $0x60] sm:$0xff]  ;;  %vm6398_vm7 = vmmov %vm6390_vm6  ;;  %vm6401_vm6 = vnez %v6324_v33  ;;  %v4165_v62 = vpack.c.bf16 %v1602_v21, %v1505_v9  ;;  %v2797_v9 = vld [vmem:[#allocation2 + $0x78] sm:$0xff] }
 0x1b0   : > { %4125 = vmatpush3.bf16.xpose.msk.msra.mxu1 %vm4721_vm2, %v6396_v48  ;;  %4359 = vmatpush3.bf16.xpose.msk.msra.mxu0 %vm4721_vm2, %v4357_v3  ;;  %v2571_v4 = vsel %vm6401_vm6, %v4827_v51, 0.0  ;;  %v2591_v51 = vsel %vm4876_vm10, %v6347_v61, 0.0  ;;  %vm6406_vm10 = vnez %v6229_v36  ;;  %v4375_v61 = vpack.c.bf16 %v6369_v10, %v2575_v29  ;;  %v6412_v10 = vld [vmem:[#allocation60_spill] sm:$0xff]  ;;  %v2788_v3 = vld [vmem:[#allocation2 + $0x30] sm:$0xff]  ;;  %v2810_v29 = vld [vmem:[#allocation2 + $0xe0] sm:$0xff] }
 0x1b1   : > { %4128 = vmatprep.subr.msk.bf16.mxu1 %vm4721_vm2, %v6397_v26  ;;  %4362 = vmatprep.subr.msk.bf16.mxu0 %vm4721_vm2, %v4360_v16  ;;  %v4363_v23 = vpack.c.bf16 %v6340_v55, %v2571_v4  ;;  %v4369_v55 = vpack.c.bf16 %v6356_v20, %v2573_v11  ;;  %v4372_v22 = vpack.c.bf16 %v6358_v27, %v2591_v51  ;;  %v2593_v59 = vsel %vm6406_vm10, %v6363_v0, 0.0  ;;  %v6408_v20 = vld [vmem:[#allocation24_spill] sm:$0xff]  ;;  %v6409_v27 = vld [vmem:[#allocation42_spill] sm:$0xff]  ;;  %v6425_v4 = vld [vmem:[#allocation9_spill] sm:$0xff] }
 0x1b2   : > { %3956 = vmatprep.mubr.msk.f32.mxu0 %vm6398_vm7, %v3593_v13  ;;  %v4378_v49 = vpack.c.bf16 %v6371_v38, %v2593_v59  ;;  %v2595_v36 = vsel %vm6349_vm3, %v6374_v28, 0.0  ;;  %v2577_v38 = vsel %vm6410_vm14, %v6375_v17, 0.0  ;;  %v4387_v28 = vpack.c.bf16 %v6382_v35, %v2579_v5  ;;  %vm6419_vm3 = vmmov %vm6398_vm7  ;;  %v2805_v16 = vld [vmem:[#allocation2 + $0xb8] sm:$0xff]  ;;  %v6434_v5 = vld [vmem:[#allocation46_spill] sm:$0xff] }
 0x1b3   : > { %3957 = vmatmul.mubr.msk.f32.gmra.mrb[2].mxu0 %vm6399_vm9, %v3593_v13  ;;  %v4381_v6 = vpack.c.bf16 %v6376_v39, %v2577_v38  ;;  %v4384_v0 = vpack.c.bf16 %v6378_v18, %v2595_v36  ;;  %v4390_v17 = vpack.c.bf16 %v5314_v15, %v2597_v25  ;;  %v6413_v39 = vld [vmem:[#allocation61_spill] sm:$0xff]  ;;  %v6414_v18 = vld [vmem:[#allocation76_spill] sm:$0xff]  ;;  %v4162_v35 = vpack.c.bf16 %v1618_v30, %v5329_v31  ;;  %v2803_v31 = vld [vmem:[#allocation2 + $0xa8] sm:$0xff] }
 0x1b4   : > { %3990 = vmatprep.mubr.msk.f32.mxu0 %vm6400_vm15, %v5610_v42  ;;  %v2568_v15 = vld [vmem:[#allocation2 + $0x11f] sm:$0xff]  ;;  %v4402_v46 = vpack.c.bf16 %v2804_v12, %v2803_v31  ;;  %vm6421_vm4 = vmmov %vm6419_vm3  ;;  %v6433_v36 = vld [vmem:[#allocation39_spill] sm:$0xff] }
 0x1b5   : > { %v4396_v56 = vpack.c.bf16 %v2568_v15, %v2599_v54  ;;  %vm6422_vm7 = vmmov %vm6419_vm3  ;;  %v2806_v13 = vld [vmem:[#allocation2 + $0xc0] sm:$0xff]  ;;  %v2789_v51 = vld [vmem:[#allocation2 + $0x38] sm:$0xff] }
 0x1b6   : > { %vm6423_vm9 = vmmov %vm6419_vm3  ;;  %v4408_v26 = vpack.c.bf16 %v2806_v13, %v2805_v16  ;;  %v2809_v59 = vld [vmem:[#allocation2 + $0xd8] sm:$0xff]  ;;  %v2794_v38 = vld [vmem:[#allocation2 + $0x60] sm:$0xff] }
 0x1b7   : > { %vm6424_vm15 = vmmov %vm6419_vm3  ;;  %v6436_v54 = vld [vmem:[#allocation64_spill] sm:$0xff]  ;;  %v3700_v33 = vld [vmem:[%s6036_s1 + $0x80] sm:$0xff] }
 0x1b8   : > { %4131 = vmatpush3.bf16.xpose.msk.msra.mxu1 %vm4721_vm2, %v6402_v8  ;;  %4365 = vmatpush3.bf16.xpose.msk.msra.mxu0 %vm4721_vm2, %v4363_v23  ;;  %v6426_v23 = vld [vmem:[#allocation12_spill] sm:$0xff]  ;;  %vm6427_vm10 = vmmov %vm6419_vm3  ;;  %v2807_v8 = vld [vmem:[#allocation2 + $0xc8] sm:$0xff] }
 0x1b9   : > { %4134 = vmatprep.subr.msk.bf16.mxu1 %vm4721_vm2, %v6403_v41  ;;  %4368 = vmatprep.subr.msk.bf16.mxu0 %vm4721_vm2, %v4366_v52  ;;  %v2790_v52 = vld [vmem:[#allocation2 + $0x40] sm:$0xff]  ;;  %vm6428_vm0 = vmmov %vm6419_vm3  ;;  %v2808_v41 = vld [vmem:[#allocation2 + $0xd0] sm:$0xff] }
 0x1ba   : > { %vm6429_vm14 = vmmov %vm6428_vm0  ;;  %v4411_v11 = vpack.c.bf16 %v2790_v52, %v2789_v51  ;;  %v6438_v12 = vld [vmem:[#allocation80_spill] sm:$0xff] }
 0x1bb   : > { %v3022_v52 = vld [vmem:[#allocation2 + $0xb1] sm:$0xff] }
 0x1c0   : > { %4137 = vmatpush3.bf16.xpose.msk.msra.mxu1 %vm4721_vm2, %v6404_v53  ;;  %4371 = vmatpush3.bf16.xpose.msk.msra.mxu0 %vm4721_vm2, %v4369_v55  ;;  %v4414_v55 = vpack.c.bf16 %v2808_v41, %v2807_v8  ;;  %v6431_v53 = vld [vmem:[#allocation20_spill] sm:$0xff]  ;;  %v1838_v41 = vld [vmem:[#allocation2 + $0xaf] sm:$0xff] }
 0x1c1   : > { %4140 = vmatprep.subr.msk.bf16.mxu1 %vm4721_vm2, %v6405_v63  ;;  %4374 = vmatprep.subr.msk.bf16.mxu0 %vm4721_vm2, %v4372_v22  ;;  %v6430_v22 = vld [vmem:[#allocation16_spill] sm:$0xff]  ;;  %v2792_v63 = vld [vmem:[#allocation2 + $0x50] sm:$0xff] }
 0x1c2   : > { %v2801_v8 = vld [vmem:[#allocation2 + $0x98] sm:$0xff] }
 0x1c8   : > { %4143 = vmatpush3.bf16.xpose.msk.msra.mxu1 %vm4721_vm2, %v6408_v20  ;;  %4377 = vmatpush3.bf16.xpose.msk.msra.mxu0 %vm4721_vm2, %v4375_v61  ;;  %v2791_v61 = vld [vmem:[#allocation2 + $0x48] sm:$0xff]  ;;  %v4420_v20 = vpack.c.bf16 %v2810_v29, %v2809_v59  ;;  %v6444_v29 = vld [vmem:[#allocation7_spill] sm:$0xff] }
 0x1c9   : > { %4146 = vmatprep.subr.msk.bf16.mxu1 %vm4721_vm2, %v6409_v27  ;;  %4380 = vmatprep.subr.msk.bf16.mxu0 %vm4721_vm2, %v4378_v49  ;;  %v4417_v49 = vpack.c.bf16 %v2792_v63, %v2791_v61  ;;  %v6432_v27 = vld [vmem:[#allocation29_spill] sm:$0xff]  ;;  %v3485_v59 = vld [vmem:[%s6036_s1 + $0x28] sm:$0xff] }
 0x1ca   : > { %v1821_v61 = vld [vmem:[#allocation2 + $0x27] sm:$0xff] }
 0x1d0   : > { %4149 = vmatpush3.bf16.xpose.msk.msra.mxu1 %vm4721_vm2, %v6411_v60  ;;  %4383 = vmatpush3.bf16.xpose.msk.msra.mxu0 %vm4721_vm2, %v4381_v6  ;;  %v2811_v6 = vld [vmem:[#allocation2 + $0xe8] sm:$0xff]  ;;  %v2793_v60 = vld [vmem:[#allocation2 + $0x58] sm:$0xff] }
 0x1d1   : > { %4152 = vmatprep.subr.msk.bf16.mxu1 %vm4721_vm2, %v6412_v10  ;;  %4386 = vmatprep.subr.msk.bf16.mxu0 %vm4721_vm2, %v4384_v0  ;;  %v2812_v0 = vld [vmem:[#allocation2 + $0xf0] sm:$0xff]  ;;  %v4423_v10 = vpack.c.bf16 %v2794_v38, %v2793_v60  ;;  %v1853_v38 = vsel %vm6401_vm6, %v1821_v61, 0.0  ;;  %vm6451_vm6 = vmmov %vm6428_vm0 }
 0x1d2   : > { %v4426_v25 = vpack.c.bf16 %v2812_v0, %v2811_v6  ;;  %v3005_v6 = vld [vmem:[#allocation2 + $0x29] sm:$0xff] }
 0x1d8   : > { %4155 = vmatpush3.bf16.xpose.msk.msra.mxu1 %vm4721_vm2, %v6413_v39  ;;  %4389 = vmatpush3.bf16.xpose.msk.msra.mxu0 %vm4721_vm2, %v4387_v28  ;;  %v6435_v28 = vld [vmem:[#allocation57_spill] sm:$0xff]  ;;  %v2813_v39 = vld [vmem:[#allocation2 + $0xf8] sm:$0xff] }
 0x1d9   : > { %4158 = vmatprep.subr.msk.bf16.mxu1 %vm4721_vm2, %v6414_v18  ;;  %4392 = vmatprep.subr.msk.bf16.mxu0 %vm4721_vm2, %v4390_v17  ;;  %v2796_v17 = vld [vmem:[#allocation2 + $0x70] sm:$0xff]  ;;  %v2814_v18 = vld [vmem:[#allocation2 + $0x100] sm:$0xff] }
 0x1da   : > { %v4429_v30 = vpack.c.bf16 %v2796_v17, %v2795_v58  ;;  %v4432_v15 = vpack.c.bf16 %v2814_v18, %v2813_v39  ;;  %v6457_v17 = vld [vmem:[#allocation33_spill] sm:$0xff]  ;;  %v6458_v39 = vld [vmem:[#allocation47_spill] sm:$0xff]  ;;  %v6459_v18 = vld [vmem:[#allocation48_spill] sm:$0xff] }
 0x1db   : > { %v6460_v58 = vld [vmem:[#allocation59_spill] sm:$0xff] }
 0x1e0   : > { %4161 = vmatpush3.bf16.xpose.msk.msra.mxu1 %vm4721_vm2, %v6417_v43  ;;  %4395 = vmatpush3.bf16.xpose.msk.msra.mxu0 %vm4721_vm2, %v5294_v32  ;;  %v3449_v32 = vld [vmem:[%s6036_s1 + $0x18] sm:$0xff]  ;;  %v2815_v43 = vld [vmem:[#allocation2 + $0x108] sm:$0xff] }
 0x1e1   : > { %4164 = vmatprep.subr.msk.bf16.mxu1 %vm4721_vm2, %v4162_v35  ;;  %4398 = vmatprep.subr.msk.bf16.mxu0 %vm4721_vm2, %v4396_v56  ;;  %v6437_v35 = vld [vmem:[#allocation73_spill] sm:$0xff]  ;;  %v4438_v31 = vpack.c.bf16 %v2816_v40, %v2815_v43  ;;  %v6467_v40 = vld [vmem:[#allocation83_spill] sm:$0xff] }
 0x1e2   : > { %v2798_v56 = vld [vmem:[#allocation2 + $0x80] sm:$0xff] }
 0x1e3   : > { %v4435_v21 = vpack.c.bf16 %v2798_v56, %v2797_v9  ;;  %v6465_v56 = vld [vmem:[#allocation69_spill] sm:$0xff]  ;;  %v6468_v9 = vld [vmem:[#allocation91_spill] sm:$0xff] }
 0x1e4   : > { %v6466_v43 = vld [vmem:[#allocation81_spill] sm:$0xff] }
 0x1e7   : > { %3811 = vmatmul.mubr.msk.f32.vlgmr.msra.gmra.mrb[0].mxu1 %vm6419_vm3, %v5578_v14  ;;  %v5742_v14 = vld [vmem:[%s6036_s1 + $0x20] sm:$0xff]  ;;  %vm6447_vm3 = vmmov %vm6428_vm0 }
 0x1e8   : > { %4167 = vmatpush3.bf16.xpose.msk.msra.mxu1 %vm4721_vm2, %v4165_v62  ;;  %4401 = vmatpush3.bf16.xpose.msk.msra.mxu0 %vm4721_vm2, %v5331_v24  ;;  %v2787_v24 = vld [vmem:[#allocation2 + $0x28] sm:$0xff]  ;;  %v6439_v62 = vld [vmem:[#allocation88_spill] sm:$0xff] }
 0x1e9   : > { %4170 = vmatprep.subr.msk.bf16.mxu1 %vm4721_vm2, %v6420_v47  ;;  %4404 = vmatprep.subr.msk.bf16.mxu0 %vm4721_vm2, %v4402_v46  ;;  %v4405_v48 = vpack.c.bf16 %v2788_v3, %v2787_v24  ;;  %v2817_v46 = vld [vmem:[#allocation2 + $0x118] sm:$0xff]  ;;  %v2800_v47 = vld [vmem:[#allocation2 + $0x90] sm:$0xff]  ;;  %v2799_v3 = vld [vmem:[#allocation2 + $0x88] sm:$0xff] }
 0x1ea   : > { %3812 = vmatprep.mubr.msk.f32.mxu1 %vm6421_vm4, %v3449_v32  ;;  %v4441_v13 = vpack.c.bf16 %v2800_v47, %v2799_v3  ;;  %v1836_v24 = vld [vmem:[#allocation2 + $0x9f] sm:$0xff]  ;;  %vm6448_vm4 = vmmov %vm6428_vm0 }
 0x1eb   : > { %3813 = vmatmul.mubr.msk.f32.gmra.mrb[2].mxu1 %vm6422_vm7, %v3449_v32  ;;  %v2818_v32 = vld [vmem:[#allocation2 + $0x120] sm:$0xff]  ;;  %vm6473_vm7 = vnez %v6319_v7 }
 0x1ec   : > { %3846 = vmatprep.mubr.msk.f32.mxu1 %vm6423_vm9, %v5742_v14  ;;  %v4444_v16 = vpack.c.bf16 %v2818_v32, %v2817_v46  ;;  %v6472_v46 = vld [vmem:[#allocation94_spill] sm:$0xff]  ;;  %v3035_v47 = vld [vmem:[#allocation2 + $0x119] sm:$0xff]  ;;  %vm6476_vm9 = vmmov %vm6428_vm0 }
 0x1ed   : > { %v1833_v32 = vld [vmem:[#allocation2 + $0x87] sm:$0xff] }
 0x1ef   : > { %3991 = vmatmul.mubr.msk.f32.vlgmr.msra.gmra.mrb[0].mxu0 %vm6424_vm15, %v5610_v42  ;;  %v5766_v42 = vld [vmem:[%s6036_s1 + $0x70] sm:$0xff]  ;;  %vm6477_vm15 = vmmov %vm6428_vm0 }
 0x1f0   : > { %4173 = vmatpush3.bf16.xpose.msk.msra.mxu1 %vm4721_vm2, %v6425_v4  ;;  %4407 = vmatpush3.bf16.xpose.msk.msra.mxu0 %vm4721_vm2, %v4405_v48  ;;  %v6440_v48 = vld [vmem:[#allocation89_spill] sm:$0xff]  ;;  %v6442_v4 = vld [vmem:[#allocation90_spill] sm:$0xff] }
 0x1f1   : > { %4176 = vmatprep.subr.msk.bf16.mxu1 %vm4721_vm2, %v6426_v23  ;;  %4410 = vmatprep.subr.msk.bf16.mxu0 %vm4721_vm2, %v4408_v26  ;;  %v6441_v26 = vsel %vm6385_vm11, %v6440_v48, 0.0  ;;  %v1837_v23 = vld [vmem:[#allocation2 + $0xa7] sm:$0xff]  ;;  %vm6443_vm11 = vmmov %vm6428_vm0 }
 0x1f2   : > { %3992 = vmatprep.mubr.msk.f32.mxu0 %vm6427_vm10, %v3629_v50  ;;  %v1869_v51 = vsel %vm6391_vm1, %v1837_v23, 0.0  ;;  %vm6445_vm1 = vmmov %vm6428_vm0  ;;  %v3521_v23 = vld [vmem:[%s6036_s1 + $0x38] sm:$0xff] }
 0x1f3   : > { %3993 = vmatmul.mubr.msk.f32.gmra.mrb[2].mxu0 %vm6428_vm0, %v3629_v50  ;;  %v4210_v50 = vpack.c.bf16 %v1836_v24, %v6441_v26  ;;  %v6474_v26 = vld [vmem:[#allocation95_spill] sm:$0xff]  ;;  %vm6478_vm10 = vmmov %vm6428_vm0 }
 0x1f4   : > { %4026 = vmatprep.mubr.msk.f32.mxu0 %vm6429_vm14, %v5766_v42  ;;  %vm6479_vm14 = vmmov %vm6428_vm0 }
 0x1f8   : > { %4179 = vmatpush3.bf16.xpose.msk.msra.mxu1 %vm4721_vm2, %v6430_v22  ;;  %4413 = vmatpush3.bf16.xpose.msk.msra.mxu0 %vm4721_vm2, %v4411_v11  ;;  %v3021_v11 = vld [vmem:[#allocation2 + $0xa9] sm:$0xff]  ;;  %v4447_v22 = vpack.c.bf16 %v2802_v34, %v2801_v8 }
 0x1f9   : > { %4182 = vmatprep.subr.msk.bf16.mxu1 %vm4721_vm2, %v6431_v53  ;;  %4416 = vmatprep.subr.msk.bf16.mxu0 %vm4721_vm2, %v4414_v55  ;;  %v3054_v55 = vsel %vm6416_vm5, %v3022_v52, 0.0  ;;  %v4216_v53 = vpack.c.bf16 %v1838_v41, %v1869_v51  ;;  %vm6446_vm5 = vmmov %vm6428_vm0  ;;  %v970_v51 = vpop.permute.xlu0 %969 }
 0x1fa   : > { %v5841_v63 = vpack.c.bf16 %v3054_v55, %v3021_v11 }
 0x200   : > { %4185 = vmatpush3.bf16.xpose.msk.msra.mxu1 %vm4721_vm2, %v6432_v27  ;;  %4419 = vmatpush3.bf16.xpose.msk.msra.mxu0 %vm4721_vm2, %v4417_v49  ;;  %v1822_v49 = vld [vmem:[#allocation2 + $0x2f] sm:$0xff]  ;;  %v1840_v27 = vld [vmem:[#allocation2 + $0xbf] sm:$0xff] }
 0x201   : > { %4188 = vmatprep.subr.msk.bf16.mxu1 %vm4721_vm2, %v6433_v36  ;;  %4422 = vmatprep.subr.msk.bf16.mxu0 %vm4721_vm2, %v4420_v20  ;;  %v3038_v20 = vsel %vm6418_vm8, %v3006_v37, 0.0  ;;  %v1871_v36 = vsel %vm5325_vm13, %v1839_v45, 0.0  ;;  %v4219_v0 = vpack.c.bf16 %v1822_v49, %v1853_v38  ;;  %vm6450_vm13 = vmmov %vm6428_vm0 }
 0x202   : > { %v4453_v60 = vpack.c.bf16 %v3038_v20, %v3005_v6  ;;  %vm6452_vm8 = vmmov %vm6428_vm0 }
 0x208   : > { %4191 = vmatpush3.bf16.xpose.msk.msra.mxu1 %vm4721_vm2, %v6434_v5  ;;  %4425 = vmatpush3.bf16.xpose.msk.msra.mxu0 %vm4721_vm2, %v4423_v10  ;;  %v4222_v10 = vpack.c.bf16 %v1840_v27, %v1871_v36  ;;  %v6455_v5 = vld [vmem:[#allocation31_spill] sm:$0xff] }
 0x209   : > { %4194 = vmatprep.subr.msk.bf16.mxu1 %vm4721_vm2, %v6435_v28  ;;  %4428 = vmatprep.subr.msk.bf16.mxu0 %vm4721_vm2, %v4426_v25  ;;  %v6454_v25 = vld [vmem:[#allocation30_spill] sm:$0xff]  ;;  %v6456_v28 = vld [vmem:[#allocation41_spill] sm:$0xff] }
 0x210   : > { %4197 = vmatpush3.bf16.xpose.msk.msra.mxu1 %vm4721_vm2, %v6436_v54  ;;  %4431 = vmatpush3.bf16.xpose.msk.msra.mxu0 %vm4721_vm2, %v4429_v30  ;;  %v6461_v30 = vld [vmem:[#allocation51_spill] sm:$0xff]  ;;  %v6463_v54 = vld [vmem:[#allocation66_spill] sm:$0xff] }
 0x211   : > { %4200 = vmatprep.subr.msk.bf16.mxu1 %vm4721_vm2, %v6437_v35  ;;  %4434 = vmatprep.subr.msk.bf16.mxu0 %vm4721_vm2, %v4432_v15  ;;  %v6462_v15 = vld [vmem:[#allocation65_spill] sm:$0xff]  ;;  %v6464_v35 = vld [vmem:[#allocation75_spill] sm:$0xff] }
 0x218   : > { %4203 = vmatpush3.bf16.xpose.msk.msra.mxu1 %vm4721_vm2, %v6438_v12  ;;  %4437 = vmatpush3.bf16.xpose.msk.msra.mxu0 %vm4721_vm2, %v4435_v21  ;;  %v3036_v21 = vld [vmem:[#allocation2 + $0x121] sm:$0xff]  ;;  %v6470_v12 = vld [vmem:[#allocation92_spill] sm:$0xff] }
 0x219   : > { %4206 = vmatprep.subr.msk.bf16.mxu1 %vm4721_vm2, %v6439_v62  ;;  %4440 = vmatprep.subr.msk.bf16.mxu0 %vm4721_vm2, %v4438_v31  ;;  %v6469_v31 = vld [vmem:[#allocation86_spill] sm:$0xff]  ;;  %v6471_v62 = vld [vmem:[#allocation93_spill] sm:$0xff]  ;;  %v3068_v3 = vsel %vm5205_vm12, %v3036_v21, 0.0  ;;  %vm6475_vm12 = vnez %v6383_v57 }
 0x21a   : > { %v4492_v24 = vpack.c.bf16 %v3068_v3, %v3035_v47  ;;  %v3701_v57 = vld [vmem:[%s6036_s1 + $0x88] sm:$0xff] }
 0x220   : > { %4209 = vmatpush3.bf16.xpose.msk.msra.mxu1 %vm4721_vm2, %v6442_v4  ;;  %4443 = vmatpush3.bf16.xpose.msk.msra.mxu0 %vm4721_vm2, %v4441_v13  ;;  %v1865_v13 = vsel %vm6473_vm7, %v1833_v32, 0.0 }
 0x221   : > { %4212 = vmatprep.subr.msk.bf16.mxu1 %vm4721_vm2, %v4210_v50  ;;  %4446 = vmatprep.subr.msk.bf16.mxu0 %vm4721_vm2, %v4444_v16  ;;  %v1834_v16 = vld [vmem:[#allocation2 + $0x8f] sm:$0xff]  ;;  %v3020_v50 = vld [vmem:[#allocation2 + $0xa1] sm:$0xff] }
 0x222   : > { %v4255_v48 = vpack.c.bf16 %v1834_v16, %v1865_v13  ;;  %v3052_v7 = vsel %vm6475_vm12, %v3020_v50, 0.0 }
 0x223   : > { %v4495_v4 = vpack.c.bf16 %v3052_v7, %v3019_v19 }
 0x227   : > { %3847 = vmatmul.mubr.msk.f32.vlgmr.msra.gmra.mrb[0].mxu1 %vm6443_vm11, %v5742_v14  ;;  %v3520_v14 = vld [vmem:[%s6036_s1 + $0x30] sm:$0xff]  ;;  %vm6480_vm11 = vmmov %vm6428_vm0 }
 0x228   : > { %4215 = vmatpush3.bf16.xpose.msk.msra.mxu1 %vm4721_vm2, %v6444_v29  ;;  %4449 = vmatpush3.bf16.xpose.msk.msra.mxu0 %vm4721_vm2, %v4447_v22 }
 0x229   : > { %4218 = vmatprep.subr.msk.bf16.mxu1 %vm4721_vm2, %v4216_v53  ;;  %4452 = vmatprep.subr.msk.bf16.mxu0 %vm4721_vm2, %v5841_v63  ;;  %v965_v53 = vpop.permute.xlu1 %964 }
 0x22a   : > { %3848 = vmatprep.mubr.msk.f32.mxu1 %vm6445_vm1, %v3485_v59 }
 0x22b   : > { %3849 = vmatmul.mubr.msk.f32.gmra.mrb[2].mxu1 %vm6446_vm5, %v3485_v59 }
 0x22c   : > { %3882 = vmatprep.mubr.msk.f32.mxu1 %vm6447_vm3, %v3520_v14 }
 0x22f   : > { %4027 = vmatmul.mubr.msk.f32.vlgmr.msra.gmra.mrb[0].mxu0 %vm6448_vm4, %v5766_v42  ;;  %v6453_v42 = vld [vmem:[#allocation18_spill] sm:$0xff] }
 0x230   : > { %4221 = vmatpush3.bf16.xpose.msk.msra.mxu1 %vm4721_vm2, %v4219_v0  ;;  %4455 = vmatpush3.bf16.xpose.msk.msra.mxu0 %vm4721_vm2, %v4453_v60 }
 0x231   : > { %4224 = vmatprep.subr.msk.bf16.mxu1 %vm4721_vm2, %v4222_v10  ;;  %4458 = vmatprep.subr.msk.bf16.mxu0 %vm4721_vm2, %v6449_v1 }
 0x232   : > { %4028 = vmatprep.mubr.msk.f32.mxu0 %vm6450_vm13, %v3665_v2 }
 0x233   : > { %4029 = vmatmul.mubr.msk.f32.gmra.mrb[2].mxu0 %vm6451_vm6, %v3665_v2 }
 0x234   : > { %4062 = vmatprep.mubr.msk.f32.mxu0 %vm6452_vm8, %v3700_v33 }
 0x238   : > { %4227 = vmatpush3.bf16.xpose.msk.msra.mxu1 %vm4721_vm2, %v6453_v42  ;;  %4461 = vmatpush3.bf16.xpose.msk.msra.mxu0 %vm4721_vm2, %v6454_v25 }
 0x239   : > { %4230 = vmatprep.subr.msk.bf16.mxu1 %vm4721_vm2, %v6455_v5  ;;  %4464 = vmatprep.subr.msk.bf16.mxu0 %vm4721_vm2, %v6456_v28 }
 0x240   : > { %4233 = vmatpush3.bf16.xpose.msk.msra.mxu1 %vm4721_vm2, %v6457_v17  ;;  %4467 = vmatpush3.bf16.xpose.msk.msra.mxu0 %vm4721_vm2, %v6458_v39 }
 0x241   : > { %4236 = vmatprep.subr.msk.bf16.mxu1 %vm4721_vm2, %v6459_v18  ;;  %4470 = vmatprep.subr.msk.bf16.mxu0 %vm4721_vm2, %v6460_v58 }
 0x248   : > { %4239 = vmatpush3.bf16.xpose.msk.msra.mxu1 %vm4721_vm2, %v6461_v30  ;;  %4473 = vmatpush3.bf16.xpose.msk.msra.mxu0 %vm4721_vm2, %v6462_v15 }
 0x249   : > { %4242 = vmatprep.subr.msk.bf16.mxu1 %vm4721_vm2, %v6463_v54  ;;  %4476 = vmatprep.subr.msk.bf16.mxu0 %vm4721_vm2, %v6464_v35 }
 0x250   : > { %4245 = vmatpush3.bf16.xpose.msk.msra.mxu1 %vm4721_vm2, %v6465_v56  ;;  %4479 = vmatpush3.bf16.xpose.msk.msra.mxu0 %vm4721_vm2, %v6466_v43 }
 0x251   : > { %4248 = vmatprep.subr.msk.bf16.mxu1 %vm4721_vm2, %v6467_v40  ;;  %4482 = vmatprep.subr.msk.bf16.mxu0 %vm4721_vm2, %v6468_v9 }
 0x258   : > { %4251 = vmatpush3.bf16.xpose.msk.msra.mxu1 %vm4721_vm2, %v6469_v31  ;;  %4485 = vmatpush3.bf16.xpose.msk.msra.mxu0 %vm4721_vm2, %v6470_v12 }
 0x259   : > { %4254 = vmatprep.subr.msk.bf16.mxu1 %vm4721_vm2, %v6471_v62  ;;  %4488 = vmatprep.subr.msk.bf16.mxu0 %vm4721_vm2, %v6472_v46 }
 0x260   : > { %4257 = vmatpush3.bf16.xpose.msk.msra.mxu1 %vm4721_vm2, %v4255_v48  ;;  %4491 = vmatpush3.bf16.xpose.msk.msra.mxu0 %vm4721_vm2, %v6474_v26 }
 0x261   : > { %4498 = vmatprep.subr.msk.bf16.mxu1 %vm4721_vm2, %v5841_v63  ;;  %4494 = vmatprep.subr.msk.bf16.mxu0 %vm4721_vm2, %v4492_v24 }
 0x267   : > { %3883 = vmatmul.mubr.msk.f32.vlgmr.msra.gmra.mrb[0].mxu1 %vm6476_vm9, %v3520_v14 }
 0x268   : > { %4506 = vmatpush3.bf16.xpose.msk.msra.mxu1 %vm4721_vm2, %v4453_v60  ;;  %4497 = vmatpush3.bf16.xpose.msk.msra.mxu0 %vm4721_vm2, %v4495_v4 }
 0x269   : > { %4499 = vmatprep.subr.msk.bf16.mxu1 %vm4721_vm2, %v6449_v1  ;;  %3884 = vmatprep.mubr.msk.f32.mxu1 %vm6477_vm15, %v3521_v23 }
 0x26b   : > { %3885 = vmatmul.mubr.msk.f32.gmra.mrb[2].mxu1 %vm6478_vm10, %v3521_v23 }
 0x26c   : > { %4064 = vmatprep.mubr.msk.f32.mxu1 %vm6428_vm0, %v3701_v57 }
 0x26f   : > { %4063 = vmatmul.mubr.msk.f32.vlgmr.msra.gmra.mrb[0].mxu0 %vm6479_vm14, %v3700_v33 }
 0x270   : > { %4507 = vmatpush3.bf16.xpose.msk.msra.mxu1 %vm4721_vm2, %v6454_v25 }
 0x271   : > { %4500 = vmatprep.subr.msk.bf16.mxu1 %vm4721_vm2, %v6456_v28 }
 0x278   : > { %4508 = vmatpush3.bf16.xpose.msk.msra.mxu1 %vm4721_vm2, %v6458_v39 }
 0x279   : > { %4501 = vmatprep.subr.msk.bf16.mxu1 %vm4721_vm2, %v6460_v58 }
 0x280   : > { %4509 = vmatpush3.bf16.xpose.msk.msra.mxu1 %vm4721_vm2, %v6462_v15 }
 0x281   : > { %4502 = vmatprep.subr.msk.bf16.mxu1 %vm4721_vm2, %v6464_v35 }
 0x288   : > { %4510 = vmatpush3.bf16.xpose.msk.msra.mxu1 %vm4721_vm2, %v6466_v43 }
 0x289   : > { %4503 = vmatprep.subr.msk.bf16.mxu1 %vm4721_vm2, %v6468_v9 }
 0x290   : > { %4511 = vmatpush3.bf16.xpose.msk.msra.mxu1 %vm4721_vm2, %v6470_v12 }
 0x291   : > { %4504 = vmatprep.subr.msk.bf16.mxu1 %vm4721_vm2, %v6472_v46 }
 0x298   : > { %4512 = vmatpush3.bf16.xpose.msk.msra.mxu1 %vm4721_vm2, %v6474_v26 }
 0x299   : > { %4505 = vmatprep.subr.msk.bf16.mxu1 %vm4721_vm2, %v4492_v24 }
 0x2a0   : > { %4513 = vmatpush3.bf16.xpose.msk.msra.mxu1 %vm4721_vm2, %v4495_v4  ;;  %vm3265_vm2 = vcmask 7168  }
 0x2a7   : > { %4065 = vmatmul.mubr.msk.f32.vlgmr.msra.gmra.mrb[4].mxu1 %vm6480_vm11, %v3701_v57 }
 0x306   : > { %v2996_v52 = vpop.f32.mrb[2].mxu0 }
 0x307   : > { %v2998_v8 = vpop.f32.mrb[3].mxu0 }
 0x33a   : > { %v2054_v34 = vpop.f32.mrb[0].mxu1 }
 0x33b   : > { %v2056_v41 = vpop.f32.mrb[1].mxu1  ;;  %v4514_v59 = vadd.f32 %v2054_v34, %v965_v53 }
 0x33c   : > { %v4516_v44 = vadd.f32 %v2056_v41, %v965_v53 }
 0x33e   : > { %v2060_v11 = vpop.f32.mrb[2].mxu1 }
 0x33f   : > { %v4518_v55 = vadd.f32 %v2060_v11, %v970_v51  ;;  %v2062_v22 = vpop.f32.mrb[3].mxu1 }
 0x340   : > { %v4521_v63 = vadd.f32 %v2062_v22, %v970_v51 }
 0x341   : > { %v4519_v29 = vadd.f32 %v4518_v55, %v2996_v52 }
 0x342   : > { %v3240_v37 = vpop.f32.mrb[0].mxu0  ;;  %v4522_v45 = vadd.f32 %v4521_v63, %v2998_v8 }
 0x343   : > { %v4515_v14 = vadd.f32 %v4514_v59, %v3240_v37  ;;  %v3242_v61 = vpop.f32.mrb[1].mxu0 }
 0x344   : > { %v4517_v49 = vadd.f32 %v4516_v44, %v3242_v61 }
 0x345   : > { %3255 = vst [vmem:[%s293_s17] sm:$0xff] %v4515_v14  ;;  %v3268_v20 = vmul.f32 %v4515_v14, %v4515_v14 }
 0x346   : > { %3256 = vst [vmem:[%s293_s17 + $0x8] sm:$0xff] %v4517_v49  ;;  %v3259_v27 = vadd.f32 %v4517_v49, %v4515_v14  ;;  %v3269_v36 = vmul.f32 %v4517_v49, %v4517_v49 }
 0x348   : > { %3260 = vadd.xlane.f32.xlu0 %v3259_v27  ;;  %v3272_v38 = vadd.f32 %v3269_v36, %v3268_v20 }
 0x34c   : > { %3273 = vadd.xlane.f32.xlu0 %v3272_v38 }
 0x37a   : > { %v3246_v6 = vpop.f32.mrb[4].mxu1 }
 0x37b   : > { %v4520_v0 = vadd.f32 %v4519_v29, %v3246_v6  ;;  %v3248_v60 = vpop.f32.mrb[5].mxu1 }
 0x37c   : > { %v4523_v10 = vadd.f32 %v4522_v45, %v3248_v60 }
 0x37d   : > { %3257 = vst [vmem:[%s293_s17 + $0x10] sm:$0xff] %v4520_v0  ;;  %v3270_v2 = vmul.f32 %v4520_v0, %v4520_v0 }
 0x37e   : > { %3258 = vst [vmem:[%s293_s17 + $0x18] sm:$0xff] %v4523_v10  ;;  %v3262_v1 = vadd.f32 %v4523_v10, %v4520_v0  ;;  %v3271_v33 = vmul.f32 %v4523_v10, %v4523_v10 }
 0x380   : > { %3263 = vadd.xlane.f32.xlu1 %v3262_v1  ;;  %v3275_v42 = vadd.f32 %v3271_v33, %v3270_v2 }
 0x382   : > { %3276 = vadd.xlane.f32.xlu0 %v3275_v42 }
 0x3d5   : > { %v3261_v25 = vpop.xlane.xlu0 %3260 }
 0x3d6   : > { %3266 = vst.msk [vmem:[%s298_s20] sm:$0xff] %vm3265_vm2, %v3261_v25 }
 0x3d9   : > { %v3274_v5 = vpop.xlane.xlu0 %3273 }
 0x3da   : > { %3278 = vst.msk [vmem:[%s303_s23] sm:$0xff] %vm3265_vm2, %v3274_v5 }
 0x40d   : > { %v3264_v28 = vpop.xlane.xlu1 %3263 }
 0x40e   : > { %3267 = vst.msk [vmem:[%s298_s20 + $0x8] sm:$0xff] %vm3265_vm2, %v3264_v28 }
 0x40f   : > { %v3277_v17 = vpop.xlane.xlu0 %3276 }
 0x410   : > { %3279 = vst.msk [vmem:[%s303_s23 + $0x8] sm:$0xff] %vm3265_vm2, %v3277_v17 }
 0x411 PF: > { %s18_s24 = sadd.s32 1, %s4568_s24  }
 0x412   : > { %p15_p4 = scmp.ge.s32.totalorder %s18_s24, 4  }
 0x414   :  { %17 = sbr.rel (!%p15_p4) target bundleno = 1 (0x1), region = 102 }

</bundles_post_ra>
